<compile_context>
chip_gen: v7x
topology: tpu7x:2x2x1
jax: 0.10.0
libtpu: 0.0.40
codegen_flags: <defaults>
</compile_context>

<pallas_src>
import math

import jax
import jax.numpy as jnp
from jax.experimental import pallas as pl
from jax.experimental.pallas import tpu as pltpu
from functools import partial

LANE = 128          # TPU lane width; hidden/output dims padded to this
NEG_BIG = -1e30     # softmax padding value for unused output lanes


# ----------------------------------------------------------------------------
# Pallas kernel: full fused forward pass for one batch tile (B_TILE sequences)
# ----------------------------------------------------------------------------
def net_kernel(
    x_ref,        # (S*B, IN)     time-major within the tile: row = t*B + b
    w1_ref,       # (IN, HID)     bf16 (contraction dim unpadded)
    b1_ref,       # (1, HID)      f32
    wih_ref,      # (HID, 4*HP)   bf16, gate OUTPUT blocks lane-aligned
    whh_ref,      # (HP, 4*HP)    bf16, recurrent weight (h stays 128 wide)
    blstm_ref,    # (1, 4*HP)     b_ih + b_hh presummed, f32
    h0_ref,       # (B, HP)       f32
    c0_ref,       # (B, HP)       f32
    w2_ref,       # (HP, OP)      bf16
    b2_ref,       # (1, OP)       f32, pad lanes hold NEG_BIG (-> prob 0)
    out_ref,      # (S*B, OP)     softmax probabilities (lane-dense)
    hn_ref,       # (B, HP)       new hidden h_n (aliased with h0)
    cn_ref,       # (B, HP)       new hidden c_n (aliased with c0)
    gx_s,         # scratch (S*B, 4*HP) f32: hoisted LSTM input projection
):
    B, HP = h0_ref.shape
    S = x_ref.shape[0] // B
    f32 = jnp.float32
    bf16 = jnp.bfloat16

    # --- Linear(in, H) + Tanh (bf16 operands, f32 accumulate) ---------------
    y1 = jnp.tanh(
        jnp.dot(x_ref[...].astype(bf16), w1_ref[...], preferred_element_type=f32)
        + b1_ref[...]
    )                                                        # (S*B, HID) f32

    # --- LSTM input projection hoisted out of the recurrence ----------------
    # Park in VMEM scratch so the (S*B, 4*HP) activation is not live in vregs
    # across the unrolled recurrence (avoids spills); per-step reads below are
    # full 8-sublane unmasked tiles because rows are time-major.
    gx_s[...] = (
        jnp.dot(y1.astype(bf16), wih_ref[...], preferred_element_type=f32)
        + blstm_ref[...]
    )                                                        # (S*B, 4*HP)

    h = h0_ref[...]                                          # (B, HP) f32
    c = c0_ref[...]

    # Static unroll (S small & fixed).  PyTorch gate order [i, f, g, o].
    # Recurrent RHS is sliced per 128-lane gate block straight from VMEM so
    # the full (128,512) weight never occupies 32 live vregs.
    for t in range(S):
        hb = h.astype(bf16)
        gx = gx_s[t * B:(t + 1) * B, :]                      # (B, 4*HP) f32
        i_g = jax.nn.sigmoid(gx[:, 0 * HP:1 * HP] + jnp.dot(
            hb, whh_ref[:, 0 * HP:1 * HP], preferred_element_type=f32))
        f_g = jax.nn.sigmoid(gx[:, 1 * HP:2 * HP] + jnp.dot(
            hb, whh_ref[:, 1 * HP:2 * HP], preferred_element_type=f32))
        g_g = jnp.tanh(gx[:, 2 * HP:3 * HP] + jnp.dot(
            hb, whh_ref[:, 2 * HP:3 * HP], preferred_element_type=f32))
        o_g = jax.nn.sigmoid(gx[:, 3 * HP:4 * HP] + jnp.dot(
            hb, whh_ref[:, 3 * HP:4 * HP], preferred_element_type=f32))
        c = f_g * c + i_g * g_g
        h = o_g * jnp.tanh(c)

        # Actor head (Tanh -> Linear -> Softmax) folded into the recurrence:
        # depends only on h_t, so it hides under the next step's h-chain.
        logits = jnp.dot(jnp.tanh(h).astype(bf16), w2_ref[...],
                         preferred_element_type=f32) + b2_ref[...]
        m = jnp.max(logits, axis=-1, keepdims=True)
        e = jnp.exp(logits - m)                              # pad lanes -> 0
        den = jnp.sum(e, axis=-1, keepdims=True)
        inv = pl.reciprocal(den, approx=True)
        inv = inv * (2.0 - den * inv)                        # one Newton step
        out_ref[t * B:(t + 1) * B, :] = e * inv              # (B, OP) unmasked

    hn_ref[...] = h
    cn_ref[...] = c


# ----------------------------------------------------------------------------
# pallas_call wrapper (batched: B = nb * b_tile independent sequences)
# ----------------------------------------------------------------------------
@partial(jax.jit, static_argnames=("b_tile",))
def recurrent_forward_pallas(x, w1, b1, w_ih, w_hh, b_lstm, h0, c0, w2, b2,
                             *, b_tile=8):
    B, S, in_dim = x.shape
    assert B % b_tile == 0
    nb = B // b_tile
    hid = w1.shape[1]
    hp = w_hh.shape[0]
    op = w2.shape[1]

    # Time-major layout inside each batch tile: row = t * b_tile + b_local.
    xk = (x.reshape(nb, b_tile, S, in_dim)
           .transpose(0, 2, 1, 3)
           .reshape(nb, S * b_tile, in_dim))
    h0k = h0.reshape(nb, b_tile, hp)
    c0k = c0.reshape(nb, b_tile, hp)

    inputs = (xk, w1, b1, w_ih, w_hh, b_lstm, h0k, c0k, w2, b2)
    out_shapes = (
        jax.ShapeDtypeStruct((nb, S * b_tile, op), jnp.float32),
        jax.ShapeDtypeStruct((nb, b_tile, hp), jnp.float32),
        jax.ShapeDtypeStruct((nb, b_tile, hp), jnp.float32),
    )

    # Advisory cost estimate with actual (trimmed) operand sizes.
    flops = 2 * B * S * (in_dim * hid + hid * 4 * hp + hp * 4 * hp + hp * op)
    transcendentals = B * S * (hid + 6 * hp + op + 1)
    in_bytes = sum(int(a.size) * a.dtype.itemsize for a in inputs)
    out_bytes = sum(int(math.prod(s.shape)) * 4 for s in out_shapes)

    const = lambda *_: (0, 0)   # weights: same block every grid step (no re-DMA)
    out, hn, cn = pl.pallas_call(
        net_kernel,
        grid=(nb,),
        in_specs=[
            pl.BlockSpec((None, S * b_tile, in_dim), lambda i: (i, 0, 0)),  # x
            pl.BlockSpec((in_dim, hid), const),                             # w1
            pl.BlockSpec((1, hid), const),                                  # b1
            pl.BlockSpec((hid, 4 * hp), const),                             # w_ih
            pl.BlockSpec((hp, 4 * hp), const),                              # w_hh
            pl.BlockSpec((1, 4 * hp), const),                               # b_lstm
            pl.BlockSpec((None, b_tile, hp), lambda i: (i, 0, 0)),          # h0
            pl.BlockSpec((None, b_tile, hp), lambda i: (i, 0, 0)),          # c0
            pl.BlockSpec((hp, op), const),                                  # w2
            pl.BlockSpec((1, op), const),                                   # b2
        ],
        out_specs=(
            pl.BlockSpec((None, S * b_tile, op), lambda i: (i, 0, 0)),
            pl.BlockSpec((None, b_tile, hp), lambda i: (i, 0, 0)),
            pl.BlockSpec((None, b_tile, hp), lambda i: (i, 0, 0)),
        ),
        out_shape=out_shapes,
        scratch_shapes=[pltpu.VMEM((S * b_tile, 4 * hp), jnp.float32)],
        input_output_aliases={6: 1, 7: 2},   # h0 -> hn, c0 -> cn
        compiler_params=pltpu.CompilerParams(
            dimension_semantics=("parallel",)   # batch tiles shard across TCs
        ),
        cost_estimate=pl.CostEstimate(
            flops=flops,
            transcendentals=transcendentals,
            bytes_accessed=in_bytes + out_bytes,
        ),
    )(*inputs)

    out = (out.reshape(nb, S, b_tile, op)
              .transpose(0, 2, 1, 3)
              .reshape(B, S, op))
    return out, hn.reshape(B, hp), cn.reshape(B, hp)


# ----------------------------------------------------------------------------
# Host-side parameter prep.  Only the gate OUTPUT blocks / head are padded to
# 128 lanes (so gate slicing and the output store stay unmasked); contraction
# dims of w1 / w_ih are kept at HID to avoid shipping 94%-zero weights.
# ----------------------------------------------------------------------------
def pad_params(p, in_dim, hid, out_dim, hp=LANE, op=LANE):
    assert hid <= hp and out_dim <= op
    w1 = p["w1"].astype(jnp.bfloat16)                         # (in, hid)
    b1 = p["b1"].astype(jnp.float32)                          # (1, hid)

    w_ih = jnp.zeros((hid, 4 * hp), jnp.float32)
    w_hh = jnp.zeros((hp, 4 * hp), jnp.float32)
    b_lstm = jnp.zeros((1, 4 * hp), jnp.float32)
    bsum = p["b_ih"] + p["b_hh"]
    for k in range(4):   # per-gate lane-aligned output blocks, order [i,f,g,o]
        w_ih = w_ih.at[:, k * hp:k * hp + hid].set(
            p["w_ih"][:, k * hid:(k + 1) * hid])
        w_hh = w_hh.at[:hid, k * hp:k * hp + hid].set(
            p["w_hh"][:, k * hid:(k + 1) * hid])
        b_lstm = b_lstm.at[:, k * hp:k * hp + hid].set(
            bsum[:, k * hid:(k + 1) * hid])

    w2 = jnp.zeros((hp, op), jnp.float32).at[:hid, :out_dim].set(p["w2"])
    b2 = jnp.full((1, op), NEG_BIG, jnp.float32).at[:, :out_dim].set(p["b2"])
    return {"w1": w1, "b1": b1,
            "w_ih": w_ih.astype(jnp.bfloat16),
            "w_hh": w_hh.astype(jnp.bfloat16),
            "b_lstm": b_lstm,
            "w2": w2.astype(jnp.bfloat16), "b2": b2}


# ----------------------------------------------------------------------------
# Python wrapper mirroring BaseTorchNetwork's stateful hidden management.
# Each batch row is an independent environment with its own hidden state,
# processed with exactly the original module's (unbatched) semantics.
# ----------------------------------------------------------------------------
class BaseNetworkPallas:
    """Pallas analogue of BaseTorchNetwork (recurrent actor)."""

    LSTM_LAYER_INDEX = 2  # index of the LSTM inside the Sequential
    NUM_LAYERS = 1

    def __init__(self, params, in_dim, hid, out_dim, batch, b_tile=8):
        self.in_dim, self.hid, self.out_dim = in_dim, hid, out_dim
        self.batch, self.b_tile = batch, b_tile
        self.hp, self.op = LANE, LANE
        self.padded = pad_params(params, in_dim, hid, out_dim, self.hp, self.op)
        self.recurrent = True  # architecture contains an LSTM
        self.init_hiddens()

    def init_hiddens(self):
        h0 = jnp.zeros((self.batch, self.hp), jnp.float32)
        c0 = jnp.zeros((self.batch, self.hp), jnp.float32)
        self.hiddens = {self.LSTM_LAYER_INDEX: (h0, c0)}

    def get_hiddens_unpadded(self):
        h, c = self.hiddens[self.LSTM_LAYER_INDEX]
        return h[:, :self.hid], c[:, :self.hid]

    def forward(self, x):
        """x: (B, S, in_dim) — B independent environments/sequences."""
        p = self.padded
        h0, c0 = self.hiddens[self.LSTM_LAYER_INDEX]
        # detach_hidden is a no-op here: raw JAX arrays carry no autograd tape.
        out, hn, cn = recurrent_forward_pallas(
            x, p["w1"], p["b1"], p["w_ih"], p["w_hh"], p["b_lstm"],
            h0, c0, p["w2"], p["b2"], b_tile=self.b_tile,
        )
        self.hiddens[self.LSTM_LAYER_INDEX] = (hn, cn)
        return out[:, :, :self.out_dim]


# ----------------------------------------------------------------------------
# Pure-JAX f32 reference (mirrors PyTorch recurrent_forward, one sequence)
# ----------------------------------------------------------------------------
def reference_forward(x, p, h0, c0):
    H = h0.shape[1]
    y1 = jnp.tanh(x @ p["w1"] + p["b1"])
    h, c = h0, c0
    outs = []
    for t in range(x.shape[0]):
        x_t = y1[t:t + 1]
        gates = x_t @ p["w_ih"] + h @ p["w_hh"] + p["b_ih"] + p["b_hh"]
        i = jax.nn.sigmoid(gates[:, :H])
        f = jax.nn.sigmoid(gates[:, H:2 * H])
        g = jnp.tanh(gates[:, 2 * H:3 * H])
        o = jax.nn.sigmoid(gates[:, 3 * H:])
        c = f * c + i * g
        h = o * jnp.tanh(c)
        outs.append(h)
    y2 = jnp.tanh(jnp.concatenate(outs, axis=0))
    logits = y2 @ p["w2"] + p["b2"]
    return jax.nn.softmax(logits, axis=-1), h, c


# ----------------------------------------------------------------------------
# main
# ----------------------------------------------------------------------------
def make_params(key, in_dim, hid, out_dim):
    ks = jax.random.split(key, 7)
    s1 = 1.0 / jnp.sqrt(in_dim)
    sh = 1.0 / jnp.sqrt(hid)
    return {
        "w1":   jax.random.uniform(ks[0], (in_dim, hid), jnp.float32, -s1, s1),
        "b1":   jax.random.uniform(ks[1], (1, hid), jnp.float32, -s1, s1),
        "w_ih": jax.random.uniform(ks[2], (hid, 4 * hid), jnp.float32, -sh, sh),
        "w_hh": jax.random.uniform(ks[3], (hid, 4 * hid), jnp.float32, -sh, sh),
        "b_ih": jax.random.uniform(ks[4], (1, 4 * hid), jnp.float32, -sh, sh),
        "b_hh": jax.random.uniform(ks[5], (1, 4 * hid), jnp.float32, -sh, sh),
        "w2":   jax.random.uniform(ks[6], (hid, out_dim), jnp.float32, -sh, sh),
        "b2":   jnp.zeros((1, out_dim), jnp.float32),
    }


if __name__ == "__main__":
    SEQ, IN_DIM, HID, OUT_DIM = 8, 16, 32, 4
    B_ENVS, B_TILE = 16, 8     # 16 independent envs; grid=(2,) "parallel"

    key = jax.random.PRNGKey(0)
    pkey, xkey = jax.random.split(key)
    params = make_params(pkey, IN_DIM, HID, OUT_DIM)
    x = jax.random.normal(xkey, (B_ENVS, SEQ, IN_DIM), jnp.float32)

    net = BaseNetworkPallas(params, IN_DIM, HID, OUT_DIM,
                            batch=B_ENVS, b_tile=B_TILE)

    # First forward call (hiddens start at zeros, as in init_hiddens()).
    out1 = net.forward(x)
    jax.block_until_ready(out1)

    # Pure-JAX f32 reference of the PyTorch semantics, per environment.
    h0 = jnp.zeros((B_ENVS, 1, HID), jnp.float32)
    c0 = jnp.zeros((B_ENVS, 1, HID), jnp.float32)
    ref_fn = jax.jit(jax.vmap(lambda xb, h, c: reference_forward(xb, params, h, c)))
    ref_out, ref_h, ref_c = ref_fn(x, h0, c0)
    hn, cn = net.get_hiddens_unpadded()

    # bf16 MXU operands (f32 accumulate) + EUP approx reciprocal bound the
    # deviation from the f32 reference; tolerances reflect that.
    assert jnp.allclose(out1, ref_out, atol=5e-3, rtol=0.0)
    assert jnp.allclose(hn, ref_h[:, 0, :], atol=5e-3, rtol=0.0)
    assert jnp.allclose(cn, ref_c[:, 0, :], atol=5e-3, rtol=0.0)
    # Mirror the module's assertion that the hidden state actually changed.
    h0_flat = jnp.zeros((B_ENVS, HID), jnp.float32)
    assert not (jnp.array_equal(h0_flat, hn) and jnp.array_equal(h0_flat, cn))

    # Second call demonstrates stateful hidden propagation across forwards.
    out2 = net.forward(x)
    jax.block_until_ready(out2)

    print("KERNEL_OK")
</pallas_src>

<mosaic_0001>
module attributes {stable_mosaic.version = 11 : i64} {
  func.func @net_kernel(%arg0: i32, %arg1: memref<1x64x16xf32, #tpu.memory_space<vmem>>, %arg2: memref<16x32xbf16, #tpu.memory_space<vmem>>, %arg3: memref<1x32xf32, #tpu.memory_space<vmem>>, %arg4: memref<32x512xbf16, #tpu.memory_space<vmem>>, %arg5: memref<128x512xbf16, #tpu.memory_space<vmem>>, %arg6: memref<1x512xf32, #tpu.memory_space<vmem>>, %arg7: memref<1x8x128xf32, #tpu.memory_space<vmem>>, %arg8: memref<1x8x128xf32, #tpu.memory_space<vmem>>, %arg9: memref<128x128xbf16, #tpu.memory_space<vmem>>, %arg10: memref<1x128xf32, #tpu.memory_space<vmem>>, %arg11: memref<1x64x128xf32, #tpu.memory_space<vmem>>, %arg12: memref<1x8x128xf32, #tpu.memory_space<vmem>>, %arg13: memref<1x8x128xf32, #tpu.memory_space<vmem>>, %arg14: memref<64x512xf32, #tpu.memory_space<vmem>>) attributes {dimension_semantics = [#tpu.dimension_semantics<parallel>], iteration_bounds = array<i64: 2>, scalar_prefetch = 0 : i64, scratch_operands = 1 : i64, tpu.core_type = #tpu.core_type<tc>, window_params = [{transform_indices = @transform_0, window_bounds = array<i64: 1, 64, 16>}, {pipeline_mode = #tpu.pipeline_mode<synchronous>, transform_indices = @transform_1, window_bounds = array<i64: 16, 32>}, {pipeline_mode = #tpu.pipeline_mode<synchronous>, transform_indices = @transform_2, window_bounds = array<i64: 1, 32>}, {pipeline_mode = #tpu.pipeline_mode<synchronous>, transform_indices = @transform_3, window_bounds = array<i64: 32, 512>}, {pipeline_mode = #tpu.pipeline_mode<synchronous>, transform_indices = @transform_4, window_bounds = array<i64: 128, 512>}, {pipeline_mode = #tpu.pipeline_mode<synchronous>, transform_indices = @transform_5, window_bounds = array<i64: 1, 512>}, {transform_indices = @transform_6, window_bounds = array<i64: 1, 8, 128>}, {transform_indices = @transform_7, window_bounds = array<i64: 1, 8, 128>}, {pipeline_mode = #tpu.pipeline_mode<synchronous>, transform_indices = @transform_8, window_bounds = array<i64: 128, 128>}, {pipeline_mode = #tpu.pipeline_mode<synchronous>, transform_indices = @transform_9, window_bounds = array<i64: 1, 128>}, {transform_indices = @transform_10, window_bounds = array<i64: 1, 64, 128>}, {transform_indices = @transform_11, window_bounds = array<i64: 1, 8, 128>}, {transform_indices = @transform_12, window_bounds = array<i64: 1, 8, 128>}]} {
    %c0 = arith.constant 0 : index
    %c0_0 = arith.constant 0 : index
    %c0_1 = arith.constant 0 : index
    %0 = vector.load %arg1[%c0, %c0_0, %c0_1] : memref<1x64x16xf32, #tpu.memory_space<vmem>>, vector<1x64x16xf32>
    %1 = vector.shape_cast %0 : vector<1x64x16xf32> to vector<64x16xf32>
    %2 = arith.truncf %1 : vector<64x16xf32> to vector<64x16xbf16>
    %c0_2 = arith.constant 0 : index
    %c0_3 = arith.constant 0 : index
    %3 = vector.load %arg2[%c0_2, %c0_3] : memref<16x32xbf16, #tpu.memory_space<vmem>>, vector<16x32xbf16>
    %cst = arith.constant dense<0.000000e+00> : vector<64x32xf32>
    %4 = tpu.matmul %2, %3, %cst {dimension_numbers = #tpu.dot_dimension_numbers<[1], [0], [0], [1], [0, 0, 1, 1], [], []>} : vector<64x16xbf16>, vector<16x32xbf16>, vector<64x32xf32> -> vector<64x32xf32>
    %c0_4 = arith.constant 0 : index
    %c0_5 = arith.constant 0 : index
    %5 = vector.load %arg3[%c0_4, %c0_5] : memref<1x32xf32, #tpu.memory_space<vmem>>, vector<1x32xf32>
    %6 = vector.broadcast %5 : vector<1x32xf32> to vector<64x32xf32>
    %7 = arith.addf %4, %6 : vector<64x32xf32>
    %8 = math.tanh %7 : vector<64x32xf32>
    %9 = arith.truncf %8 : vector<64x32xf32> to vector<64x32xbf16>
    %c0_6 = arith.constant 0 : index
    %c0_7 = arith.constant 0 : index
    %10 = vector.load %arg4[%c0_6, %c0_7] : memref<32x512xbf16, #tpu.memory_space<vmem>>, vector<32x512xbf16>
    %cst_8 = arith.constant dense<0.000000e+00> : vector<64x512xf32>
    %11 = tpu.matmul %9, %10, %cst_8 {dimension_numbers = #tpu.dot_dimension_numbers<[1], [0], [0], [1], [0, 0, 1, 1], [], []>} : vector<64x32xbf16>, vector<32x512xbf16>, vector<64x512xf32> -> vector<64x512xf32>
    %c0_9 = arith.constant 0 : index
    %c0_10 = arith.constant 0 : index
    %12 = vector.load %arg6[%c0_9, %c0_10] : memref<1x512xf32, #tpu.memory_space<vmem>>, vector<1x512xf32>
    %13 = vector.broadcast %12 : vector<1x512xf32> to vector<64x512xf32>
    %14 = arith.addf %11, %13 : vector<64x512xf32>
    %c0_11 = arith.constant 0 : index
    %c0_12 = arith.constant 0 : index
    %15 = vector.load %arg14[%c0_11, %c0_12] : memref<64x512xf32, #tpu.memory_space<vmem>>, vector<64x512xf32>
    tpu.vector_store %arg14[%c0_11, %c0_12], %14 {strides = array<i32>} : memref<64x512xf32, #tpu.memory_space<vmem>>, vector<64x512xf32>,
    %c0_13 = arith.constant 0 : index
    %c0_14 = arith.constant 0 : index
    %c0_15 = arith.constant 0 : index
    %16 = vector.load %arg7[%c0_13, %c0_14, %c0_15] : memref<1x8x128xf32, #tpu.memory_space<vmem>>, vector<1x8x128xf32>
    %17 = vector.shape_cast %16 : vector<1x8x128xf32> to vector<8x128xf32>
    %c0_16 = arith.constant 0 : index
    %c0_17 = arith.constant 0 : index
    %c0_18 = arith.constant 0 : index
    %18 = vector.load %arg8[%c0_16, %c0_17, %c0_18] : memref<1x8x128xf32, #tpu.memory_space<vmem>>, vector<1x8x128xf32>
    %19 = vector.shape_cast %18 : vector<1x8x128xf32> to vector<8x128xf32>
    %20 = arith.truncf %17 : vector<8x128xf32> to vector<8x128xbf16>
    %c0_19 = arith.constant 0 : index
    %c0_20 = arith.constant 0 : index
    %21 = vector.load %arg14[%c0_19, %c0_20] : memref<64x512xf32, #tpu.memory_space<vmem>>, vector<8x512xf32>
    %22 = vector.extract_strided_slice %21 {offsets = [0, 0], sizes = [8, 128], strides = [1, 1]} : vector<8x512xf32> to vector<8x128xf32>
    %c0_21 = arith.constant 0 : index
    %c0_22 = arith.constant 0 : index
    %23 = vector.load %arg5[%c0_21, %c0_22] : memref<128x512xbf16, #tpu.memory_space<vmem>>, vector<128x128xbf16>
    %cst_23 = arith.constant dense<0.000000e+00> : vector<8x128xf32>
    %24 = tpu.matmul %20, %23, %cst_23 {dimension_numbers = #tpu.dot_dimension_numbers<[1], [0], [0], [1], [0, 0, 1, 1], [], []>} : vector<8x128xbf16>, vector<128x128xbf16>, vector<8x128xf32> -> vector<8x128xf32>
    %25 = arith.addf %22, %24 : vector<8x128xf32>
    %26 = arith.negf %25 : vector<8x128xf32>
    %27 = math.exp %26 : vector<8x128xf32>
    %cst_24 = arith.constant 1.000000e+00 : f32
    %28 = vector.broadcast %cst_24 : f32 to vector<8x128xf32>
    %29 = arith.addf %28, %27 : vector<8x128xf32>
    %30 = arith.divf %28, %29 : vector<8x128xf32>
    %31 = vector.extract_strided_slice %21 {offsets = [0, 128], sizes = [8, 128], strides = [1, 1]} : vector<8x512xf32> to vector<8x128xf32>
    %c0_25 = arith.constant 0 : index
    %c128 = arith.constant 128 : index
    %32 = vector.load %arg5[%c0_25, %c128] : memref<128x512xbf16, #tpu.memory_space<vmem>>, vector<128x128xbf16>
    %cst_26 = arith.constant dense<0.000000e+00> : vector<8x128xf32>
    %33 = tpu.matmul %20, %32, %cst_26 {dimension_numbers = #tpu.dot_dimension_numbers<[1], [0], [0], [1], [0, 0, 1, 1], [], []>} : vector<8x128xbf16>, vector<128x128xbf16>, vector<8x128xf32> -> vector<8x128xf32>
    %34 = arith.addf %31, %33 : vector<8x128xf32>
    %35 = arith.negf %34 : vector<8x128xf32>
    %36 = math.exp %35 : vector<8x128xf32>
    %cst_27 = arith.constant 1.000000e+00 : f32
    %37 = vector.broadcast %cst_27 : f32 to vector<8x128xf32>
    %38 = arith.addf %37, %36 : vector<8x128xf32>
    %39 = arith.divf %37, %38 : vector<8x128xf32>
    %40 = vector.extract_strided_slice %21 {offsets = [0, 256], sizes = [8, 128], strides = [1, 1]} : vector<8x512xf32> to vector<8x128xf32>
    %c0_28 = arith.constant 0 : index
    %c256 = arith.constant 256 : index
    %41 = vector.load %arg5[%c0_28, %c256] : memref<128x512xbf16, #tpu.memory_space<vmem>>, vector<128x128xbf16>
    %cst_29 = arith.constant dense<0.000000e+00> : vector<8x128xf32>
    %42 = tpu.matmul %20, %41, %cst_29 {dimension_numbers = #tpu.dot_dimension_numbers<[1], [0], [0], [1], [0, 0, 1, 1], [], []>} : vector<8x128xbf16>, vector<128x128xbf16>, vector<8x128xf32> -> vector<8x128xf32>
    %43 = arith.addf %40, %42 : vector<8x128xf32>
    %44 = math.tanh %43 : vector<8x128xf32>
    %45 = vector.extract_strided_slice %21 {offsets = [0, 384], sizes = [8, 128], strides = [1, 1]} : vector<8x512xf32> to vector<8x128xf32>
    %c0_30 = arith.constant 0 : index
    %c384 = arith.constant 384 : index
    %46 = vector.load %arg5[%c0_30, %c384] : memref<128x512xbf16, #tpu.memory_space<vmem>>, vector<128x128xbf16>
    %cst_31 = arith.constant dense<0.000000e+00> : vector<8x128xf32>
    %47 = tpu.matmul %20, %46, %cst_31 {dimension_numbers = #tpu.dot_dimension_numbers<[1], [0], [0], [1], [0, 0, 1, 1], [], []>} : vector<8x128xbf16>, vector<128x128xbf16>, vector<8x128xf32> -> vector<8x128xf32>
    %48 = arith.addf %45, %47 : vector<8x128xf32>
    %49 = arith.negf %48 : vector<8x128xf32>
    %50 = math.exp %49 : vector<8x128xf32>
    %cst_32 = arith.constant 1.000000e+00 : f32
    %51 = vector.broadcast %cst_32 : f32 to vector<8x128xf32>
    %52 = arith.addf %51, %50 : vector<8x128xf32>
    %53 = arith.divf %51, %52 : vector<8x128xf32>
    %54 = arith.mulf %39, %19 : vector<8x128xf32>
    %55 = arith.mulf %30, %44 : vector<8x128xf32>
    %56 = arith.addf %54, %55 : vector<8x128xf32>
    %57 = math.tanh %56 : vector<8x128xf32>
    %58 = arith.mulf %53, %57 : vector<8x128xf32>
    %59 = math.tanh %58 : vector<8x128xf32>
    %60 = arith.truncf %59 : vector<8x128xf32> to vector<8x128xbf16>
    %c0_33 = arith.constant 0 : index
    %c0_34 = arith.constant 0 : index
    %61 = vector.load %arg9[%c0_33, %c0_34] : memref<128x128xbf16, #tpu.memory_space<vmem>>, vector<128x128xbf16>
    %cst_35 = arith.constant dense<0.000000e+00> : vector<8x128xf32>
    %62 = tpu.matmul %60, %61, %cst_35 {dimension_numbers = #tpu.dot_dimension_numbers<[1], [0], [0], [1], [0, 0, 1, 1], [], []>} : vector<8x128xbf16>, vector<128x128xbf16>, vector<8x128xf32> -> vector<8x128xf32>
    %c0_36 = arith.constant 0 : index
    %c0_37 = arith.constant 0 : index
    %63 = vector.load %arg10[%c0_36, %c0_37] : memref<1x128xf32, #tpu.memory_space<vmem>>, vector<1x128xf32>
    %64 = vector.broadcast %63 : vector<1x128xf32> to vector<8x128xf32>
    %65 = arith.addf %62, %64 : vector<8x128xf32>
    %cst_38 = arith.constant dense<0xFF800000> : vector<8xf32>
    %66 = vector.multi_reduction <maximumf>, %65, %cst_38 [1] : vector<8x128xf32> to vector<8xf32>
    %67 = vector.shape_cast %66 : vector<8xf32> to vector<8x1xf32>
    %68 = vector.broadcast %67 : vector<8x1xf32> to vector<8x128xf32>
    %69 = arith.subf %65, %68 : vector<8x128xf32>
    %70 = math.exp %69 : vector<8x128xf32>
    %cst_39 = arith.constant dense<0.000000e+00> : vector<8xf32>
    %71 = vector.multi_reduction <add>, %70, %cst_39 [1] : vector<8x128xf32> to vector<8xf32>
    %72 = vector.shape_cast %71 : vector<8xf32> to vector<8x1xf32>
    %73 = tpu.reciprocal %72 {approx = true} : vector<8x1xf32> -> vector<8x1xf32>
    %74 = arith.mulf %72, %73 : vector<8x1xf32>
    %cst_40 = arith.constant 2.000000e+00 : f32
    %75 = vector.broadcast %cst_40 : f32 to vector<8x1xf32>
    %76 = arith.subf %75, %74 : vector<8x1xf32>
    %77 = arith.mulf %73, %76 : vector<8x1xf32>
    %78 = vector.broadcast %77 : vector<8x1xf32> to vector<8x128xf32>
    %79 = arith.mulf %70, %78 : vector<8x128xf32>
    %c0_41 = arith.constant 0 : index
    %c0_42 = arith.constant 0 : index
    %c0_43 = arith.constant 0 : index
    %80 = vector.load %arg11[%c0_41, %c0_42, %c0_43] : memref<1x64x128xf32, #tpu.memory_space<vmem>>, vector<1x8x128xf32>
    %81 = vector.shape_cast %80 : vector<1x8x128xf32> to vector<8x128xf32>
    %82 = vector.shape_cast %79 : vector<8x128xf32> to vector<1x8x128xf32>
    tpu.vector_store %arg11[%c0_41, %c0_42, %c0_43], %82 {strides = array<i32>} : memref<1x64x128xf32, #tpu.memory_space<vmem>>, vector<1x8x128xf32>,
    %83 = arith.truncf %58 : vector<8x128xf32> to vector<8x128xbf16>
    %c8 = arith.constant 8 : index
    %c0_44 = arith.constant 0 : index
    %84 = vector.load %arg14[%c8, %c0_44] : memref<64x512xf32, #tpu.memory_space<vmem>>, vector<8x512xf32>
    %85 = vector.extract_strided_slice %84 {offsets = [0, 0], sizes = [8, 128], strides = [1, 1]} : vector<8x512xf32> to vector<8x128xf32>
    %c0_45 = arith.constant 0 : index
    %c0_46 = arith.constant 0 : index
    %86 = vector.load %arg5[%c0_45, %c0_46] : memref<128x512xbf16, #tpu.memory_space<vmem>>, vector<128x128xbf16>
    %cst_47 = arith.constant dense<0.000000e+00> : vector<8x128xf32>
    %87 = tpu.matmul %83, %86, %cst_47 {dimension_numbers = #tpu.dot_dimension_numbers<[1], [0], [0], [1], [0, 0, 1, 1], [], []>} : vector<8x128xbf16>, vector<128x128xbf16>, vector<8x128xf32> -> vector<8x128xf32>
    %88 = arith.addf %85, %87 : vector<8x128xf32>
    %89 = arith.negf %88 : vector<8x128xf32>
    %90 = math.exp %89 : vector<8x128xf32>
    %cst_48 = arith.constant 1.000000e+00 : f32
    %91 = vector.broadcast %cst_48 : f32 to vector<8x128xf32>
    %92 = arith.addf %91, %90 : vector<8x128xf32>
    %93 = arith.divf %91, %92 : vector<8x128xf32>
    %94 = vector.extract_strided_slice %84 {offsets = [0, 128], sizes = [8, 128], strides = [1, 1]} : vector<8x512xf32> to vector<8x128xf32>
    %c0_49 = arith.constant 0 : index
    %c128_50 = arith.constant 128 : index
    %95 = vector.load %arg5[%c0_49, %c128_50] : memref<128x512xbf16, #tpu.memory_space<vmem>>, vector<128x128xbf16>
    %cst_51 = arith.constant dense<0.000000e+00> : vector<8x128xf32>
    %96 = tpu.matmul %83, %95, %cst_51 {dimension_numbers = #tpu.dot_dimension_numbers<[1], [0], [0], [1], [0, 0, 1, 1], [], []>} : vector<8x128xbf16>, vector<128x128xbf16>, vector<8x128xf32> -> vector<8x128xf32>
    %97 = arith.addf %94, %96 : vector<8x128xf32>
    %98 = arith.negf %97 : vector<8x128xf32>
    %99 = math.exp %98 : vector<8x128xf32>
    %cst_52 = arith.constant 1.000000e+00 : f32
    %100 = vector.broadcast %cst_52 : f32 to vector<8x128xf32>
    %101 = arith.addf %100, %99 : vector<8x128xf32>
    %102 = arith.divf %100, %101 : vector<8x128xf32>
    %103 = vector.extract_strided_slice %84 {offsets = [0, 256], sizes = [8, 128], strides = [1, 1]} : vector<8x512xf32> to vector<8x128xf32>
    %c0_53 = arith.constant 0 : index
    %c256_54 = arith.constant 256 : index
    %104 = vector.load %arg5[%c0_53, %c256_54] : memref<128x512xbf16, #tpu.memory_space<vmem>>, vector<128x128xbf16>
    %cst_55 = arith.constant dense<0.000000e+00> : vector<8x128xf32>
    %105 = tpu.matmul %83, %104, %cst_55 {dimension_numbers = #tpu.dot_dimension_numbers<[1], [0], [0], [1], [0, 0, 1, 1], [], []>} : vector<8x128xbf16>, vector<128x128xbf16>, vector<8x128xf32> -> vector<8x128xf32>
    %106 = arith.addf %103, %105 : vector<8x128xf32>
    %107 = math.tanh %106 : vector<8x128xf32>
    %108 = vector.extract_strided_slice %84 {offsets = [0, 384], sizes = [8, 128], strides = [1, 1]} : vector<8x512xf32> to vector<8x128xf32>
    %c0_56 = arith.constant 0 : index
    %c384_57 = arith.constant 384 : index
    %109 = vector.load %arg5[%c0_56, %c384_57] : memref<128x512xbf16, #tpu.memory_space<vmem>>, vector<128x128xbf16>
    %cst_58 = arith.constant dense<0.000000e+00> : vector<8x128xf32>
    %110 = tpu.matmul %83, %109, %cst_58 {dimension_numbers = #tpu.dot_dimension_numbers<[1], [0], [0], [1], [0, 0, 1, 1], [], []>} : vector<8x128xbf16>, vector<128x128xbf16>, vector<8x128xf32> -> vector<8x128xf32>
    %111 = arith.addf %108, %110 : vector<8x128xf32>
    %112 = arith.negf %111 : vector<8x128xf32>
    %113 = math.exp %112 : vector<8x128xf32>
    %cst_59 = arith.constant 1.000000e+00 : f32
    %114 = vector.broadcast %cst_59 : f32 to vector<8x128xf32>
    %115 = arith.addf %114, %113 : vector<8x128xf32>
    %116 = arith.divf %114, %115 : vector<8x128xf32>
    %117 = arith.mulf %102, %56 : vector<8x128xf32>
    %118 = arith.mulf %93, %107 : vector<8x128xf32>
    %119 = arith.addf %117, %118 : vector<8x128xf32>
    %120 = math.tanh %119 : vector<8x128xf32>
    %121 = arith.mulf %116, %120 : vector<8x128xf32>
    %122 = math.tanh %121 : vector<8x128xf32>
    %123 = arith.truncf %122 : vector<8x128xf32> to vector<8x128xbf16>
    %c0_60 = arith.constant 0 : index
    %c0_61 = arith.constant 0 : index
    %124 = vector.load %arg9[%c0_60, %c0_61] : memref<128x128xbf16, #tpu.memory_space<vmem>>, vector<128x128xbf16>
    %cst_62 = arith.constant dense<0.000000e+00> : vector<8x128xf32>
    %125 = tpu.matmul %123, %124, %cst_62 {dimension_numbers = #tpu.dot_dimension_numbers<[1], [0], [0], [1], [0, 0, 1, 1], [], []>} : vector<8x128xbf16>, vector<128x128xbf16>, vector<8x128xf32> -> vector<8x128xf32>
    %c0_63 = arith.constant 0 : index
    %c0_64 = arith.constant 0 : index
    %126 = vector.load %arg10[%c0_63, %c0_64] : memref<1x128xf32, #tpu.memory_space<vmem>>, vector<1x128xf32>
    %127 = vector.broadcast %126 : vector<1x128xf32> to vector<8x128xf32>
    %128 = arith.addf %125, %127 : vector<8x128xf32>
    %cst_65 = arith.constant dense<0xFF800000> : vector<8xf32>
    %129 = vector.multi_reduction <maximumf>, %128, %cst_65 [1] : vector<8x128xf32> to vector<8xf32>
    %130 = vector.shape_cast %129 : vector<8xf32> to vector<8x1xf32>
    %131 = vector.broadcast %130 : vector<8x1xf32> to vector<8x128xf32>
    %132 = arith.subf %128, %131 : vector<8x128xf32>
    %133 = math.exp %132 : vector<8x128xf32>
    %cst_66 = arith.constant dense<0.000000e+00> : vector<8xf32>
    %134 = vector.multi_reduction <add>, %133, %cst_66 [1] : vector<8x128xf32> to vector<8xf32>
    %135 = vector.shape_cast %134 : vector<8xf32> to vector<8x1xf32>
    %136 = tpu.reciprocal %135 {approx = true} : vector<8x1xf32> -> vector<8x1xf32>
    %137 = arith.mulf %135, %136 : vector<8x1xf32>
    %cst_67 = arith.constant 2.000000e+00 : f32
    %138 = vector.broadcast %cst_67 : f32 to vector<8x1xf32>
    %139 = arith.subf %138, %137 : vector<8x1xf32>
    %140 = arith.mulf %136, %139 : vector<8x1xf32>
    %141 = vector.broadcast %140 : vector<8x1xf32> to vector<8x128xf32>
    %142 = arith.mulf %133, %141 : vector<8x128xf32>
    %c0_68 = arith.constant 0 : index
    %c8_69 = arith.constant 8 : index
    %c0_70 = arith.constant 0 : index
    %143 = vector.load %arg11[%c0_68, %c8_69, %c0_70] : memref<1x64x128xf32, #tpu.memory_space<vmem>>, vector<1x8x128xf32>
    %144 = vector.shape_cast %143 : vector<1x8x128xf32> to vector<8x128xf32>
    %145 = vector.shape_cast %142 : vector<8x128xf32> to vector<1x8x128xf32>
    tpu.vector_store %arg11[%c0_68, %c8_69, %c0_70], %145 {strides = array<i32>} : memref<1x64x128xf32, #tpu.memory_space<vmem>>, vector<1x8x128xf32>,
    %146 = arith.truncf %121 : vector<8x128xf32> to vector<8x128xbf16>
    %c16 = arith.constant 16 : index
    %c0_71 = arith.constant 0 : index
    %147 = vector.load %arg14[%c16, %c0_71] : memref<64x512xf32, #tpu.memory_space<vmem>>, vector<8x512xf32>
    %148 = vector.extract_strided_slice %147 {offsets = [0, 0], sizes = [8, 128], strides = [1, 1]} : vector<8x512xf32> to vector<8x128xf32>
    %c0_72 = arith.constant 0 : index
    %c0_73 = arith.constant 0 : index
    %149 = vector.load %arg5[%c0_72, %c0_73] : memref<128x512xbf16, #tpu.memory_space<vmem>>, vector<128x128xbf16>
    %cst_74 = arith.constant dense<0.000000e+00> : vector<8x128xf32>
    %150 = tpu.matmul %146, %149, %cst_74 {dimension_numbers = #tpu.dot_dimension_numbers<[1], [0], [0], [1], [0, 0, 1, 1], [], []>} : vector<8x128xbf16>, vector<128x128xbf16>, vector<8x128xf32> -> vector<8x128xf32>
    %151 = arith.addf %148, %150 : vector<8x128xf32>
    %152 = arith.negf %151 : vector<8x128xf32>
    %153 = math.exp %152 : vector<8x128xf32>
    %cst_75 = arith.constant 1.000000e+00 : f32
    %154 = vector.broadcast %cst_75 : f32 to vector<8x128xf32>
    %155 = arith.addf %154, %153 : vector<8x128xf32>
    %156 = arith.divf %154, %155 : vector<8x128xf32>
    %157 = vector.extract_strided_slice %147 {offsets = [0, 128], sizes = [8, 128], strides = [1, 1]} : vector<8x512xf32> to vector<8x128xf32>
    %c0_76 = arith.constant 0 : index
    %c128_77 = arith.constant 128 : index
    %158 = vector.load %arg5[%c0_76, %c128_77] : memref<128x512xbf16, #tpu.memory_space<vmem>>, vector<128x128xbf16>
    %cst_78 = arith.constant dense<0.000000e+00> : vector<8x128xf32>
    %159 = tpu.matmul %146, %158, %cst_78 {dimension_numbers = #tpu.dot_dimension_numbers<[1], [0], [0], [1], [0, 0, 1, 1], [], []>} : vector<8x128xbf16>, vector<128x128xbf16>, vector<8x128xf32> -> vector<8x128xf32>
    %160 = arith.addf %157, %159 : vector<8x128xf32>
    %161 = arith.negf %160 : vector<8x128xf32>
    %162 = math.exp %161 : vector<8x128xf32>
    %cst_79 = arith.constant 1.000000e+00 : f32
    %163 = vector.broadcast %cst_79 : f32 to vector<8x128xf32>
    %164 = arith.addf %163, %162 : vector<8x128xf32>
    %165 = arith.divf %163, %164 : vector<8x128xf32>
    %166 = vector.extract_strided_slice %147 {offsets = [0, 256], sizes = [8, 128], strides = [1, 1]} : vector<8x512xf32> to vector<8x128xf32>
    %c0_80 = arith.constant 0 : index
    %c256_81 = arith.constant 256 : index
    %167 = vector.load %arg5[%c0_80, %c256_81] : memref<128x512xbf16, #tpu.memory_space<vmem>>, vector<128x128xbf16>
    %cst_82 = arith.constant dense<0.000000e+00> : vector<8x128xf32>
    %168 = tpu.matmul %146, %167, %cst_82 {dimension_numbers = #tpu.dot_dimension_numbers<[1], [0], [0], [1], [0, 0, 1, 1], [], []>} : vector<8x128xbf16>, vector<128x128xbf16>, vector<8x128xf32> -> vector<8x128xf32>
    %169 = arith.addf %166, %168 : vector<8x128xf32>
    %170 = math.tanh %169 : vector<8x128xf32>
    %171 = vector.extract_strided_slice %147 {offsets = [0, 384], sizes = [8, 128], strides = [1, 1]} : vector<8x512xf32> to vector<8x128xf32>
    %c0_83 = arith.constant 0 : index
    %c384_84 = arith.constant 384 : index
    %172 = vector.load %arg5[%c0_83, %c384_84] : memref<128x512xbf16, #tpu.memory_space<vmem>>, vector<128x128xbf16>
    %cst_85 = arith.constant dense<0.000000e+00> : vector<8x128xf32>
    %173 = tpu.matmul %146, %172, %cst_85 {dimension_numbers = #tpu.dot_dimension_numbers<[1], [0], [0], [1], [0, 0, 1, 1], [], []>} : vector<8x128xbf16>, vector<128x128xbf16>, vector<8x128xf32> -> vector<8x128xf32>
    %174 = arith.addf %171, %173 : vector<8x128xf32>
    %175 = arith.negf %174 : vector<8x128xf32>
    %176 = math.exp %175 : vector<8x128xf32>
    %cst_86 = arith.constant 1.000000e+00 : f32
    %177 = vector.broadcast %cst_86 : f32 to vector<8x128xf32>
    %178 = arith.addf %177, %176 : vector<8x128xf32>
    %179 = arith.divf %177, %178 : vector<8x128xf32>
    %180 = arith.mulf %165, %119 : vector<8x128xf32>
    %181 = arith.mulf %156, %170 : vector<8x128xf32>
    %182 = arith.addf %180, %181 : vector<8x128xf32>
    %183 = math.tanh %182 : vector<8x128xf32>
    %184 = arith.mulf %179, %183 : vector<8x128xf32>
    %185 = math.tanh %184 : vector<8x128xf32>
    %186 = arith.truncf %185 : vector<8x128xf32> to vector<8x128xbf16>
    %c0_87 = arith.constant 0 : index
    %c0_88 = arith.constant 0 : index
    %187 = vector.load %arg9[%c0_87, %c0_88] : memref<128x128xbf16, #tpu.memory_space<vmem>>, vector<128x128xbf16>
    %cst_89 = arith.constant dense<0.000000e+00> : vector<8x128xf32>
    %188 = tpu.matmul %186, %187, %cst_89 {dimension_numbers = #tpu.dot_dimension_numbers<[1], [0], [0], [1], [0, 0, 1, 1], [], []>} : vector<8x128xbf16>, vector<128x128xbf16>, vector<8x128xf32> -> vector<8x128xf32>
    %c0_90 = arith.constant 0 : index
    %c0_91 = arith.constant 0 : index
    %189 = vector.load %arg10[%c0_90, %c0_91] : memref<1x128xf32, #tpu.memory_space<vmem>>, vector<1x128xf32>
    %190 = vector.broadcast %189 : vector<1x128xf32> to vector<8x128xf32>
    %191 = arith.addf %188, %190 : vector<8x128xf32>
    %cst_92 = arith.constant dense<0xFF800000> : vector<8xf32>
    %192 = vector.multi_reduction <maximumf>, %191, %cst_92 [1] : vector<8x128xf32> to vector<8xf32>
    %193 = vector.shape_cast %192 : vector<8xf32> to vector<8x1xf32>
    %194 = vector.broadcast %193 : vector<8x1xf32> to vector<8x128xf32>
    %195 = arith.subf %191, %194 : vector<8x128xf32>
    %196 = math.exp %195 : vector<8x128xf32>
    %cst_93 = arith.constant dense<0.000000e+00> : vector<8xf32>
    %197 = vector.multi_reduction <add>, %196, %cst_93 [1] : vector<8x128xf32> to vector<8xf32>
    %198 = vector.shape_cast %197 : vector<8xf32> to vector<8x1xf32>
    %199 = tpu.reciprocal %198 {approx = true} : vector<8x1xf32> -> vector<8x1xf32>
    %200 = arith.mulf %198, %199 : vector<8x1xf32>
    %cst_94 = arith.constant 2.000000e+00 : f32
    %201 = vector.broadcast %cst_94 : f32 to vector<8x1xf32>
    %202 = arith.subf %201, %200 : vector<8x1xf32>
    %203 = arith.mulf %199, %202 : vector<8x1xf32>
    %204 = vector.broadcast %203 : vector<8x1xf32> to vector<8x128xf32>
    %205 = arith.mulf %196, %204 : vector<8x128xf32>
    %c0_95 = arith.constant 0 : index
    %c16_96 = arith.constant 16 : index
    %c0_97 = arith.constant 0 : index
    %206 = vector.load %arg11[%c0_95, %c16_96, %c0_97] : memref<1x64x128xf32, #tpu.memory_space<vmem>>, vector<1x8x128xf32>
    %207 = vector.shape_cast %206 : vector<1x8x128xf32> to vector<8x128xf32>
    %208 = vector.shape_cast %205 : vector<8x128xf32> to vector<1x8x128xf32>
    tpu.vector_store %arg11[%c0_95, %c16_96, %c0_97], %208 {strides = array<i32>} : memref<1x64x128xf32, #tpu.memory_space<vmem>>, vector<1x8x128xf32>,
    %209 = arith.truncf %184 : vector<8x128xf32> to vector<8x128xbf16>
    %c24 = arith.constant 24 : index
    %c0_98 = arith.constant 0 : index
    %210 = vector.load %arg14[%c24, %c0_98] : memref<64x512xf32, #tpu.memory_space<vmem>>, vector<8x512xf32>
    %211 = vector.extract_strided_slice %210 {offsets = [0, 0], sizes = [8, 128], strides = [1, 1]} : vector<8x512xf32> to vector<8x128xf32>
    %c0_99 = arith.constant 0 : index
    %c0_100 = arith.constant 0 : index
    %212 = vector.load %arg5[%c0_99, %c0_100] : memref<128x512xbf16, #tpu.memory_space<vmem>>, vector<128x128xbf16>
    %cst_101 = arith.constant dense<0.000000e+00> : vector<8x128xf32>
    %213 = tpu.matmul %209, %212, %cst_101 {dimension_numbers = #tpu.dot_dimension_numbers<[1], [0], [0], [1], [0, 0, 1, 1], [], []>} : vector<8x128xbf16>, vector<128x128xbf16>, vector<8x128xf32> -> vector<8x128xf32>
    %214 = arith.addf %211, %213 : vector<8x128xf32>
    %215 = arith.negf %214 : vector<8x128xf32>
    %216 = math.exp %215 : vector<8x128xf32>
    %cst_102 = arith.constant 1.000000e+00 : f32
    %217 = vector.broadcast %cst_102 : f32 to vector<8x128xf32>
    %218 = arith.addf %217, %216 : vector<8x128xf32>
    %219 = arith.divf %217, %218 : vector<8x128xf32>
    %220 = vector.extract_strided_slice %210 {offsets = [0, 128], sizes = [8, 128], strides = [1, 1]} : vector<8x512xf32> to vector<8x128xf32>
    %c0_103 = arith.constant 0 : index
    %c128_104 = arith.constant 128 : index
    %221 = vector.load %arg5[%c0_103, %c128_104] : memref<128x512xbf16, #tpu.memory_space<vmem>>, vector<128x128xbf16>
    %cst_105 = arith.constant dense<0.000000e+00> : vector<8x128xf32>
    %222 = tpu.matmul %209, %221, %cst_105 {dimension_numbers = #tpu.dot_dimension_numbers<[1], [0], [0], [1], [0, 0, 1, 1], [], []>} : vector<8x128xbf16>, vector<128x128xbf16>, vector<8x128xf32> -> vector<8x128xf32>
    %223 = arith.addf %220, %222 : vector<8x128xf32>
    %224 = arith.negf %223 : vector<8x128xf32>
    %225 = math.exp %224 : vector<8x128xf32>
    %cst_106 = arith.constant 1.000000e+00 : f32
    %226 = vector.broadcast %cst_106 : f32 to vector<8x128xf32>
    %227 = arith.addf %226, %225 : vector<8x128xf32>
    %228 = arith.divf %226, %227 : vector<8x128xf32>
    %229 = vector.extract_strided_slice %210 {offsets = [0, 256], sizes = [8, 128], strides = [1, 1]} : vector<8x512xf32> to vector<8x128xf32>
    %c0_107 = arith.constant 0 : index
    %c256_108 = arith.constant 256 : index
    %230 = vector.load %arg5[%c0_107, %c256_108] : memref<128x512xbf16, #tpu.memory_space<vmem>>, vector<128x128xbf16>
    %cst_109 = arith.constant dense<0.000000e+00> : vector<8x128xf32>
    %231 = tpu.matmul %209, %230, %cst_109 {dimension_numbers = #tpu.dot_dimension_numbers<[1], [0], [0], [1], [0, 0, 1, 1], [], []>} : vector<8x128xbf16>, vector<128x128xbf16>, vector<8x128xf32> -> vector<8x128xf32>
    %232 = arith.addf %229, %231 : vector<8x128xf32>
    %233 = math.tanh %232 : vector<8x128xf32>
    %234 = vector.extract_strided_slice %210 {offsets = [0, 384], sizes = [8, 128], strides = [1, 1]} : vector<8x512xf32> to vector<8x128xf32>
    %c0_110 = arith.constant 0 : index
    %c384_111 = arith.constant 384 : index
    %235 = vector.load %arg5[%c0_110, %c384_111] : memref<128x512xbf16, #tpu.memory_space<vmem>>, vector<128x128xbf16>
    %cst_112 = arith.constant dense<0.000000e+00> : vector<8x128xf32>
    %236 = tpu.matmul %209, %235, %cst_112 {dimension_numbers = #tpu.dot_dimension_numbers<[1], [0], [0], [1], [0, 0, 1, 1], [], []>} : vector<8x128xbf16>, vector<128x128xbf16>, vector<8x128xf32> -> vector<8x128xf32>
    %237 = arith.addf %234, %236 : vector<8x128xf32>
    %238 = arith.negf %237 : vector<8x128xf32>
    %239 = math.exp %238 : vector<8x128xf32>
    %cst_113 = arith.constant 1.000000e+00 : f32
    %240 = vector.broadcast %cst_113 : f32 to vector<8x128xf32>
    %241 = arith.addf %240, %239 : vector<8x128xf32>
    %242 = arith.divf %240, %241 : vector<8x128xf32>
    %243 = arith.mulf %228, %182 : vector<8x128xf32>
    %244 = arith.mulf %219, %233 : vector<8x128xf32>
    %245 = arith.addf %243, %244 : vector<8x128xf32>
    %246 = math.tanh %245 : vector<8x128xf32>
    %247 = arith.mulf %242, %246 : vector<8x128xf32>
    %248 = math.tanh %247 : vector<8x128xf32>
    %249 = arith.truncf %248 : vector<8x128xf32> to vector<8x128xbf16>
    %c0_114 = arith.constant 0 : index
    %c0_115 = arith.constant 0 : index
    %250 = vector.load %arg9[%c0_114, %c0_115] : memref<128x128xbf16, #tpu.memory_space<vmem>>, vector<128x128xbf16>
    %cst_116 = arith.constant dense<0.000000e+00> : vector<8x128xf32>
    %251 = tpu.matmul %249, %250, %cst_116 {dimension_numbers = #tpu.dot_dimension_numbers<[1], [0], [0], [1], [0, 0, 1, 1], [], []>} : vector<8x128xbf16>, vector<128x128xbf16>, vector<8x128xf32> -> vector<8x128xf32>
    %c0_117 = arith.constant 0 : index
    %c0_118 = arith.constant 0 : index
    %252 = vector.load %arg10[%c0_117, %c0_118] : memref<1x128xf32, #tpu.memory_space<vmem>>, vector<1x128xf32>
    %253 = vector.broadcast %252 : vector<1x128xf32> to vector<8x128xf32>
    %254 = arith.addf %251, %253 : vector<8x128xf32>
    %cst_119 = arith.constant dense<0xFF800000> : vector<8xf32>
    %255 = vector.multi_reduction <maximumf>, %254, %cst_119 [1] : vector<8x128xf32> to vector<8xf32>
    %256 = vector.shape_cast %255 : vector<8xf32> to vector<8x1xf32>
    %257 = vector.broadcast %256 : vector<8x1xf32> to vector<8x128xf32>
    %258 = arith.subf %254, %257 : vector<8x128xf32>
    %259 = math.exp %258 : vector<8x128xf32>
    %cst_120 = arith.constant dense<0.000000e+00> : vector<8xf32>
    %260 = vector.multi_reduction <add>, %259, %cst_120 [1] : vector<8x128xf32> to vector<8xf32>
    %261 = vector.shape_cast %260 : vector<8xf32> to vector<8x1xf32>
    %262 = tpu.reciprocal %261 {approx = true} : vector<8x1xf32> -> vector<8x1xf32>
    %263 = arith.mulf %261, %262 : vector<8x1xf32>
    %cst_121 = arith.constant 2.000000e+00 : f32
    %264 = vector.broadcast %cst_121 : f32 to vector<8x1xf32>
    %265 = arith.subf %264, %263 : vector<8x1xf32>
    %266 = arith.mulf %262, %265 : vector<8x1xf32>
    %267 = vector.broadcast %266 : vector<8x1xf32> to vector<8x128xf32>
    %268 = arith.mulf %259, %267 : vector<8x128xf32>
    %c0_122 = arith.constant 0 : index
    %c24_123 = arith.constant 24 : index
    %c0_124 = arith.constant 0 : index
    %269 = vector.load %arg11[%c0_122, %c24_123, %c0_124] : memref<1x64x128xf32, #tpu.memory_space<vmem>>, vector<1x8x128xf32>
    %270 = vector.shape_cast %269 : vector<1x8x128xf32> to vector<8x128xf32>
    %271 = vector.shape_cast %268 : vector<8x128xf32> to vector<1x8x128xf32>
    tpu.vector_store %arg11[%c0_122, %c24_123, %c0_124], %271 {strides = array<i32>} : memref<1x64x128xf32, #tpu.memory_space<vmem>>, vector<1x8x128xf32>,
    %272 = arith.truncf %247 : vector<8x128xf32> to vector<8x128xbf16>
    %c32 = arith.constant 32 : index
    %c0_125 = arith.constant 0 : index
    %273 = vector.load %arg14[%c32, %c0_125] : memref<64x512xf32, #tpu.memory_space<vmem>>, vector<8x512xf32>
    %274 = vector.extract_strided_slice %273 {offsets = [0, 0], sizes = [8, 128], strides = [1, 1]} : vector<8x512xf32> to vector<8x128xf32>
    %c0_126 = arith.constant 0 : index
    %c0_127 = arith.constant 0 : index
    %275 = vector.load %arg5[%c0_126, %c0_127] : memref<128x512xbf16, #tpu.memory_space<vmem>>, vector<128x128xbf16>
    %cst_128 = arith.constant dense<0.000000e+00> : vector<8x128xf32>
    %276 = tpu.matmul %272, %275, %cst_128 {dimension_numbers = #tpu.dot_dimension_numbers<[1], [0], [0], [1], [0, 0, 1, 1], [], []>} : vector<8x128xbf16>, vector<128x128xbf16>, vector<8x128xf32> -> vector<8x128xf32>
    %277 = arith.addf %274, %276 : vector<8x128xf32>
    %278 = arith.negf %277 : vector<8x128xf32>
    %279 = math.exp %278 : vector<8x128xf32>
    %cst_129 = arith.constant 1.000000e+00 : f32
    %280 = vector.broadcast %cst_129 : f32 to vector<8x128xf32>
    %281 = arith.addf %280, %279 : vector<8x128xf32>
    %282 = arith.divf %280, %281 : vector<8x128xf32>
    %283 = vector.extract_strided_slice %273 {offsets = [0, 128], sizes = [8, 128], strides = [1, 1]} : vector<8x512xf32> to vector<8x128xf32>
    %c0_130 = arith.constant 0 : index
    %c128_131 = arith.constant 128 : index
    %284 = vector.load %arg5[%c0_130, %c128_131] : memref<128x512xbf16, #tpu.memory_space<vmem>>, vector<128x128xbf16>
    %cst_132 = arith.constant dense<0.000000e+00> : vector<8x128xf32>
    %285 = tpu.matmul %272, %284, %cst_132 {dimension_numbers = #tpu.dot_dimension_numbers<[1], [0], [0], [1], [0, 0, 1, 1], [], []>} : vector<8x128xbf16>, vector<128x128xbf16>, vector<8x128xf32> -> vector<8x128xf32>
    %286 = arith.addf %283, %285 : vector<8x128xf32>
    %287 = arith.negf %286 : vector<8x128xf32>
    %288 = math.exp %287 : vector<8x128xf32>
    %cst_133 = arith.constant 1.000000e+00 : f32
    %289 = vector.broadcast %cst_133 : f32 to vector<8x128xf32>
    %290 = arith.addf %289, %288 : vector<8x128xf32>
    %291 = arith.divf %289, %290 : vector<8x128xf32>
    %292 = vector.extract_strided_slice %273 {offsets = [0, 256], sizes = [8, 128], strides = [1, 1]} : vector<8x512xf32> to vector<8x128xf32>
    %c0_134 = arith.constant 0 : index
    %c256_135 = arith.constant 256 : index
    %293 = vector.load %arg5[%c0_134, %c256_135] : memref<128x512xbf16, #tpu.memory_space<vmem>>, vector<128x128xbf16>
    %cst_136 = arith.constant dense<0.000000e+00> : vector<8x128xf32>
    %294 = tpu.matmul %272, %293, %cst_136 {dimension_numbers = #tpu.dot_dimension_numbers<[1], [0], [0], [1], [0, 0, 1, 1], [], []>} : vector<8x128xbf16>, vector<128x128xbf16>, vector<8x128xf32> -> vector<8x128xf32>
    %295 = arith.addf %292, %294 : vector<8x128xf32>
    %296 = math.tanh %295 : vector<8x128xf32>
    %297 = vector.extract_strided_slice %273 {offsets = [0, 384], sizes = [8, 128], strides = [1, 1]} : vector<8x512xf32> to vector<8x128xf32>
    %c0_137 = arith.constant 0 : index
    %c384_138 = arith.constant 384 : index
    %298 = vector.load %arg5[%c0_137, %c384_138] : memref<128x512xbf16, #tpu.memory_space<vmem>>, vector<128x128xbf16>
    %cst_139 = arith.constant dense<0.000000e+00> : vector<8x128xf32>
    %299 = tpu.matmul %272, %298, %cst_139 {dimension_numbers = #tpu.dot_dimension_numbers<[1], [0], [0], [1], [0, 0, 1, 1], [], []>} : vector<8x128xbf16>, vector<128x128xbf16>, vector<8x128xf32> -> vector<8x128xf32>
    %300 = arith.addf %297, %299 : vector<8x128xf32>
    %301 = arith.negf %300 : vector<8x128xf32>
    %302 = math.exp %301 : vector<8x128xf32>
    %cst_140 = arith.constant 1.000000e+00 : f32
    %303 = vector.broadcast %cst_140 : f32 to vector<8x128xf32>
    %304 = arith.addf %303, %302 : vector<8x128xf32>
    %305 = arith.divf %303, %304 : vector<8x128xf32>
    %306 = arith.mulf %291, %245 : vector<8x128xf32>
    %307 = arith.mulf %282, %296 : vector<8x128xf32>
    %308 = arith.addf %306, %307 : vector<8x128xf32>
    %309 = math.tanh %308 : vector<8x128xf32>
    %310 = arith.mulf %305, %309 : vector<8x128xf32>
    %311 = math.tanh %310 : vector<8x128xf32>
    %312 = arith.truncf %311 : vector<8x128xf32> to vector<8x128xbf16>
    %c0_141 = arith.constant 0 : index
    %c0_142 = arith.constant 0 : index
    %313 = vector.load %arg9[%c0_141, %c0_142] : memref<128x128xbf16, #tpu.memory_space<vmem>>, vector<128x128xbf16>
    %cst_143 = arith.constant dense<0.000000e+00> : vector<8x128xf32>
    %314 = tpu.matmul %312, %313, %cst_143 {dimension_numbers = #tpu.dot_dimension_numbers<[1], [0], [0], [1], [0, 0, 1, 1], [], []>} : vector<8x128xbf16>, vector<128x128xbf16>, vector<8x128xf32> -> vector<8x128xf32>
    %c0_144 = arith.constant 0 : index
    %c0_145 = arith.constant 0 : index
    %315 = vector.load %arg10[%c0_144, %c0_145] : memref<1x128xf32, #tpu.memory_space<vmem>>, vector<1x128xf32>
    %316 = vector.broadcast %315 : vector<1x128xf32> to vector<8x128xf32>
    %317 = arith.addf %314, %316 : vector<8x128xf32>
    %cst_146 = arith.constant dense<0xFF800000> : vector<8xf32>
    %318 = vector.multi_reduction <maximumf>, %317, %cst_146 [1] : vector<8x128xf32> to vector<8xf32>
    %319 = vector.shape_cast %318 : vector<8xf32> to vector<8x1xf32>
    %320 = vector.broadcast %319 : vector<8x1xf32> to vector<8x128xf32>
    %321 = arith.subf %317, %320 : vector<8x128xf32>
    %322 = math.exp %321 : vector<8x128xf32>
    %cst_147 = arith.constant dense<0.000000e+00> : vector<8xf32>
    %323 = vector.multi_reduction <add>, %322, %cst_147 [1] : vector<8x128xf32> to vector<8xf32>
    %324 = vector.shape_cast %323 : vector<8xf32> to vector<8x1xf32>
    %325 = tpu.reciprocal %324 {approx = true} : vector<8x1xf32> -> vector<8x1xf32>
    %326 = arith.mulf %324, %325 : vector<8x1xf32>
    %cst_148 = arith.constant 2.000000e+00 : f32
    %327 = vector.broadcast %cst_148 : f32 to vector<8x1xf32>
    %328 = arith.subf %327, %326 : vector<8x1xf32>
    %329 = arith.mulf %325, %328 : vector<8x1xf32>
    %330 = vector.broadcast %329 : vector<8x1xf32> to vector<8x128xf32>
    %331 = arith.mulf %322, %330 : vector<8x128xf32>
    %c0_149 = arith.constant 0 : index
    %c32_150 = arith.constant 32 : index
    %c0_151 = arith.constant 0 : index
    %332 = vector.load %arg11[%c0_149, %c32_150, %c0_151] : memref<1x64x128xf32, #tpu.memory_space<vmem>>, vector<1x8x128xf32>
    %333 = vector.shape_cast %332 : vector<1x8x128xf32> to vector<8x128xf32>
    %334 = vector.shape_cast %331 : vector<8x128xf32> to vector<1x8x128xf32>
    tpu.vector_store %arg11[%c0_149, %c32_150, %c0_151], %334 {strides = array<i32>} : memref<1x64x128xf32, #tpu.memory_space<vmem>>, vector<1x8x128xf32>,
    %335 = arith.truncf %310 : vector<8x128xf32> to vector<8x128xbf16>
    %c40 = arith.constant 40 : index
    %c0_152 = arith.constant 0 : index
    %336 = vector.load %arg14[%c40, %c0_152] : memref<64x512xf32, #tpu.memory_space<vmem>>, vector<8x512xf32>
    %337 = vector.extract_strided_slice %336 {offsets = [0, 0], sizes = [8, 128], strides = [1, 1]} : vector<8x512xf32> to vector<8x128xf32>
    %c0_153 = arith.constant 0 : index
    %c0_154 = arith.constant 0 : index
    %338 = vector.load %arg5[%c0_153, %c0_154] : memref<128x512xbf16, #tpu.memory_space<vmem>>, vector<128x128xbf16>
    %cst_155 = arith.constant dense<0.000000e+00> : vector<8x128xf32>
    %339 = tpu.matmul %335, %338, %cst_155 {dimension_numbers = #tpu.dot_dimension_numbers<[1], [0], [0], [1], [0, 0, 1, 1], [], []>} : vector<8x128xbf16>, vector<128x128xbf16>, vector<8x128xf32> -> vector<8x128xf32>
    %340 = arith.addf %337, %339 : vector<8x128xf32>
    %341 = arith.negf %340 : vector<8x128xf32>
    %342 = math.exp %341 : vector<8x128xf32>
    %cst_156 = arith.constant 1.000000e+00 : f32
    %343 = vector.broadcast %cst_156 : f32 to vector<8x128xf32>
    %344 = arith.addf %343, %342 : vector<8x128xf32>
    %345 = arith.divf %343, %344 : vector<8x128xf32>
    %346 = vector.extract_strided_slice %336 {offsets = [0, 128], sizes = [8, 128], strides = [1, 1]} : vector<8x512xf32> to vector<8x128xf32>
    %c0_157 = arith.constant 0 : index
    %c128_158 = arith.constant 128 : index
    %347 = vector.load %arg5[%c0_157, %c128_158] : memref<128x512xbf16, #tpu.memory_space<vmem>>, vector<128x128xbf16>
    %cst_159 = arith.constant dense<0.000000e+00> : vector<8x128xf32>
    %348 = tpu.matmul %335, %347, %cst_159 {dimension_numbers = #tpu.dot_dimension_numbers<[1], [0], [0], [1], [0, 0, 1, 1], [], []>} : vector<8x128xbf16>, vector<128x128xbf16>, vector<8x128xf32> -> vector<8x128xf32>
    %349 = arith.addf %346, %348 : vector<8x128xf32>
    %350 = arith.negf %349 : vector<8x128xf32>
    %351 = math.exp %350 : vector<8x128xf32>
    %cst_160 = arith.constant 1.000000e+00 : f32
    %352 = vector.broadcast %cst_160 : f32 to vector<8x128xf32>
    %353 = arith.addf %352, %351 : vector<8x128xf32>
    %354 = arith.divf %352, %353 : vector<8x128xf32>
    %355 = vector.extract_strided_slice %336 {offsets = [0, 256], sizes = [8, 128], strides = [1, 1]} : vector<8x512xf32> to vector<8x128xf32>
    %c0_161 = arith.constant 0 : index
    %c256_162 = arith.constant 256 : index
    %356 = vector.load %arg5[%c0_161, %c256_162] : memref<128x512xbf16, #tpu.memory_space<vmem>>, vector<128x128xbf16>
    %cst_163 = arith.constant dense<0.000000e+00> : vector<8x128xf32>
    %357 = tpu.matmul %335, %356, %cst_163 {dimension_numbers = #tpu.dot_dimension_numbers<[1], [0], [0], [1], [0, 0, 1, 1], [], []>} : vector<8x128xbf16>, vector<128x128xbf16>, vector<8x128xf32> -> vector<8x128xf32>
    %358 = arith.addf %355, %357 : vector<8x128xf32>
    %359 = math.tanh %358 : vector<8x128xf32>
    %360 = vector.extract_strided_slice %336 {offsets = [0, 384], sizes = [8, 128], strides = [1, 1]} : vector<8x512xf32> to vector<8x128xf32>
    %c0_164 = arith.constant 0 : index
    %c384_165 = arith.constant 384 : index
    %361 = vector.load %arg5[%c0_164, %c384_165] : memref<128x512xbf16, #tpu.memory_space<vmem>>, vector<128x128xbf16>
    %cst_166 = arith.constant dense<0.000000e+00> : vector<8x128xf32>
    %362 = tpu.matmul %335, %361, %cst_166 {dimension_numbers = #tpu.dot_dimension_numbers<[1], [0], [0], [1], [0, 0, 1, 1], [], []>} : vector<8x128xbf16>, vector<128x128xbf16>, vector<8x128xf32> -> vector<8x128xf32>
    %363 = arith.addf %360, %362 : vector<8x128xf32>
    %364 = arith.negf %363 : vector<8x128xf32>
    %365 = math.exp %364 : vector<8x128xf32>
    %cst_167 = arith.constant 1.000000e+00 : f32
    %366 = vector.broadcast %cst_167 : f32 to vector<8x128xf32>
    %367 = arith.addf %366, %365 : vector<8x128xf32>
    %368 = arith.divf %366, %367 : vector<8x128xf32>
    %369 = arith.mulf %354, %308 : vector<8x128xf32>
    %370 = arith.mulf %345, %359 : vector<8x128xf32>
    %371 = arith.addf %369, %370 : vector<8x128xf32>
    %372 = math.tanh %371 : vector<8x128xf32>
    %373 = arith.mulf %368, %372 : vector<8x128xf32>
    %374 = math.tanh %373 : vector<8x128xf32>
    %375 = arith.truncf %374 : vector<8x128xf32> to vector<8x128xbf16>
    %c0_168 = arith.constant 0 : index
    %c0_169 = arith.constant 0 : index
    %376 = vector.load %arg9[%c0_168, %c0_169] : memref<128x128xbf16, #tpu.memory_space<vmem>>, vector<128x128xbf16>
    %cst_170 = arith.constant dense<0.000000e+00> : vector<8x128xf32>
    %377 = tpu.matmul %375, %376, %cst_170 {dimension_numbers = #tpu.dot_dimension_numbers<[1], [0], [0], [1], [0, 0, 1, 1], [], []>} : vector<8x128xbf16>, vector<128x128xbf16>, vector<8x128xf32> -> vector<8x128xf32>
    %c0_171 = arith.constant 0 : index
    %c0_172 = arith.constant 0 : index
    %378 = vector.load %arg10[%c0_171, %c0_172] : memref<1x128xf32, #tpu.memory_space<vmem>>, vector<1x128xf32>
    %379 = vector.broadcast %378 : vector<1x128xf32> to vector<8x128xf32>
    %380 = arith.addf %377, %379 : vector<8x128xf32>
    %cst_173 = arith.constant dense<0xFF800000> : vector<8xf32>
    %381 = vector.multi_reduction <maximumf>, %380, %cst_173 [1] : vector<8x128xf32> to vector<8xf32>
    %382 = vector.shape_cast %381 : vector<8xf32> to vector<8x1xf32>
    %383 = vector.broadcast %382 : vector<8x1xf32> to vector<8x128xf32>
    %384 = arith.subf %380, %383 : vector<8x128xf32>
    %385 = math.exp %384 : vector<8x128xf32>
    %cst_174 = arith.constant dense<0.000000e+00> : vector<8xf32>
    %386 = vector.multi_reduction <add>, %385, %cst_174 [1] : vector<8x128xf32> to vector<8xf32>
    %387 = vector.shape_cast %386 : vector<8xf32> to vector<8x1xf32>
    %388 = tpu.reciprocal %387 {approx = true} : vector<8x1xf32> -> vector<8x1xf32>
    %389 = arith.mulf %387, %388 : vector<8x1xf32>
    %cst_175 = arith.constant 2.000000e+00 : f32
    %390 = vector.broadcast %cst_175 : f32 to vector<8x1xf32>
    %391 = arith.subf %390, %389 : vector<8x1xf32>
    %392 = arith.mulf %388, %391 : vector<8x1xf32>
    %393 = vector.broadcast %392 : vector<8x1xf32> to vector<8x128xf32>
    %394 = arith.mulf %385, %393 : vector<8x128xf32>
    %c0_176 = arith.constant 0 : index
    %c40_177 = arith.constant 40 : index
    %c0_178 = arith.constant 0 : index
    %395 = vector.load %arg11[%c0_176, %c40_177, %c0_178] : memref<1x64x128xf32, #tpu.memory_space<vmem>>, vector<1x8x128xf32>
    %396 = vector.shape_cast %395 : vector<1x8x128xf32> to vector<8x128xf32>
    %397 = vector.shape_cast %394 : vector<8x128xf32> to vector<1x8x128xf32>
    tpu.vector_store %arg11[%c0_176, %c40_177, %c0_178], %397 {strides = array<i32>} : memref<1x64x128xf32, #tpu.memory_space<vmem>>, vector<1x8x128xf32>,
    %398 = arith.truncf %373 : vector<8x128xf32> to vector<8x128xbf16>
    %c48 = arith.constant 48 : index
    %c0_179 = arith.constant 0 : index
    %399 = vector.load %arg14[%c48, %c0_179] : memref<64x512xf32, #tpu.memory_space<vmem>>, vector<8x512xf32>
    %400 = vector.extract_strided_slice %399 {offsets = [0, 0], sizes = [8, 128], strides = [1, 1]} : vector<8x512xf32> to vector<8x128xf32>
    %c0_180 = arith.constant 0 : index
    %c0_181 = arith.constant 0 : index
    %401 = vector.load %arg5[%c0_180, %c0_181] : memref<128x512xbf16, #tpu.memory_space<vmem>>, vector<128x128xbf16>
    %cst_182 = arith.constant dense<0.000000e+00> : vector<8x128xf32>
    %402 = tpu.matmul %398, %401, %cst_182 {dimension_numbers = #tpu.dot_dimension_numbers<[1], [0], [0], [1], [0, 0, 1, 1], [], []>} : vector<8x128xbf16>, vector<128x128xbf16>, vector<8x128xf32> -> vector<8x128xf32>
    %403 = arith.addf %400, %402 : vector<8x128xf32>
    %404 = arith.negf %403 : vector<8x128xf32>
    %405 = math.exp %404 : vector<8x128xf32>
    %cst_183 = arith.constant 1.000000e+00 : f32
    %406 = vector.broadcast %cst_183 : f32 to vector<8x128xf32>
    %407 = arith.addf %406, %405 : vector<8x128xf32>
    %408 = arith.divf %406, %407 : vector<8x128xf32>
    %409 = vector.extract_strided_slice %399 {offsets = [0, 128], sizes = [8, 128], strides = [1, 1]} : vector<8x512xf32> to vector<8x128xf32>
    %c0_184 = arith.constant 0 : index
    %c128_185 = arith.constant 128 : index
    %410 = vector.load %arg5[%c0_184, %c128_185] : memref<128x512xbf16, #tpu.memory_space<vmem>>, vector<128x128xbf16>
    %cst_186 = arith.constant dense<0.000000e+00> : vector<8x128xf32>
    %411 = tpu.matmul %398, %410, %cst_186 {dimension_numbers = #tpu.dot_dimension_numbers<[1], [0], [0], [1], [0, 0, 1, 1], [], []>} : vector<8x128xbf16>, vector<128x128xbf16>, vector<8x128xf32> -> vector<8x128xf32>
    %412 = arith.addf %409, %411 : vector<8x128xf32>
    %413 = arith.negf %412 : vector<8x128xf32>
    %414 = math.exp %413 : vector<8x128xf32>
    %cst_187 = arith.constant 1.000000e+00 : f32
    %415 = vector.broadcast %cst_187 : f32 to vector<8x128xf32>
    %416 = arith.addf %415, %414 : vector<8x128xf32>
    %417 = arith.divf %415, %416 : vector<8x128xf32>
    %418 = vector.extract_strided_slice %399 {offsets = [0, 256], sizes = [8, 128], strides = [1, 1]} : vector<8x512xf32> to vector<8x128xf32>
    %c0_188 = arith.constant 0 : index
    %c256_189 = arith.constant 256 : index
    %419 = vector.load %arg5[%c0_188, %c256_189] : memref<128x512xbf16, #tpu.memory_space<vmem>>, vector<128x128xbf16>
    %cst_190 = arith.constant dense<0.000000e+00> : vector<8x128xf32>
    %420 = tpu.matmul %398, %419, %cst_190 {dimension_numbers = #tpu.dot_dimension_numbers<[1], [0], [0], [1], [0, 0, 1, 1], [], []>} : vector<8x128xbf16>, vector<128x128xbf16>, vector<8x128xf32> -> vector<8x128xf32>
    %421 = arith.addf %418, %420 : vector<8x128xf32>
    %422 = math.tanh %421 : vector<8x128xf32>
    %423 = vector.extract_strided_slice %399 {offsets = [0, 384], sizes = [8, 128], strides = [1, 1]} : vector<8x512xf32> to vector<8x128xf32>
    %c0_191 = arith.constant 0 : index
    %c384_192 = arith.constant 384 : index
    %424 = vector.load %arg5[%c0_191, %c384_192] : memref<128x512xbf16, #tpu.memory_space<vmem>>, vector<128x128xbf16>
    %cst_193 = arith.constant dense<0.000000e+00> : vector<8x128xf32>
    %425 = tpu.matmul %398, %424, %cst_193 {dimension_numbers = #tpu.dot_dimension_numbers<[1], [0], [0], [1], [0, 0, 1, 1], [], []>} : vector<8x128xbf16>, vector<128x128xbf16>, vector<8x128xf32> -> vector<8x128xf32>
    %426 = arith.addf %423, %425 : vector<8x128xf32>
    %427 = arith.negf %426 : vector<8x128xf32>
    %428 = math.exp %427 : vector<8x128xf32>
    %cst_194 = arith.constant 1.000000e+00 : f32
    %429 = vector.broadcast %cst_194 : f32 to vector<8x128xf32>
    %430 = arith.addf %429, %428 : vector<8x128xf32>
    %431 = arith.divf %429, %430 : vector<8x128xf32>
    %432 = arith.mulf %417, %371 : vector<8x128xf32>
    %433 = arith.mulf %408, %422 : vector<8x128xf32>
    %434 = arith.addf %432, %433 : vector<8x128xf32>
    %435 = math.tanh %434 : vector<8x128xf32>
    %436 = arith.mulf %431, %435 : vector<8x128xf32>
    %437 = math.tanh %436 : vector<8x128xf32>
    %438 = arith.truncf %437 : vector<8x128xf32> to vector<8x128xbf16>
    %c0_195 = arith.constant 0 : index
    %c0_196 = arith.constant 0 : index
    %439 = vector.load %arg9[%c0_195, %c0_196] : memref<128x128xbf16, #tpu.memory_space<vmem>>, vector<128x128xbf16>
    %cst_197 = arith.constant dense<0.000000e+00> : vector<8x128xf32>
    %440 = tpu.matmul %438, %439, %cst_197 {dimension_numbers = #tpu.dot_dimension_numbers<[1], [0], [0], [1], [0, 0, 1, 1], [], []>} : vector<8x128xbf16>, vector<128x128xbf16>, vector<8x128xf32> -> vector<8x128xf32>
    %c0_198 = arith.constant 0 : index
    %c0_199 = arith.constant 0 : index
    %441 = vector.load %arg10[%c0_198, %c0_199] : memref<1x128xf32, #tpu.memory_space<vmem>>, vector<1x128xf32>
    %442 = vector.broadcast %441 : vector<1x128xf32> to vector<8x128xf32>
    %443 = arith.addf %440, %442 : vector<8x128xf32>
    %cst_200 = arith.constant dense<0xFF800000> : vector<8xf32>
    %444 = vector.multi_reduction <maximumf>, %443, %cst_200 [1] : vector<8x128xf32> to vector<8xf32>
    %445 = vector.shape_cast %444 : vector<8xf32> to vector<8x1xf32>
    %446 = vector.broadcast %445 : vector<8x1xf32> to vector<8x128xf32>
    %447 = arith.subf %443, %446 : vector<8x128xf32>
    %448 = math.exp %447 : vector<8x128xf32>
    %cst_201 = arith.constant dense<0.000000e+00> : vector<8xf32>
    %449 = vector.multi_reduction <add>, %448, %cst_201 [1] : vector<8x128xf32> to vector<8xf32>
    %450 = vector.shape_cast %449 : vector<8xf32> to vector<8x1xf32>
    %451 = tpu.reciprocal %450 {approx = true} : vector<8x1xf32> -> vector<8x1xf32>
    %452 = arith.mulf %450, %451 : vector<8x1xf32>
    %cst_202 = arith.constant 2.000000e+00 : f32
    %453 = vector.broadcast %cst_202 : f32 to vector<8x1xf32>
    %454 = arith.subf %453, %452 : vector<8x1xf32>
    %455 = arith.mulf %451, %454 : vector<8x1xf32>
    %456 = vector.broadcast %455 : vector<8x1xf32> to vector<8x128xf32>
    %457 = arith.mulf %448, %456 : vector<8x128xf32>
    %c0_203 = arith.constant 0 : index
    %c48_204 = arith.constant 48 : index
    %c0_205 = arith.constant 0 : index
    %458 = vector.load %arg11[%c0_203, %c48_204, %c0_205] : memref<1x64x128xf32, #tpu.memory_space<vmem>>, vector<1x8x128xf32>
    %459 = vector.shape_cast %458 : vector<1x8x128xf32> to vector<8x128xf32>
    %460 = vector.shape_cast %457 : vector<8x128xf32> to vector<1x8x128xf32>
    tpu.vector_store %arg11[%c0_203, %c48_204, %c0_205], %460 {strides = array<i32>} : memref<1x64x128xf32, #tpu.memory_space<vmem>>, vector<1x8x128xf32>,
    %461 = arith.truncf %436 : vector<8x128xf32> to vector<8x128xbf16>
    %c56 = arith.constant 56 : index
    %c0_206 = arith.constant 0 : index
    %462 = vector.load %arg14[%c56, %c0_206] : memref<64x512xf32, #tpu.memory_space<vmem>>, vector<8x512xf32>
    %463 = vector.extract_strided_slice %462 {offsets = [0, 0], sizes = [8, 128], strides = [1, 1]} : vector<8x512xf32> to vector<8x128xf32>
    %c0_207 = arith.constant 0 : index
    %c0_208 = arith.constant 0 : index
    %464 = vector.load %arg5[%c0_207, %c0_208] : memref<128x512xbf16, #tpu.memory_space<vmem>>, vector<128x128xbf16>
    %cst_209 = arith.constant dense<0.000000e+00> : vector<8x128xf32>
    %465 = tpu.matmul %461, %464, %cst_209 {dimension_numbers = #tpu.dot_dimension_numbers<[1], [0], [0], [1], [0, 0, 1, 1], [], []>} : vector<8x128xbf16>, vector<128x128xbf16>, vector<8x128xf32> -> vector<8x128xf32>
    %466 = arith.addf %463, %465 : vector<8x128xf32>
    %467 = arith.negf %466 : vector<8x128xf32>
    %468 = math.exp %467 : vector<8x128xf32>
    %cst_210 = arith.constant 1.000000e+00 : f32
    %469 = vector.broadcast %cst_210 : f32 to vector<8x128xf32>
    %470 = arith.addf %469, %468 : vector<8x128xf32>
    %471 = arith.divf %469, %470 : vector<8x128xf32>
    %472 = vector.extract_strided_slice %462 {offsets = [0, 128], sizes = [8, 128], strides = [1, 1]} : vector<8x512xf32> to vector<8x128xf32>
    %c0_211 = arith.constant 0 : index
    %c128_212 = arith.constant 128 : index
    %473 = vector.load %arg5[%c0_211, %c128_212] : memref<128x512xbf16, #tpu.memory_space<vmem>>, vector<128x128xbf16>
    %cst_213 = arith.constant dense<0.000000e+00> : vector<8x128xf32>
    %474 = tpu.matmul %461, %473, %cst_213 {dimension_numbers = #tpu.dot_dimension_numbers<[1], [0], [0], [1], [0, 0, 1, 1], [], []>} : vector<8x128xbf16>, vector<128x128xbf16>, vector<8x128xf32> -> vector<8x128xf32>
    %475 = arith.addf %472, %474 : vector<8x128xf32>
    %476 = arith.negf %475 : vector<8x128xf32>
    %477 = math.exp %476 : vector<8x128xf32>
    %cst_214 = arith.constant 1.000000e+00 : f32
    %478 = vector.broadcast %cst_214 : f32 to vector<8x128xf32>
    %479 = arith.addf %478, %477 : vector<8x128xf32>
    %480 = arith.divf %478, %479 : vector<8x128xf32>
    %481 = vector.extract_strided_slice %462 {offsets = [0, 256], sizes = [8, 128], strides = [1, 1]} : vector<8x512xf32> to vector<8x128xf32>
    %c0_215 = arith.constant 0 : index
    %c256_216 = arith.constant 256 : index
    %482 = vector.load %arg5[%c0_215, %c256_216] : memref<128x512xbf16, #tpu.memory_space<vmem>>, vector<128x128xbf16>
    %cst_217 = arith.constant dense<0.000000e+00> : vector<8x128xf32>
    %483 = tpu.matmul %461, %482, %cst_217 {dimension_numbers = #tpu.dot_dimension_numbers<[1], [0], [0], [1], [0, 0, 1, 1], [], []>} : vector<8x128xbf16>, vector<128x128xbf16>, vector<8x128xf32> -> vector<8x128xf32>
    %484 = arith.addf %481, %483 : vector<8x128xf32>
    %485 = math.tanh %484 : vector<8x128xf32>
    %486 = vector.extract_strided_slice %462 {offsets = [0, 384], sizes = [8, 128], strides = [1, 1]} : vector<8x512xf32> to vector<8x128xf32>
    %c0_218 = arith.constant 0 : index
    %c384_219 = arith.constant 384 : index
    %487 = vector.load %arg5[%c0_218, %c384_219] : memref<128x512xbf16, #tpu.memory_space<vmem>>, vector<128x128xbf16>
    %cst_220 = arith.constant dense<0.000000e+00> : vector<8x128xf32>
    %488 = tpu.matmul %461, %487, %cst_220 {dimension_numbers = #tpu.dot_dimension_numbers<[1], [0], [0], [1], [0, 0, 1, 1], [], []>} : vector<8x128xbf16>, vector<128x128xbf16>, vector<8x128xf32> -> vector<8x128xf32>
    %489 = arith.addf %486, %488 : vector<8x128xf32>
    %490 = arith.negf %489 : vector<8x128xf32>
    %491 = math.exp %490 : vector<8x128xf32>
    %cst_221 = arith.constant 1.000000e+00 : f32
    %492 = vector.broadcast %cst_221 : f32 to vector<8x128xf32>
    %493 = arith.addf %492, %491 : vector<8x128xf32>
    %494 = arith.divf %492, %493 : vector<8x128xf32>
    %495 = arith.mulf %480, %434 : vector<8x128xf32>
    %496 = arith.mulf %471, %485 : vector<8x128xf32>
    %497 = arith.addf %495, %496 : vector<8x128xf32>
    %498 = math.tanh %497 : vector<8x128xf32>
    %499 = arith.mulf %494, %498 : vector<8x128xf32>
    %500 = math.tanh %499 : vector<8x128xf32>
    %501 = arith.truncf %500 : vector<8x128xf32> to vector<8x128xbf16>
    %c0_222 = arith.constant 0 : index
    %c0_223 = arith.constant 0 : index
    %502 = vector.load %arg9[%c0_222, %c0_223] : memref<128x128xbf16, #tpu.memory_space<vmem>>, vector<128x128xbf16>
    %cst_224 = arith.constant dense<0.000000e+00> : vector<8x128xf32>
    %503 = tpu.matmul %501, %502, %cst_224 {dimension_numbers = #tpu.dot_dimension_numbers<[1], [0], [0], [1], [0, 0, 1, 1], [], []>} : vector<8x128xbf16>, vector<128x128xbf16>, vector<8x128xf32> -> vector<8x128xf32>
    %c0_225 = arith.constant 0 : index
    %c0_226 = arith.constant 0 : index
    %504 = vector.load %arg10[%c0_225, %c0_226] : memref<1x128xf32, #tpu.memory_space<vmem>>, vector<1x128xf32>
    %505 = vector.broadcast %504 : vector<1x128xf32> to vector<8x128xf32>
    %506 = arith.addf %503, %505 : vector<8x128xf32>
    %cst_227 = arith.constant dense<0xFF800000> : vector<8xf32>
    %507 = vector.multi_reduction <maximumf>, %506, %cst_227 [1] : vector<8x128xf32> to vector<8xf32>
    %508 = vector.shape_cast %507 : vector<8xf32> to vector<8x1xf32>
    %509 = vector.broadcast %508 : vector<8x1xf32> to vector<8x128xf32>
    %510 = arith.subf %506, %509 : vector<8x128xf32>
    %511 = math.exp %510 : vector<8x128xf32>
    %cst_228 = arith.constant dense<0.000000e+00> : vector<8xf32>
    %512 = vector.multi_reduction <add>, %511, %cst_228 [1] : vector<8x128xf32> to vector<8xf32>
    %513 = vector.shape_cast %512 : vector<8xf32> to vector<8x1xf32>
    %514 = tpu.reciprocal %513 {approx = true} : vector<8x1xf32> -> vector<8x1xf32>
    %515 = arith.mulf %513, %514 : vector<8x1xf32>
    %cst_229 = arith.constant 2.000000e+00 : f32
    %516 = vector.broadcast %cst_229 : f32 to vector<8x1xf32>
    %517 = arith.subf %516, %515 : vector<8x1xf32>
    %518 = arith.mulf %514, %517 : vector<8x1xf32>
    %519 = vector.broadcast %518 : vector<8x1xf32> to vector<8x128xf32>
    %520 = arith.mulf %511, %519 : vector<8x128xf32>
    %c0_230 = arith.constant 0 : index
    %c56_231 = arith.constant 56 : index
    %c0_232 = arith.constant 0 : index
    %521 = vector.load %arg11[%c0_230, %c56_231, %c0_232] : memref<1x64x128xf32, #tpu.memory_space<vmem>>, vector<1x8x128xf32>
    %522 = vector.shape_cast %521 : vector<1x8x128xf32> to vector<8x128xf32>
    %523 = vector.shape_cast %520 : vector<8x128xf32> to vector<1x8x128xf32>
    tpu.vector_store %arg11[%c0_230, %c56_231, %c0_232], %523 {strides = array<i32>} : memref<1x64x128xf32, #tpu.memory_space<vmem>>, vector<1x8x128xf32>,
    %c0_233 = arith.constant 0 : index
    %c0_234 = arith.constant 0 : index
    %c0_235 = arith.constant 0 : index
    %524 = vector.load %arg12[%c0_233, %c0_234, %c0_235] : memref<1x8x128xf32, #tpu.memory_space<vmem>>, vector<1x8x128xf32>
    %525 = vector.shape_cast %524 : vector<1x8x128xf32> to vector<8x128xf32>
    %526 = vector.shape_cast %499 : vector<8x128xf32> to vector<1x8x128xf32>
    tpu.vector_store %arg12[%c0_233, %c0_234, %c0_235], %526 {strides = array<i32>} : memref<1x8x128xf32, #tpu.memory_space<vmem>>, vector<1x8x128xf32>,
    %c0_236 = arith.constant 0 : index
    %c0_237 = arith.constant 0 : index
    %c0_238 = arith.constant 0 : index
    %527 = vector.load %arg13[%c0_236, %c0_237, %c0_238] : memref<1x8x128xf32, #tpu.memory_space<vmem>>, vector<1x8x128xf32>
    %528 = vector.shape_cast %527 : vector<1x8x128xf32> to vector<8x128xf32>
    %529 = vector.shape_cast %497 : vector<8x128xf32> to vector<1x8x128xf32>
    tpu.vector_store %arg13[%c0_236, %c0_237, %c0_238], %529 {strides = array<i32>} : memref<1x8x128xf32, #tpu.memory_space<vmem>>, vector<1x8x128xf32>,
    return
  }
  func.func @transform_0(%arg0: i32) -> (i32, i32, i32) {
    %c0_i32 = arith.constant 0 : i32
    %c0_i32_0 = arith.constant 0 : i32
    %c0_i32_1 = arith.constant 0 : i32
    return %arg0, %c0_i32, %c0_i32_0 : i32, i32, i32
  }
  func.func @transform_1(%arg0: i32) -> (i32, i32) {
    %c0_i32 = arith.constant 0 : i32
    %c0_i32_0 = arith.constant 0 : i32
    %c0_i32_1 = arith.constant 0 : i32
    return %c0_i32, %c0_i32_0 : i32, i32
  }
  func.func @transform_2(%arg0: i32) -> (i32, i32) {
    %c0_i32 = arith.constant 0 : i32
    %c0_i32_0 = arith.constant 0 : i32
    %c0_i32_1 = arith.constant 0 : i32
    return %c0_i32, %c0_i32_0 : i32, i32
  }
  func.func @transform_3(%arg0: i32) -> (i32, i32) {
    %c0_i32 = arith.constant 0 : i32
    %c0_i32_0 = arith.constant 0 : i32
    %c0_i32_1 = arith.constant 0 : i32
    return %c0_i32, %c0_i32_0 : i32, i32
  }
  func.func @transform_4(%arg0: i32) -> (i32, i32) {
    %c0_i32 = arith.constant 0 : i32
    %c0_i32_0 = arith.constant 0 : i32
    %c0_i32_1 = arith.constant 0 : i32
    return %c0_i32, %c0_i32_0 : i32, i32
  }
  func.func @transform_5(%arg0: i32) -> (i32, i32) {
    %c0_i32 = arith.constant 0 : i32
    %c0_i32_0 = arith.constant 0 : i32
    %c0_i32_1 = arith.constant 0 : i32
    return %c0_i32, %c0_i32_0 : i32, i32
  }
  func.func @transform_6(%arg0: i32) -> (i32, i32, i32) {
    %c0_i32 = arith.constant 0 : i32
    %c0_i32_0 = arith.constant 0 : i32
    %c0_i32_1 = arith.constant 0 : i32
    return %arg0, %c0_i32, %c0_i32_0 : i32, i32, i32
  }
  func.func @transform_7(%arg0: i32) -> (i32, i32, i32) {
    %c0_i32 = arith.constant 0 : i32
    %c0_i32_0 = arith.constant 0 : i32
    %c0_i32_1 = arith.constant 0 : i32
    return %arg0, %c0_i32, %c0_i32_0 : i32, i32, i32
  }
  func.func @transform_8(%arg0: i32) -> (i32, i32) {
    %c0_i32 = arith.constant 0 : i32
    %c0_i32_0 = arith.constant 0 : i32
    %c0_i32_1 = arith.constant 0 : i32
    return %c0_i32, %c0_i32_0 : i32, i32
  }
  func.func @transform_9(%arg0: i32) -> (i32, i32) {
    %c0_i32 = arith.constant 0 : i32
    %c0_i32_0 = arith.constant 0 : i32
    %c0_i32_1 = arith.constant 0 : i32
    return %c0_i32, %c0_i32_0 : i32, i32
  }
  func.func @transform_10(%arg0: i32) -> (i32, i32, i32) {
    %c0_i32 = arith.constant 0 : i32
    %c0_i32_0 = arith.constant 0 : i32
    %c0_i32_1 = arith.constant 0 : i32
    return %arg0, %c0_i32, %c0_i32_0 : i32, i32, i32
  }
  func.func @transform_11(%arg0: i32) -> (i32, i32, i32) {
    %c0_i32 = arith.constant 0 : i32
    %c0_i32_0 = arith.constant 0 : i32
    %c0_i32_1 = arith.constant 0 : i32
    return %arg0, %c0_i32, %c0_i32_0 : i32, i32, i32
  }
  func.func @transform_12(%arg0: i32) -> (i32, i32, i32) {
    %c0_i32 = arith.constant 0 : i32
    %c0_i32_0 = arith.constant 0 : i32
    %c0_i32_1 = arith.constant 0 : i32
    return %arg0, %c0_i32, %c0_i32_0 : i32, i32, i32
  }
}

</mosaic_0001>

<bundles_post_ra>
// kernel: recurrent_forward_pallas.1
= control target key start
LH: loop header
LB: loop body
LE: loop exit
PB: predicated region body
PF: predicated region fallthrough
CT: control target
= control target key end

     0   :  { %18 = vsyncpa [#allocation4], 0  ;;  %s7850_s21 = smov 0   ;;  %s9417_s0 = inlined_call_operand.vmem [shape: f32[2,64,16], index: 0, kind: input, shape index: {}]   ;;  %s9418_s1 = inlined_call_operand.vmem [shape: bf16[16,32], index: 1, kind: input, shape index: {}]   ;;  %s9419_s2 = inlined_call_operand.vmem [shape: f32[1,32], index: 2, kind: input, shape index: {}]   ;;  %s9420_s3 = inlined_call_operand.vmem [shape: bf16[32,512], index: 3, kind: input, shape index: {}]   ;;  %s9421_s4 = inlined_call_operand.vmem [shape: bf16[128,512], index: 4, kind: input, shape index: {}]   ;;  %s9422_s5 = inlined_call_operand.vmem [shape: f32[1,512], index: 5, kind: input, shape index: {}]   ;;  %s9423_s6 = inlined_call_operand.vmem [shape: f32[2,8,128], index: 6, kind: input, shape index: {}, may-alias: {6,11}]   ;;  %s9424_s7 = inlined_call_operand.vmem [shape: f32[2,8,128], index: 7, kind: input, shape index: {}, may-alias: {7,12}]   ;;  %s9425_s8 = inlined_call_operand.hbm [shape: bf16[128,128], index: 8, kind: input, shape index: {}]   ;;  %s9426_s9 = inlined_call_operand.vmem [shape: f32[1,128], index: 9, kind: input, shape index: {}]   ;;  %s9427_s10 = inlined_call_operand.vmem [shape: f32[2,64,128], index: 10, kind: output, shape index: {0}]   ;;  %s9428_s11 = inlined_call_operand.vmem [shape: f32[2,8,128], index: 11, kind: output, shape index: {1}, may-alias: {6,11}]   ;;  %s9429_s12 = inlined_call_operand.vmem [shape: f32[2,8,128], index: 12, kind: output, shape index: {2}, may-alias: {7,12}]  }
   0x1 LB: > { %s7856_s22 = sadd.s32 4294967295, %s7777_s21   ;;  %p5622_p0 = scmp.ge.s32.totalorder %s7777_s21, 1  ;;  %s7777_s21 = sphi %s7850_s21, %s24_s21  }
   0x2   : > { %p332_p1 = scmp.lt.s32.totalorder %s7777_s21, 3  ;;  %s7779_s23 = smov [#allocation3]  }
   0x3   : > { %s359_s24 = sshll.u32 %s7779_s23, 4  ;;  %p9430_p3 = scmp.eq.s32.totalorder %s7856_s22, 0  ;;  %s360_s24 = int_to_ptr.vmem [resolvable:$true] %s359_s24 }
   0x4   : > { %p7860_p2 = pnand %p5622_p0, %p332_p1  ;;  %s7739_s29 = scalar_lea.hbm %s9425_s8, 1024 }
   0x5   : > { %p7740_p6 = scmp.ne.s32.totalorder %s9425_s8, %s7739_s29  ;;  %p7746_p10 = scmp.lt.u32.totalorder %s7739_s29, %s9425_s8 }
   0x6   : > { %s9432_s25 = scalar_select %p7860_p2, 1, 0 }
   0x7   : > { %p7194_p4 = pneg %p7860_p2 }
   0x9   : > { %p7869_p5 = pnand %p9430_p3, %p7194_p4 }
   0xb   : > { %p7741_p7 = pneg %p7869_p5 }
   0xd   : > { %p7742_p8 = pnand %p7741_p7, %p7740_p6 }
   0xf   : > { %p7743_p9 = pneg %p7742_p8 }
  0x11   : > { %p7748_p11 = pnand %p7746_p10, %p7743_p9 }
  0x13   : > { %7751 = shalt.err (!%p7748_p11)
}
  0x14   : > { %s7752_s16 = scalar_lea.vmem %s360_s24, 1024  ;;  %p7760_p1 = scmp.lt.s32.totalorder %s360_s24, %s360_s24 }
  0x15   : > { %p7753_p12 = scmp.ne.s32.totalorder %s360_s24, %s7752_s16  ;;  %p7761_p4 = scmp.lt.s32.totalorder %s7752_s16, %s7752_s16 }
  0x17   : > { %p7755_p13 = pnand %p7753_p12, %p7741_p7  ;;  %p7762_p3 = por %p7761_p4, %p7760_p1 }
  0x19   : > { %p7756_p0 = pneg %p7755_p13 }
  0x1b   : > { %p7763_p2 = pnand %p7762_p3, %p7756_p0 }
  0x1d   : > { %7766 = shalt.err (!%p7763_p2)
}
  0x1e   : > { %s7780_s17 = smov 64   ;;  %s7781_s18 = smov 4  }
  0x1f   : > { %7197 = dma.hbm_to_vmem [thread:$0]  (!%p7869_p5), %s9425_s8, 1024, %s360_s24, [#allocation4], %s7780_s17, %s7780_s17, %s7781_s18  }
  0x20   : > { %p9434_p6 = scmp.ne.s32.totalorder %s9432_s25, 0 }
  0x21   : > { %p9435_p8 = scmp.eq.s32.totalorder (!%p9434_p6), %s7856_s22, 0 }
  0x22   : > { %400 = sbr.rel (%p9434_p6) target bundleno = 3367 (0xd27), region = 60 }
  0x29   : > { %7772 = dma.done.wait (%p9435_p8), [#allocation4], 1024   ;;  %p9436_p7 = pmov %p9435_p8 }
  0x2a   : > { %p458_p2 = scmp.lt.s32.totalorder %s7856_s22, 1  ;;  %v7214_v0 = vld [vmem:[%s9418_s1] sm:$0xff]   ;;  %vm512_vm0 = vcmask 130048   ;;  %v7218_v15 = vld [vmem:[%s9420_s3 + $0x8] ss:$16 sps:$4 sm:$0xff]   ;;  %v7782_v21 = vmov 0  }
  0x2b   : > { %7774 = vsyncadd (%p9436_p7), [#allocation4], 4294966272  ;;  %6378 = vmatprep.subr.bf16.mxu0 %v7214_v0  ;;  %7188 = vmatprep.subr.bf16.mxu1 %v7214_v0  ;;  %v7215_v13 = vld [vmem:[%s9420_s3] ss:$16 sps:$4 sm:$0xff]   ;;  %v7217_v14 = vld [vmem:[%s9420_s3 + $0x4] ss:$16 sps:$4 sm:$0xff]  }
  0x2c   : > { %s9438_s22 = smov (!%p458_p2, %s7856_s22), 1  ;;  %6379 = vmatpush3.bf16.msra.mxu0 %v7214_v0  ;;  %7189 = vmatpush3.bf16.msra.mxu1 %v7214_v0  ;;  %v7220_v16 = vld [vmem:[%s9420_s3 + $0xc] ss:$16 sps:$4 sm:$0xff]   ;;  %v7221_v17 = vld [vmem:[%s9420_s3 + $0x20] ss:$16 sps:$4 sm:$0xff]   ;;  %v7783_v22 = vmov 0.0  }
  0x2d   : > { %s6011_s23 = sshll.u32 %s9438_s22, 6  ;;  %685 = vmatprep.subr.bf16.mxu1 %v7217_v14  ;;  %v7223_v18 = vld [vmem:[%s9420_s3 + $0x24] ss:$16 sps:$4 sm:$0xff]   ;;  %v7224_v19 = vld [vmem:[%s9420_s3 + $0x28] ss:$16 sps:$4 sm:$0xff]   ;;  %758 = vmatprep.subr.bf16.mxu0 %v7220_v16  ;;  %vm672_vm1 = vcmask 261120  }
  0x2e   : > { %s462_s25 = scalar_lea.vmem %s9417_s0, %s6011_s23  ;;  %v7226_v20 = vld [vmem:[%s9420_s3 + $0x2c] ss:$16 sps:$4 sm:$0xff]   ;;  %v5635_v23 = vld [vmem:[%s9419_s2] ss:$0 sm:$0xff]  ;;  %v7228_v43 = vld [vmem:[%s9421_s4 + $0x4] ss:$16 sps:$4 sm:$0xff]  }
  0x2f   : > { %v485_v1 = vld [vmem:[%s462_s25] sm:$0xff]  ;;  %v486_v2 = vld [vmem:[%s462_s25 + $0x8] sm:$0xff]  ;;  %v487_v3 = vld [vmem:[%s462_s25 + $0x10] sm:$0xff]  ;;  %vm7784_vm2 = vmmov 0  }
  0x30   : > { %v493_v4 = vpack.c.bf16 %v486_v2, %v485_v1  ;;  %v488_v5 = vld [vmem:[%s462_s25 + $0x18] sm:$0xff]  ;;  %v489_v6 = vld [vmem:[%s462_s25 + $0x20] sm:$0xff]  ;;  %v490_v7 = vld [vmem:[%s462_s25 + $0x28] sm:$0xff] }
  0x31   : > { %v494_v8 = vpack.c.bf16 %v488_v5, %v487_v3  ;;  %v495_v9 = vpack.c.bf16 %v490_v7, %v489_v6  ;;  %v491_v10 = vld [vmem:[%s462_s25 + $0x30] sm:$0xff]  ;;  %v492_v11 = vld [vmem:[%s462_s25 + $0x38] sm:$0xff]  ;;  %s8002_s25 = sshll.u32 %s9438_s22, 3 }
  0x32   : > { %6380 = vmatprep.mubr.msk.bf16.mxu0 %vm512_vm0, %v493_v4  ;;  %v496_v12 = vpack.c.bf16 %v492_v11, %v491_v10  ;;  %v7227_v42 = vld [vmem:[%s9421_s4] ss:$16 sps:$4 sm:$0xff]   ;;  %v7230_v53 = vld [vmem:[%s9421_s4 + $0x24] ss:$16 sps:$4 sm:$0xff]   ;;  %s466_s15 = scalar_lea.vmem %s9423_s6, %s8002_s25  ;;  %v7243_v6 = vld [vmem:[%s9421_s4 + $0x8] ss:$16 sps:$4 sm:$0xff]   ;;  %s470_s16 = scalar_lea.vmem %s9424_s7, %s8002_s25 }
  0x33   : > { %6384 = vmatprep.mubr.msk.bf16.mxu1 %vm512_vm0, %v495_v9  ;;  %6381 = vmatmul.mubr.msk.bf16.vlgmr.msra.gmra.mrb[0].mxu0 %vm512_vm0, %v494_v8  ;;  %v7229_v52 = vld [vmem:[%s9421_s4 + $0x20] ss:$16 sps:$4 sm:$0xff]   ;;  %v7232_v57 = vld [vmem:[%s9421_s4 + $0x44] ss:$16 sps:$4 sm:$0xff]   ;;  %v7244_v7 = vld [vmem:[%s9421_s4 + $0xc] ss:$16 sps:$4 sm:$0xff]   ;;  %s483_s29 = scalar_lea.vmem %s9429_s12, %s8002_s25  ;;  %s479_s14 = scalar_lea.vmem %s9428_s11, %s8002_s25 }
  0x34   : > { %6385 = vmatmul.mubr.msk.bf16.vlgmr.msra.gmra.mrb[0].mxu1 %vm512_vm0, %v496_v12  ;;  %759 = vmatpush1.bf16.msra.mxu0 %v7218_v15  ;;  %v7231_v56 = vld [vmem:[%s9421_s4 + $0x40] ss:$16 sps:$4 sm:$0xff]   ;;  %v7234_v59 = vld [vmem:[%s9421_s4 + $0x64] ss:$16 sps:$4 sm:$0xff]   ;;  %v7245_v8 = vld [vmem:[%s9421_s4 + $0x28] ss:$16 sps:$4 sm:$0xff]  }
  0x35   : > { %686 = vmatpush1.bf16.msra.mxu1 %v7215_v13  ;;  %760 = vmatprep.subr.bf16.mxu0 %v7226_v20  ;;  %v7233_v58 = vld [vmem:[%s9421_s4 + $0x60] ss:$16 sps:$4 sm:$0xff]   ;;  %v7236_v61 = vld [vmem:[%s9421_s4 + $0x84] ss:$16 sps:$4 sm:$0xff]   ;;  %v7246_v9 = vld [vmem:[%s9421_s4 + $0x2c] ss:$16 sps:$4 sm:$0xff]  }
  0x36   : > { %687 = vmatprep.subr.bf16.mxu1 %v7223_v18  ;;  %717 = vmatprep.mubr.bf16.mxu1 %v7782_v21  ;;  %v7235_v60 = vld [vmem:[%s9421_s4 + $0x80] ss:$16 sps:$4 sm:$0xff]   ;;  %v7238_v63 = vld [vmem:[%s9421_s4 + $0xa4] ss:$16 sps:$4 sm:$0xff]   ;;  %v7247_v10 = vld [vmem:[%s9421_s4 + $0x48] ss:$16 sps:$4 sm:$0xff]  }
  0x37   : > { %790 = vmatprep.mubr.bf16.mxu0 %v7782_v21  ;;  %v7237_v62 = vld [vmem:[%s9421_s4 + $0xa0] ss:$16 sps:$4 sm:$0xff]   ;;  %v7240_v1 = vld [vmem:[%s9421_s4 + $0xc4] ss:$16 sps:$4 sm:$0xff]   ;;  %v7248_v11 = vld [vmem:[%s9421_s4 + $0x4c] ss:$16 sps:$4 sm:$0xff]  }
  0x38   : > { %761 = vmatpush1.bf16.msra.mxu0 %v7224_v19  ;;  %v7239_v0 = vld [vmem:[%s9421_s4 + $0xc0] ss:$16 sps:$4 sm:$0xff]   ;;  %v7242_v3 = vld [vmem:[%s9421_s4 + $0xe4] ss:$16 sps:$4 sm:$0xff]   ;;  %v7249_v12 = vld [vmem:[%s9421_s4 + $0x68] ss:$16 sps:$4 sm:$0xff]  }
  0x39   : > { %688 = vmatpush1.bf16.msra.mxu1 %v7221_v17  ;;  %6408 = vmatprep.subr.bf16.mxu0 %v7783_v22  ;;  %v7241_v2 = vld [vmem:[%s9421_s4 + $0xe0] ss:$16 sps:$4 sm:$0xff]   ;;  %v7250_v13 = vld [vmem:[%s9421_s4 + $0x6c] ss:$16 sps:$4 sm:$0xff]   ;;  %v7251_v14 = vld [vmem:[%s9421_s4 + $0x88] ss:$16 sps:$4 sm:$0xff]  }
  0x3a   : > { %6388 = vmatprep.subr.bf16.mxu1 %v7783_v22  ;;  %v863_v4 = vld [vmem:[%s466_s15] sm:$0xff]  ;;  %v7252_v15 = vld [vmem:[%s9421_s4 + $0x8c] ss:$16 sps:$4 sm:$0xff]   ;;  %v7253_v16 = vld [vmem:[%s9421_s4 + $0xa8] ss:$16 sps:$4 sm:$0xff]  }
  0x3b   : > { %v865_v5 = vpack.c.bf16 %v863_v4, %v863_v4  ;;  %v7254_v17 = vld [vmem:[%s9421_s4 + $0xac] ss:$16 sps:$4 sm:$0xff]   ;;  %v7255_v18 = vld [vmem:[%s9421_s4 + $0xc8] ss:$16 sps:$4 sm:$0xff]  }
  0x3c   : > { %v7256_v19 = vld [vmem:[%s9421_s4 + $0xcc] ss:$16 sps:$4 sm:$0xff]   ;;  %v7257_v20 = vld [vmem:[%s9421_s4 + $0xe8] ss:$16 sps:$4 sm:$0xff]  }
 0x106   : > { %v6382_v24 = vpop.f32.mrb[0].mxu0 }
 0x107   : > { %v6386_v25 = vpop.f32.mrb[0].mxu1  ;;  %v568_v26 = vadd.f32 %v6382_v24, %v5635_v23  ;;  %v559_v27 = vpop.f32.mrb[1].mxu0  ;;  %v7260_v24 = vld [vmem:[%s9421_s4 + $0x20] ss:$16 sps:$4 sm:$0xff]  }
 0x108   : > { %v575_v28 = vpop.f32.mrb[1].mxu1  ;;  %v560_v29 = vadd.f32 %v5635_v23, %v559_v27  ;;  %v6383_v30 = vpop.f32.mrb[2].mxu0  ;;  %v584_v34 = vadd.f32 %v6386_v25, %v5635_v23  ;;  %v7261_v25 = vld [vmem:[%s9421_s4 + $0x40] ss:$16 sps:$4 sm:$0xff]  }
 0x109   : > { %v6387_v31 = vpop.f32.mrb[2].mxu1  ;;  %7547 = vtanh.f32 %v568_v26  ;;  %v571_v32 = vadd.f32 %v6383_v30, %v5635_v23  ;;  %v562_v33 = vpop.f32.mrb[3].mxu0  ;;  %v576_v37 = vadd.f32 %v5635_v23, %v575_v28  ;;  %v7262_v26 = vld [vmem:[#allocation3] sm:$0xff]   ;;  %v7264_v28 = vld [vmem:[#allocation3 + $0x8] sm:$0xff]   ;;  %v7266_v30 = vld [vmem:[#allocation3 + $0x10] sm:$0xff]  }
 0x10a   : > { %v578_v35 = vpop.f32.mrb[3].mxu1  ;;  %7549 = vtanh.f32 %v560_v29  ;;  %v563_v36 = vadd.f32 %v5635_v23, %v562_v33  ;;  %v587_v38 = vadd.f32 %v6387_v31, %v5635_v23  ;;  %v7263_v27 = vld [vmem:[%s9421_s4 + $0x60] ss:$16 sps:$4 sm:$0xff]  }
 0x10b   : > { %7551 = vtanh.f32 %v571_v32  ;;  %v579_v39 = vadd.f32 %v5635_v23, %v578_v35  ;;  %v7259_v23 = vld [vmem:[%s9421_s4] ss:$16 sps:$4 sm:$0xff]   ;;  %v7268_v32 = vld [vmem:[#allocation3 + $0x18] sm:$0xff]  }
 0x10c   : > { %7553 = vtanh.f32 %v563_v36  ;;  %v7265_v29 = vld [vmem:[%s9421_s4 + $0x80] ss:$16 sps:$4 sm:$0xff]   ;;  %v7272_v36 = vld [vmem:[#allocation3 + $0x28] sm:$0xff]  }
 0x10d   : > { %7555 = vtanh.f32 %v584_v34  ;;  %v7267_v31 = vld [vmem:[%s9421_s4 + $0xa0] ss:$16 sps:$4 sm:$0xff]  }
 0x10e   : > { %7557 = vtanh.f32 %v576_v37  ;;  %v7269_v33 = vld [vmem:[%s9421_s4 + $0xc0] ss:$16 sps:$4 sm:$0xff]  }
 0x10f   : > { %7559 = vtanh.f32 %v587_v38  ;;  %v7270_v34 = vld [vmem:[#allocation3 + $0x20] sm:$0xff]   ;;  %v7274_v37 = vld [vmem:[#allocation3 + $0x30] sm:$0xff]   ;;  %v7276_v38 = vld [vmem:[#allocation3 + $0x38] sm:$0xff]  }
 0x110   : > { %7561 = vtanh.f32 %v579_v39  ;;  %v7271_v35 = vld [vmem:[%s9421_s4 + $0xe0] ss:$16 sps:$4 sm:$0xff]   ;;  %v612_v39 = vlaneseq }
 0x113   : > { %v7548_v40 = vpop.eup %7547 }
 0x114   : > { %v7550_v41 = vpop.eup %7549 }
 0x115   : > { %v7552_v44 = vpop.eup %7551 }
 0x116   : > { %v7554_v45 = vpop.eup %7553  ;;  %v599_v46 = vpack.c.bf16 %v7552_v44, %v7548_v40  ;;  %v613_v40 = vshrl.u32 %v612_v39, 7 }
 0x117   : > { %v7556_v47 = vpop.eup %7555  ;;  %v598_v48 = vpack.c.bf16 %v7554_v45, %v7550_v41 }
 0x118   : > { %v7558_v49 = vpop.eup %7557  ;;  %v614_v41 = vsub.s32 0, %v613_v40  ;;  %v618_v44 = vsub.s32 1, %v613_v40  ;;  %v626_v45 = vsub.s32 3, %v613_v40 }
 0x119   : > { %v7560_v50 = vpop.eup %7559  ;;  %5649 = vmatmul.mubr.msk.bf16.vlgmr.msra.gmra.mrb[4].mxu1 %vm672_vm1, %v598_v48  ;;  %5653 = vmatmul.mubr.msk.bf16.vlgmr.msra.gmra.mrb[4].mxu0 %vm672_vm1, %v598_v48 }
 0x11a   : > { %v7562_v51 = vpop.eup %7561  ;;  %6389 = vmatpush3.bf16.msra.mxu1 %v7227_v42  ;;  %6409 = vmatpush3.bf16.msra.mxu0 %v7228_v43  ;;  %v601_v54 = vpack.c.bf16 %v7560_v50, %v7556_v47  ;;  %v622_v42 = vsub.s32 2, %v613_v40  ;;  %v610_v43 = vld [vmem:[%s9422_s5] sm:$0xf] }
 0x11b   : > { %6390 = vmatprep.subr.bf16.mxu1 %v7783_v22  ;;  %6410 = vmatprep.subr.bf16.mxu0 %v7783_v22  ;;  %v600_v55 = vpack.c.bf16 %v7562_v51, %v7558_v49  ;;  %v615_v48 = vrot.slane %v610_v43, %v614_v41 }
 0x11c   : > { %727 = vmatprep.mubr.bf16.mxu1 %v7782_v21  ;;  %800 = vmatprep.mubr.bf16.mxu0 %v7782_v21  ;;  %v8151_v49 = vrot.slane %v610_v43, %v622_v42 }
 0x11e   : > { %6391 = vmatpush3.bf16.msra.mxu1 %v7229_v52  ;;  %6411 = vmatpush3.bf16.msra.mxu0 %v7230_v53  ;;  %v619_v52 = vrot.slane %v610_v43, %v618_v44  ;;  %v8155_v53 = vrot.slane %v610_v43, %v626_v45 }
 0x11f   : > { %6392 = vmatprep.subr.bf16.mxu1 %v7783_v22  ;;  %6412 = vmatprep.subr.bf16.mxu0 %v7783_v22 }
 0x121   : > { %5650 = vmatmul.mubr.msk.bf16.gmra.mrb[8].mxu1 %vm672_vm1, %v599_v46  ;;  %5654 = vmatmul.mubr.msk.bf16.gmra.mrb[8].mxu0 %vm672_vm1, %v599_v46 }
 0x122   : > { %6393 = vmatpush3.bf16.msra.mxu1 %v7231_v56  ;;  %6413 = vmatpush3.bf16.msra.mxu0 %v7232_v57 }
 0x123   : > { %6394 = vmatprep.subr.bf16.mxu1 %v7783_v22  ;;  %6414 = vmatprep.subr.bf16.mxu0 %v7783_v22 }
 0x124   : > { %737 = vmatprep.mubr.bf16.mxu1 %v7782_v21  ;;  %810 = vmatprep.mubr.bf16.mxu0 %v7782_v21 }
 0x126   : > { %6395 = vmatpush3.bf16.msra.mxu1 %v7233_v58  ;;  %6415 = vmatpush3.bf16.msra.mxu0 %v7234_v59 }
 0x127   : > { %6396 = vmatprep.subr.bf16.mxu1 %v7783_v22  ;;  %6416 = vmatprep.subr.bf16.mxu0 %v7783_v22 }
 0x129   : > { %5651 = vmatmul.mubr.msk.bf16.gmra.mrb[12].mxu1 %vm672_vm1, %v600_v55  ;;  %5655 = vmatmul.mubr.msk.bf16.gmra.mrb[12].mxu0 %vm672_vm1, %v600_v55 }
 0x12a   : > { %6397 = vmatpush3.bf16.msra.mxu1 %v7235_v60  ;;  %6417 = vmatpush3.bf16.msra.mxu0 %v7236_v61 }
 0x12b   : > { %6398 = vmatprep.subr.bf16.mxu1 %v7783_v22  ;;  %6418 = vmatprep.subr.bf16.mxu0 %v7783_v22 }
 0x12c   : > { %747 = vmatprep.mubr.bf16.mxu1 %v7782_v21  ;;  %820 = vmatprep.mubr.bf16.mxu0 %v7782_v21  ;;  %v7258_v21 = vld [vmem:[%s9421_s4 + $0xec] ss:$16 sps:$4 sm:$0xff]  }
 0x12e   : > { %6399 = vmatpush3.bf16.msra.mxu1 %v7237_v62  ;;  %6419 = vmatpush3.bf16.msra.mxu0 %v7238_v63 }
 0x12f   : > { %6400 = vmatprep.subr.bf16.mxu1 %v7783_v22  ;;  %6420 = vmatprep.subr.bf16.mxu0 %v7783_v22 }
 0x131   : > { %5652 = vmatmul.mubr.msk.bf16.gmra.mrb[16].mxu1 %vm672_vm1, %v601_v54  ;;  %5656 = vmatmul.mubr.msk.bf16.gmra.mrb[16].mxu0 %vm672_vm1, %v601_v54 }
 0x132   : > { %6401 = vmatpush3.bf16.msra.mxu1 %v7239_v0  ;;  %6421 = vmatpush3.bf16.msra.mxu0 %v7240_v1 }
 0x133   : > { %6402 = vmatprep.subr.bf16.mxu1 %v7783_v22  ;;  %6422 = vmatprep.subr.bf16.mxu0 %v7783_v22 }
 0x134   : > { %6404 = vmatprep.mubr.msk.bf16.mxu1 %vm7784_vm2, %v7783_v22  ;;  %6424 = vmatprep.mubr.msk.bf16.mxu0 %vm7784_vm2, %v7783_v22 }
 0x136   : > { %6403 = vmatpush3.bf16.msra.mxu1 %v7241_v2  ;;  %6423 = vmatpush3.bf16.msra.mxu0 %v7242_v3 }
 0x137   : > { %6428 = vmatprep.subr.bf16.mxu1 %v7783_v22  ;;  %6448 = vmatprep.subr.bf16.mxu0 %v7783_v22 }
 0x139   : > { %6405 = vmatmul.mubr.bf16.vlgmr.msra.gmra.mrb[20].mxu1 %v865_v5  ;;  %6425 = vmatmul.mubr.bf16.vlgmr.msra.gmra.mrb[20].mxu0 %v865_v5 }
 0x13a   : > { %6429 = vmatpush3.bf16.msra.mxu1 %v7243_v6  ;;  %6449 = vmatpush3.bf16.msra.mxu0 %v7244_v7 }
 0x13b   : > { %6430 = vmatprep.subr.bf16.mxu1 %v7783_v22  ;;  %6450 = vmatprep.subr.bf16.mxu0 %v7783_v22 }
 0x13c   : > { %6444 = vmatprep.mubr.msk.bf16.mxu1 %vm7784_vm2, %v7783_v22  ;;  %6464 = vmatprep.mubr.msk.bf16.mxu0 %vm7784_vm2, %v7783_v22 }
 0x13e   : > { %6431 = vmatpush3.bf16.msra.mxu1 %v7245_v8  ;;  %6451 = vmatpush3.bf16.msra.mxu0 %v7246_v9 }
 0x13f   : > { %6432 = vmatprep.subr.bf16.mxu1 %v7783_v22  ;;  %6452 = vmatprep.subr.bf16.mxu0 %v7783_v22 }
 0x142   : > { %6433 = vmatpush3.bf16.msra.mxu1 %v7247_v10  ;;  %6453 = vmatpush3.bf16.msra.mxu0 %v7248_v11 }
 0x143   : > { %6434 = vmatprep.subr.bf16.mxu1 %v7783_v22  ;;  %6454 = vmatprep.subr.bf16.mxu0 %v7783_v22 }
 0x146   : > { %6435 = vmatpush3.bf16.msra.mxu1 %v7249_v12  ;;  %6455 = vmatpush3.bf16.msra.mxu0 %v7250_v13 }
 0x147   : > { %6436 = vmatprep.subr.bf16.mxu1 %v7783_v22  ;;  %6456 = vmatprep.subr.bf16.mxu0 %v7783_v22 }
 0x14a   : > { %6437 = vmatpush3.bf16.msra.mxu1 %v7251_v14  ;;  %6457 = vmatpush3.bf16.msra.mxu0 %v7252_v15 }
 0x14b   : > { %6438 = vmatprep.subr.bf16.mxu1 %v7783_v22  ;;  %6458 = vmatprep.subr.bf16.mxu0 %v7783_v22 }
 0x14e   : > { %6439 = vmatpush3.bf16.msra.mxu1 %v7253_v16  ;;  %6459 = vmatpush3.bf16.msra.mxu0 %v7254_v17 }
 0x14f   : > { %6440 = vmatprep.subr.bf16.mxu1 %v7783_v22  ;;  %6460 = vmatprep.subr.bf16.mxu0 %v7783_v22 }
 0x152   : > { %6441 = vmatpush3.bf16.msra.mxu1 %v7255_v18  ;;  %6461 = vmatpush3.bf16.msra.mxu0 %v7256_v19 }
 0x153   : > { %6442 = vmatprep.subr.bf16.mxu1 %v7783_v22  ;;  %6462 = vmatprep.subr.bf16.mxu0 %v7783_v22 }
 0x156   : > { %6443 = vmatpush3.bf16.msra.mxu1 %v7257_v20  ;;  %6463 = vmatpush3.bf16.msra.mxu0 %v7258_v21 }
 0x157   : > { %6488 = vmatprep.subr.bf16.mxu0 %v7783_v22  ;;  %6468 = vmatprep.subr.bf16.mxu1 %v7783_v22 }
 0x159   : > { %6445 = vmatmul.mubr.bf16.vlgmr.msra.gmra.mrb[24].mxu1 %v865_v5  ;;  %6465 = vmatmul.mubr.bf16.vlgmr.msra.gmra.mrb[24].mxu0 %v865_v5 }
 0x15a   : > { %6504 = vmatprep.mubr.msk.bf16.mxu0 %vm7784_vm2, %v7783_v22  ;;  %6484 = vmatprep.mubr.msk.bf16.mxu1 %vm7784_vm2, %v7783_v22 }
 0x15b   : > { %6489 = vmatpush3.bf16.msra.mxu0 %v7259_v23  ;;  %6469 = vmatpush3.bf16.msra.mxu1 %v7262_v26 }
 0x15c   : > { %6490 = vmatprep.subr.bf16.mxu0 %v7783_v22  ;;  %6470 = vmatprep.subr.bf16.mxu1 %v7783_v22 }
 0x15f   : > { %6491 = vmatpush3.bf16.msra.mxu0 %v7260_v24  ;;  %6471 = vmatpush3.bf16.msra.mxu1 %v7264_v28 }
 0x160   : > { %6492 = vmatprep.subr.bf16.mxu0 %v7783_v22  ;;  %6472 = vmatprep.subr.bf16.mxu1 %v7783_v22 }
 0x163   : > { %6493 = vmatpush3.bf16.msra.mxu0 %v7261_v25  ;;  %6473 = vmatpush3.bf16.msra.mxu1 %v7266_v30 }
 0x164   : > { %6494 = vmatprep.subr.bf16.mxu0 %v7783_v22  ;;  %6474 = vmatprep.subr.bf16.mxu1 %v7783_v22 }
 0x167   : > { %6495 = vmatpush3.bf16.msra.mxu0 %v7263_v27  ;;  %6475 = vmatpush3.bf16.msra.mxu1 %v7268_v32 }
 0x168   : > { %6496 = vmatprep.subr.bf16.mxu0 %v7783_v22  ;;  %6476 = vmatprep.subr.bf16.mxu1 %v7783_v22 }
 0x16b   : > { %6497 = vmatpush3.bf16.msra.mxu0 %v7265_v29  ;;  %6477 = vmatpush3.bf16.msra.mxu1 %v7270_v34 }
 0x16c   : > { %6498 = vmatprep.subr.bf16.mxu0 %v7783_v22  ;;  %6478 = vmatprep.subr.bf16.mxu1 %v7783_v22 }
 0x16f   : > { %6499 = vmatpush3.bf16.msra.mxu0 %v7267_v31  ;;  %6479 = vmatpush3.bf16.msra.mxu1 %v7272_v36 }
 0x170   : > { %6500 = vmatprep.subr.bf16.mxu0 %v7783_v22  ;;  %6480 = vmatprep.subr.bf16.mxu1 %v7783_v22 }
 0x173   : > { %6501 = vmatpush3.bf16.msra.mxu0 %v7269_v33  ;;  %6481 = vmatpush3.bf16.msra.mxu1 %v7274_v37 }
 0x174   : > { %6502 = vmatprep.subr.bf16.mxu0 %v7783_v22  ;;  %6482 = vmatprep.subr.bf16.mxu1 %v7783_v22 }
 0x177   : > { %6503 = vmatpush3.bf16.msra.mxu0 %v7271_v35  ;;  %6483 = vmatpush3.bf16.msra.mxu1 %v7276_v38 }
 0x178   : > { %6528 = vmatprep.subr.bf16.mxu0 %v7783_v22  ;;  %6508 = vmatprep.subr.bf16.mxu1 %v7783_v22 }
 0x1ec   : > { %v8147_v46 = vpop.f32.mrb[4].mxu1  ;;  %v8149_v47 = vpop.f32.mrb[4].mxu0 }
 0x1ed   : > { %v721_v50 = vpop.f32.mrb[5].mxu1  ;;  %v8153_v51 = vpop.f32.mrb[5].mxu0 }
 0x1ee   : > { %v723_v54 = vpop.f32.mrb[6].mxu1  ;;  %v796_v55 = vpop.f32.mrb[6].mxu0 }
 0x1ef   : > { %v8157_v56 = vadd.f32 %v723_v54, %v615_v48  ;;  %v8160_v57 = vadd.f32 %v796_v55, %v8151_v49  ;;  %v725_v58 = vpop.f32.mrb[7].mxu1  ;;  %v798_v59 = vpop.f32.mrb[7].mxu0  ;;  %v720_v55 = vadd.f32 %v8147_v46, %v615_v48  ;;  %v793_v46 = vadd.f32 %v8149_v47, %v8151_v49 }
 0x1f0   : > { %v8162_v60 = vadd.f32 %v725_v58, %v619_v52  ;;  %v8165_v61 = vadd.f32 %v798_v59, %v8155_v53  ;;  %v722_v58 = vadd.f32 %v721_v50, %v619_v52 }
 0x1f4   : > { %v729_v62 = vpop.f32.mrb[8].mxu1  ;;  %v802_v63 = vpop.f32.mrb[8].mxu0 }
 0x1f5   : > { %v8167_v0 = vadd.f32 %v729_v62, %v615_v48  ;;  %v8170_v1 = vadd.f32 %v802_v63, %v8151_v49  ;;  %v731_v2 = vpop.f32.mrb[9].mxu1  ;;  %v804_v3 = vpop.f32.mrb[9].mxu0 }
 0x1f6   : > { %v8172_v4 = vadd.f32 %v731_v2, %v619_v52  ;;  %v8175_v5 = vadd.f32 %v804_v3, %v8155_v53  ;;  %v733_v6 = vpop.f32.mrb[10].mxu1  ;;  %v806_v7 = vpop.f32.mrb[10].mxu0 }
 0x1f7   : > { %v8177_v8 = vadd.f32 %v733_v6, %v615_v48  ;;  %v8180_v9 = vadd.f32 %v806_v7, %v8151_v49  ;;  %v735_v10 = vpop.f32.mrb[11].mxu1  ;;  %v808_v11 = vpop.f32.mrb[11].mxu0 }
 0x1f8   : > { %v8182_v12 = vadd.f32 %v735_v10, %v619_v52  ;;  %v8185_v13 = vadd.f32 %v808_v11, %v8155_v53 }
 0x1fc   : > { %v739_v14 = vpop.f32.mrb[12].mxu1  ;;  %v812_v15 = vpop.f32.mrb[12].mxu0 }
 0x1fd   : > { %v8187_v16 = vadd.f32 %v739_v14, %v615_v48  ;;  %v8190_v17 = vadd.f32 %v812_v15, %v8151_v49  ;;  %v741_v18 = vpop.f32.mrb[13].mxu1  ;;  %v814_v19 = vpop.f32.mrb[13].mxu0 }
 0x1fe   : > { %v8192_v20 = vadd.f32 %v741_v18, %v619_v52  ;;  %v8195_v21 = vadd.f32 %v814_v19, %v8155_v53  ;;  %v743_v23 = vpop.f32.mrb[14].mxu1  ;;  %v816_v24 = vpop.f32.mrb[14].mxu0 }
 0x1ff   : > { %v8197_v25 = vadd.f32 %v743_v23, %v615_v48  ;;  %v8200_v26 = vadd.f32 %v816_v24, %v8151_v49  ;;  %v745_v27 = vpop.f32.mrb[15].mxu1  ;;  %v818_v28 = vpop.f32.mrb[15].mxu0 }
 0x200   : > { %v8202_v29 = vadd.f32 %v745_v27, %v619_v52  ;;  %v8205_v30 = vadd.f32 %v818_v28, %v8155_v53 }
 0x204   : > { %v749_v31 = vpop.f32.mrb[16].mxu1  ;;  %v822_v32 = vpop.f32.mrb[16].mxu0 }
 0x205   : > { %v8207_v33 = vadd.f32 %v749_v31, %v615_v48  ;;  %v8210_v34 = vadd.f32 %v822_v32, %v8151_v49  ;;  %v751_v35 = vpop.f32.mrb[17].mxu1  ;;  %v824_v36 = vpop.f32.mrb[17].mxu0 }
 0x206   : > { %v8212_v37 = vadd.f32 %v751_v35, %v619_v52  ;;  %v8215_v38 = vadd.f32 %v824_v36, %v8155_v53  ;;  %v753_v39 = vpop.f32.mrb[18].mxu1  ;;  %v826_v40 = vpop.f32.mrb[18].mxu0 }
 0x207   : > { %v8217_v41 = vadd.f32 %v753_v39, %v615_v48  ;;  %v8220_v42 = vadd.f32 %v826_v40, %v8151_v49  ;;  %v755_v43 = vpop.f32.mrb[19].mxu1  ;;  %v828_v44 = vpop.f32.mrb[19].mxu0  ;;  %v795_v48 = vadd.f32 %v8153_v51, %v8155_v53  ;;  %v864_v49 = vld [vmem:[%s470_s16] sm:$0xff]  ;;  %s9396_s16 = scalar_lea.vmem %s9427_s10, %s6011_s23 }
 0x208   : > { %v8222_v45 = vadd.f32 %v755_v43, %v619_v52  ;;  %v8225_v54 = vadd.f32 %v828_v44, %v8155_v53 }
 0x20c   : > { %v968_v59 = vpop.f32.mrb[20].mxu1  ;;  %v1079_v62 = vpop.f32.mrb[20].mxu0 }
 0x20d   : > { %v974_v63 = vadd.f32 %v968_v59, %v720_v55  ;;  %v1085_v2 = vadd.f32 %v1079_v62, %v722_v58  ;;  %v6406_v3 = vpop.f32.mrb[21].mxu1  ;;  %v6426_v6 = vpop.f32.mrb[21].mxu0 }
 0x20e   : > { %v971_v7 = vpop.f32.mrb[22].mxu1  ;;  %v1082_v10 = vpop.f32.mrb[22].mxu0 }
 0x20f   : > { %v6407_v11 = vpop.f32.mrb[23].mxu1  ;;  %v6427_v14 = vpop.f32.mrb[23].mxu0  ;;  %v5674_v15 = vmul.f32 -1.442695, %v1085_v2  ;;  %v5665_v18 = vmul.f32 -1.442695, %v974_v63 }
 0x210   : > { %v7273_v7 = vld [vmem:[%s9421_s4 + $0x8] ss:$16 sps:$4 sm:$0xff]  }
 0x211   : > { %7563 = vpow2.f32 %v5674_v15  ;;  %v7275_v11 = vld [vmem:[%s9421_s4 + $0x28] ss:$16 sps:$4 sm:$0xff]  }
 0x212   : > { %7565 = vpow2.f32 %v5665_v18  ;;  %v7277_v14 = vld [vmem:[%s9421_s4 + $0x48] ss:$16 sps:$4 sm:$0xff]   ;;  %v7278_v18 = vld [vmem:[%s9421_s4 + $0x4] ss:$16 sps:$4 sm:$0xff]  }
 0x21b   : > { %v7564_v19 = vpop.eup %7563 }
 0x21c   : > { %v7566_v23 = vpop.eup %7565  ;;  %v1089_v24 = vadd.f32 1.0, %v7564_v19 }
 0x21d   : > { %v978_v27 = vadd.f32 1.0, %v7566_v23  ;;  %v7279_v23 = vld [vmem:[%s9421_s4 + $0x68] ss:$16 sps:$4 sm:$0xff]  }
 0x21e   : > { %7567 = vrcp.f32 %v1089_v24  ;;  %v7280_v24 = vld [vmem:[%s9421_s4 + $0x24] ss:$16 sps:$4 sm:$0xff]  }
 0x21f   : > { %7569 = vrcp.f32 %v978_v27  ;;  %v7281_v27 = vld [vmem:[%s9421_s4 + $0x88] ss:$16 sps:$4 sm:$0xff]  }
 0x228   : > { %v7568_v47 = vpop.eup %7567 }
 0x229   : > { %v7570_v51 = vpop.eup %7569  ;;  %v1309_v55 = vmul.f32 %v7568_v47, %v864_v49  ;;  %v7295_v47 = vld [vmem:[%s9421_s4 + $0x8c] ss:$16 sps:$4 sm:$0xff]  }
 0x22a   : > { %v7296_v49 = vld [vmem:[%s9421_s4 + $0xac] ss:$16 sps:$4 sm:$0xff]  }
 0x22c   : > { %v1190_v50 = vpop.f32.mrb[24].mxu1  ;;  %v1296_v52 = vpop.f32.mrb[24].mxu0 }
 0x22d   : > { %v1196_v28 = vadd.f32 %v1190_v50, %v793_v46  ;;  %v1302_v31 = vadd.f32 %v1296_v52, %v795_v48  ;;  %v6446_v32 = vpop.f32.mrb[25].mxu1  ;;  %v6466_v35 = vpop.f32.mrb[25].mxu0  ;;  %v7282_v46 = vld [vmem:[%s9421_s4 + $0x44] ss:$16 sps:$4 sm:$0xff]   ;;  %v7283_v48 = vld [vmem:[%s9421_s4 + $0xa8] ss:$16 sps:$4 sm:$0xff]  }
 0x22e   : > { %v1193_v36 = vpop.f32.mrb[26].mxu1  ;;  %v1299_v39 = vpop.f32.mrb[26].mxu0  ;;  %v7284_v50 = vld [vmem:[%s9421_s4 + $0x64] ss:$16 sps:$4 sm:$0xff]   ;;  %v7285_v52 = vld [vmem:[%s9421_s4 + $0xc8] ss:$16 sps:$4 sm:$0xff]  }
 0x22f   : > { %7571 = vtanh.f32 %v1196_v28  ;;  %v5691_v40 = vmul.f32 -1.442695, %v1302_v31  ;;  %v6447_v43 = vpop.f32.mrb[27].mxu1  ;;  %v6467_v44 = vpop.f32.mrb[27].mxu0  ;;  %v7286_v28 = vld [vmem:[%s9421_s4 + $0x84] ss:$16 sps:$4 sm:$0xff]  }
 0x230   : > { %v7287_v31 = vld [vmem:[%s9421_s4 + $0xe8] ss:$16 sps:$4 sm:$0xff]   ;;  %v7288_v32 = vld [vmem:[%s9421_s4 + $0xa4] ss:$16 sps:$4 sm:$0xff]   ;;  %v7291_v39 = vld [vmem:[%s9421_s4 + $0xc] ss:$16 sps:$4 sm:$0xff]  }
 0x231   : > { %7573 = vpow2.f32 %v5691_v40  ;;  %v7289_v35 = vld [vmem:[%s9421_s4 + $0xc4] ss:$16 sps:$4 sm:$0xff]   ;;  %v7292_v40 = vld [vmem:[%s9421_s4 + $0x2c] ss:$16 sps:$4 sm:$0xff]  }
 0x232   : > { %v7290_v36 = vld [vmem:[%s9421_s4 + $0xe4] ss:$16 sps:$4 sm:$0xff]   ;;  %v7293_v43 = vld [vmem:[%s9421_s4 + $0x4c] ss:$16 sps:$4 sm:$0xff]  }
 0x233   : > { %v7294_v44 = vld [vmem:[%s9421_s4 + $0x6c] ss:$16 sps:$4 sm:$0xff]  }
 0x239   : > { %v7572_v53 = vpop.eup %7571 }
 0x23a   : > { %v1310_v58 = vmul.f32 %v7572_v53, %v7570_v51  ;;  %v7297_v51 = vld [vmem:[%s9421_s4 + $0xcc] ss:$16 sps:$4 sm:$0xff]  }
 0x23b   : > { %v7574_v59 = vpop.eup %7573  ;;  %v7298_v53 = vld [vmem:[%s9421_s4 + $0xec] ss:$16 sps:$4 sm:$0xff]  }
 0x23c   : > { %v8236_v62 = vadd.f32 %v1310_v58, %v1309_v55  ;;  %v1306_v63 = vadd.f32 1.0, %v7574_v59  ;;  %v7299_v55 = vld [vmem:[%s9421_s4] ss:$16 sps:$4 sm:$0xff]  }
 0x23d   : > { %v7300_v58 = vld [vmem:[%s9421_s4 + $0x20] ss:$16 sps:$4 sm:$0xff]  }
 0x23e   : > { %7575 = vtanh.f32 %v8236_v62  ;;  %v7301_v59 = vld [vmem:[%s9421_s4 + $0x40] ss:$16 sps:$4 sm:$0xff]  }
 0x23f   : > { %7577 = vrcp.f32 %v1306_v63  ;;  %v7302_v63 = vld [vmem:[#allocation3] sm:$0xff]  }
 0x248   : > { %v7576_v2 = vpop.eup %7575 }
 0x249   : > { %v7578_v3 = vpop.eup %7577 }
 0x24a   : > { %v1313_v6 = vmul.f32 %v7578_v3, %v7576_v2  ;;  %v7303_v2 = vld [vmem:[%s9421_s4 + $0x60] ss:$16 sps:$4 sm:$0xff]   ;;  %v7304_v3 = vld [vmem:[#allocation3 + $0x8] sm:$0xff]  }
 0x24c   : > { %v8242_v10 = vpack.c.bf16 %v1313_v6, %v1313_v6  ;;  %7579 = vtanh.f32 %v1313_v6  ;;  %v7305_v6 = vld [vmem:[%s9421_s4 + $0x80] ss:$16 sps:$4 sm:$0xff]  }
 0x24e   : > { %6505 = vmatmul.mubr.bf16.vlgmr.msra.gmra.mrb[28].mxu0 %v8242_v10 }
 0x24f   : > { %6529 = vmatpush3.bf16.msra.mxu0 %v7273_v7  ;;  %6544 = vmatprep.mubr.msk.bf16.mxu0 %vm7784_vm2, %v7783_v22  ;;  %v7306_v7 = vld [vmem:[#allocation3 + $0x10] sm:$0xff]  }
 0x250   : > { %6530 = vmatprep.subr.bf16.mxu0 %v7783_v22 }
 0x253   : > { %6531 = vmatpush3.bf16.msra.mxu0 %v7275_v11  ;;  %v7308_v11 = vld [vmem:[#allocation3 + $0x18] sm:$0xff]  }
 0x254   : > { %6532 = vmatprep.subr.bf16.mxu0 %v7783_v22 }
 0x256   : > { %v7580_v15 = vpop.eup %7579 }
 0x257   : > { %6533 = vmatpush3.bf16.msra.mxu0 %v7277_v14  ;;  %v1315_v19 = vpack.c.bf16 %v7580_v15, %v7580_v15  ;;  %v7309_v14 = vld [vmem:[%s9421_s4 + $0xc0] ss:$16 sps:$4 sm:$0xff]  }
 0x258   : > { %6534 = vmatprep.subr.bf16.mxu0 %v7783_v22  ;;  %v7310_v15 = vld [vmem:[#allocation3 + $0x20] sm:$0xff]  }
 0x259   : > { %6485 = vmatmul.mubr.bf16.vlgmr.msra.gmra.mrb[28].mxu1 %v1315_v19  ;;  %v7312_v19 = vld [vmem:[#allocation3 + $0x28] sm:$0xff]  }
 0x25a   : > { %6509 = vmatpush3.bf16.msra.mxu1 %v7278_v18  ;;  %6524 = vmatprep.mubr.msk.bf16.mxu1 %vm7784_vm2, %v7783_v22  ;;  %v7311_v18 = vld [vmem:[%s9421_s4 + $0xe0] ss:$16 sps:$4 sm:$0xff]  }
 0x25b   : > { %6535 = vmatpush3.bf16.msra.mxu0 %v7279_v23  ;;  %6510 = vmatprep.subr.bf16.mxu1 %v7783_v22  ;;  %v7314_v23 = vld [vmem:[#allocation3 + $0x30] sm:$0xff]  }
 0x25c   : > { %6536 = vmatprep.subr.bf16.mxu0 %v7783_v22 }
 0x25e   : > { %6511 = vmatpush3.bf16.msra.mxu1 %v7280_v24  ;;  %v7316_v24 = vld [vmem:[#allocation3 + $0x38] sm:$0xff]  }
 0x25f   : > { %6537 = vmatpush3.bf16.msra.mxu0 %v7281_v27  ;;  %6512 = vmatprep.subr.bf16.mxu1 %v7783_v22 }
 0x260   : > { %6538 = vmatprep.subr.bf16.mxu0 %v7783_v22 }
 0x262   : > { %6513 = vmatpush3.bf16.msra.mxu1 %v7282_v46 }
 0x263   : > { %6539 = vmatpush3.bf16.msra.mxu0 %v7283_v48  ;;  %6514 = vmatprep.subr.bf16.mxu1 %v7783_v22 }
 0x264   : > { %6540 = vmatprep.subr.bf16.mxu0 %v7783_v22 }
 0x266   : > { %6515 = vmatpush3.bf16.msra.mxu1 %v7284_v50 }
 0x267   : > { %6541 = vmatpush3.bf16.msra.mxu0 %v7285_v52  ;;  %6516 = vmatprep.subr.bf16.mxu1 %v7783_v22 }
 0x268   : > { %6542 = vmatprep.subr.bf16.mxu0 %v7783_v22 }
 0x26a   : > { %6517 = vmatpush3.bf16.msra.mxu1 %v7286_v28  ;;  %v8395_v28 = vld [vmem:[%s9426_s9] ss:$0 sm:$0xff] }
 0x26b   : > { %6543 = vmatpush3.bf16.msra.mxu0 %v7287_v31  ;;  %6518 = vmatprep.subr.bf16.mxu1 %v7783_v22 }
 0x26c   : > { %6568 = vmatprep.subr.bf16.mxu0 %v7783_v22 }
 0x26e   : > { %6519 = vmatpush3.bf16.msra.mxu1 %v7288_v32  ;;  %6545 = vmatmul.mubr.bf16.vlgmr.msra.gmra.mrb[32].mxu0 %v8242_v10 }
 0x26f   : > { %6520 = vmatprep.subr.bf16.mxu1 %v7783_v22  ;;  %6584 = vmatprep.mubr.msk.bf16.mxu0 %vm7784_vm2, %v7783_v22 }
 0x270   : > { %6569 = vmatpush3.bf16.msra.mxu0 %v7302_v63 }
 0x271   : > { %6570 = vmatprep.subr.bf16.mxu0 %v7783_v22 }
 0x272   : > { %6521 = vmatpush3.bf16.msra.mxu1 %v7289_v35 }
 0x273   : > { %6522 = vmatprep.subr.bf16.mxu1 %v7783_v22 }
 0x274   : > { %6571 = vmatpush3.bf16.msra.mxu0 %v7304_v3 }
 0x275   : > { %6572 = vmatprep.subr.bf16.mxu0 %v7783_v22 }
 0x276   : > { %6523 = vmatpush3.bf16.msra.mxu1 %v7290_v36 }
 0x277   : > { %6548 = vmatprep.subr.bf16.mxu1 %v7783_v22 }
 0x278   : > { %6573 = vmatpush3.bf16.msra.mxu0 %v7306_v7 }
 0x279   : > { %6525 = vmatmul.mubr.bf16.vlgmr.msra.gmra.mrb[32].mxu1 %v8242_v10  ;;  %6574 = vmatprep.subr.bf16.mxu0 %v7783_v22 }
 0x27a   : > { %6549 = vmatpush3.bf16.msra.mxu1 %v7291_v39  ;;  %6564 = vmatprep.mubr.msk.bf16.mxu1 %vm7784_vm2, %v7783_v22 }
 0x27b   : > { %6550 = vmatprep.subr.bf16.mxu1 %v7783_v22 }
 0x27c   : > { %6575 = vmatpush3.bf16.msra.mxu0 %v7308_v11 }
 0x27d   : > { %6576 = vmatprep.subr.bf16.mxu0 %v7783_v22 }
 0x27e   : > { %6551 = vmatpush3.bf16.msra.mxu1 %v7292_v40 }
 0x27f   : > { %6552 = vmatprep.subr.bf16.mxu1 %v7783_v22 }
 0x280   : > { %6577 = vmatpush3.bf16.msra.mxu0 %v7310_v15 }
 0x281   : > { %6578 = vmatprep.subr.bf16.mxu0 %v7783_v22 }
 0x282   : > { %6553 = vmatpush3.bf16.msra.mxu1 %v7293_v43 }
 0x283   : > { %6554 = vmatprep.subr.bf16.mxu1 %v7783_v22 }
 0x284   : > { %6579 = vmatpush3.bf16.msra.mxu0 %v7312_v19 }
 0x285   : > { %6580 = vmatprep.subr.bf16.mxu0 %v7783_v22 }
 0x286   : > { %6555 = vmatpush3.bf16.msra.mxu1 %v7294_v44 }
 0x287   : > { %6556 = vmatprep.subr.bf16.mxu1 %v7783_v22 }
 0x288   : > { %6581 = vmatpush3.bf16.msra.mxu0 %v7314_v23 }
 0x289   : > { %6582 = vmatprep.subr.bf16.mxu0 %v7783_v22 }
 0x28a   : > { %6557 = vmatpush3.bf16.msra.mxu1 %v7295_v47 }
 0x28b   : > { %6558 = vmatprep.subr.bf16.mxu1 %v7783_v22 }
 0x28c   : > { %6583 = vmatpush3.bf16.msra.mxu0 %v7316_v24 }
 0x28d   : > { %6608 = vmatprep.subr.bf16.mxu0 %v7783_v22 }
 0x28e   : > { %6559 = vmatpush3.bf16.msra.mxu1 %v7296_v49 }
 0x28f   : > { %6560 = vmatprep.subr.bf16.mxu1 %v7783_v22 }
 0x292   : > { %6561 = vmatpush3.bf16.msra.mxu1 %v7297_v51 }
 0x293   : > { %6562 = vmatprep.subr.bf16.mxu1 %v7783_v22 }
 0x296   : > { %6563 = vmatpush3.bf16.msra.mxu1 %v7298_v53 }
 0x297   : > { %6588 = vmatprep.subr.bf16.mxu1 %v7783_v22 }
 0x299   : > { %6565 = vmatmul.mubr.bf16.vlgmr.msra.gmra.mrb[36].mxu1 %v8242_v10  ;;  %v7307_v10 = vld [vmem:[%s9421_s4 + $0xa0] ss:$16 sps:$4 sm:$0xff]  }
 0x29a   : > { %6604 = vmatprep.mubr.msk.bf16.mxu1 %vm7784_vm2, %v7783_v22  ;;  %6589 = vmatpush3.bf16.msra.mxu1 %v7299_v55 }
 0x29b   : > { %6590 = vmatprep.subr.bf16.mxu1 %v7783_v22 }
 0x29e   : > { %6591 = vmatpush3.bf16.msra.mxu1 %v7300_v58 }
 0x29f   : > { %6592 = vmatprep.subr.bf16.mxu1 %v7783_v22 }
 0x2a2   : > { %6593 = vmatpush3.bf16.msra.mxu1 %v7301_v59 }
 0x2a3   : > { %6594 = vmatprep.subr.bf16.mxu1 %v7783_v22 }
 0x2a6   : > { %6595 = vmatpush3.bf16.msra.mxu1 %v7303_v2 }
 0x2a7   : > { %6596 = vmatprep.subr.bf16.mxu1 %v7783_v22 }
 0x2aa   : > { %6597 = vmatpush3.bf16.msra.mxu1 %v7305_v6 }
 0x2ab   : > { %6598 = vmatprep.subr.bf16.mxu1 %v7783_v22 }
 0x2ae   : > { %6599 = vmatpush3.bf16.msra.mxu1 %v7307_v10 }
 0x2af   : > { %6600 = vmatprep.subr.bf16.mxu1 %v7783_v22 }
 0x2b2   : > { %6601 = vmatpush3.bf16.msra.mxu1 %v7309_v14 }
 0x2b3   : > { %6602 = vmatprep.subr.bf16.mxu1 %v7783_v22 }
 0x2b6   : > { %6603 = vmatpush3.bf16.msra.mxu1 %v7311_v18 }
 0x2b7   : > { %6628 = vmatprep.subr.bf16.mxu1 %v7783_v22 }
 0x321   : > { %v1543_v27 = vpop.f32.mrb[28].mxu0 }
 0x322   : > { %v1549_v46 = vadd.f32 %v1543_v27, %v8157_v56  ;;  %v6506_v48 = vpop.f32.mrb[29].mxu0 }
 0x323   : > { %v1546_v50 = vpop.f32.mrb[30].mxu0 }
 0x324   : > { %v6507_v52 = vpop.f32.mrb[31].mxu0  ;;  %v5709_v36 = vmul.f32 -1.442695, %v1549_v46 }
 0x326   : > { %7581 = vpow2.f32 %v5709_v36 }
 0x32c   : > { %v1421_v31 = vpop.f32.mrb[28].mxu1 }
 0x32d   : > { %v8398_v32 = vadd.f32 %v8395_v28, %v1421_v31  ;;  %v6486_v35 = vpop.f32.mrb[29].mxu1 }
 0x32e   : > { %v1424_v39 = vpop.f32.mrb[30].mxu1 }
 0x32f   : > { %1427 = vmax.xlane.f32.xlu0 %v8398_v32  ;;  %v6487_v40 = vpop.f32.mrb[31].mxu1  ;;  %v7317_v39 = vld [vmem:[%s9421_s4 + $0x48] ss:$16 sps:$4 sm:$0xff]  }
 0x330   : > { %v7582_v56 = vpop.eup %7581 }
 0x331   : > { %v1553_v43 = vadd.f32 1.0, %v7582_v56  ;;  %v7318_v56 = vld [vmem:[%s9421_s4 + $0x4] ss:$16 sps:$4 sm:$0xff]  }
 0x333   : > { %7583 = vrcp.f32 %v1553_v43 }
 0x33d   : > { %v7584_v58 = vpop.eup %7583 }
 0x341   : > { %v1765_v44 = vpop.f32.mrb[32].mxu0 }
 0x342   : > { %v1771_v47 = vadd.f32 %v1765_v44, %v8160_v57  ;;  %v6546_v49 = vpop.f32.mrb[33].mxu0  ;;  %v7319_v44 = vld [vmem:[%s9421_s4 + $0x68] ss:$16 sps:$4 sm:$0xff]  }
 0x343   : > { %v1768_v51 = vpop.f32.mrb[34].mxu0  ;;  %v7321_v49 = vld [vmem:[%s9421_s4 + $0x88] ss:$16 sps:$4 sm:$0xff]  }
 0x344   : > { %7585 = vtanh.f32 %v1771_v47  ;;  %v6547_v53 = vpop.f32.mrb[35].mxu0  ;;  %v7320_v47 = vld [vmem:[%s9421_s4 + $0x24] ss:$16 sps:$4 sm:$0xff]  }
 0x345   : > { %v7322_v51 = vld [vmem:[%s9421_s4 + $0x44] ss:$16 sps:$4 sm:$0xff]   ;;  %v7323_v53 = vld [vmem:[%s9421_s4 + $0xa8] ss:$16 sps:$4 sm:$0xff]  }
 0x34c   : > { %v1654_v55 = vpop.f32.mrb[32].mxu1 }
 0x34d   : > { %v1660_v59 = vadd.f32 %v1654_v55, %v8162_v60  ;;  %v6526_v63 = vpop.f32.mrb[33].mxu1  ;;  %v7324_v55 = vld [vmem:[%s9421_s4 + $0x64] ss:$16 sps:$4 sm:$0xff]  }
 0x34e   : > { %v7586_v2 = vpop.eup %7585  ;;  %v1657_v3 = vpop.f32.mrb[34].mxu1  ;;  %v7327_v63 = vld [vmem:[%s9421_s4 + $0xe8] ss:$16 sps:$4 sm:$0xff]  }
 0x34f   : > { %v1885_v6 = vmul.f32 %v7586_v2, %v7584_v58  ;;  %v5718_v7 = vmul.f32 -1.442695, %v1660_v59  ;;  %v6527_v10 = vpop.f32.mrb[35].mxu1  ;;  %v7325_v58 = vld [vmem:[%s9421_s4 + $0xc8] ss:$16 sps:$4 sm:$0xff]  }
 0x350   : > { %v7326_v59 = vld [vmem:[%s9421_s4 + $0x84] ss:$16 sps:$4 sm:$0xff]   ;;  %v7332_v10 = vld [vmem:[%s9421_s4 + $0x2c] ss:$16 sps:$4 sm:$0xff]  }
 0x351   : > { %7587 = vpow2.f32 %v5718_v7  ;;  %v7328_v2 = vld [vmem:[%s9421_s4 + $0xa4] ss:$16 sps:$4 sm:$0xff]   ;;  %v7331_v7 = vld [vmem:[%s9421_s4 + $0xc] ss:$16 sps:$4 sm:$0xff]  }
 0x352   : > { %v7329_v3 = vld [vmem:[%s9421_s4 + $0xc4] ss:$16 sps:$4 sm:$0xff]  }
 0x35b   : > { %v7588_v11 = vpop.eup %7587 }
 0x35c   : > { %v1664_v14 = vadd.f32 1.0, %v7588_v11  ;;  %v7333_v11 = vld [vmem:[%s9421_s4 + $0x4c] ss:$16 sps:$4 sm:$0xff]  }
 0x35e   : > { %7589 = vrcp.f32 %v1664_v14  ;;  %v7334_v14 = vld [vmem:[%s9421_s4 + $0x6c] ss:$16 sps:$4 sm:$0xff]  }
 0x368   : > { %v7590_v57 = vpop.eup %7589 }
 0x369   : > { %v1884_v15 = vmul.f32 %v7590_v57, %v8236_v62  ;;  %v7313_v62 = vld [vmem:[%s9421_s4 + $0x8] ss:$16 sps:$4 sm:$0xff]   ;;  %v7335_v57 = vld [vmem:[%s9421_s4 + $0x8c] ss:$16 sps:$4 sm:$0xff]  }
 0x36b   : > { %v8404_v18 = vadd.f32 %v1885_v6, %v1884_v15  ;;  %v7330_v6 = vld [vmem:[%s9421_s4 + $0xe4] ss:$16 sps:$4 sm:$0xff]   ;;  %v7336_v15 = vld [vmem:[%s9421_s4 + $0xac] ss:$16 sps:$4 sm:$0xff]  }
 0x36c   : > { %v1871_v19 = vpop.f32.mrb[36].mxu1 }
 0x36d   : > { %v1877_v23 = vadd.f32 %v1871_v19, %v8165_v61  ;;  %v6566_v24 = vpop.f32.mrb[37].mxu1  ;;  %v7315_v61 = vld [vmem:[%s9421_s4 + $0x28] ss:$16 sps:$4 sm:$0xff]   ;;  %v7337_v19 = vld [vmem:[%s9421_s4 + $0xcc] ss:$16 sps:$4 sm:$0xff]  }
 0x36e   : > { %v1874_v60 = vpop.f32.mrb[38].mxu1  ;;  %v7339_v24 = vld [vmem:[%s9421_s4] ss:$16 sps:$4 sm:$0xff]  }
 0x36f   : > { %v5735_v27 = vmul.f32 -1.442695, %v1877_v23  ;;  %v6567_v46 = vpop.f32.mrb[39].mxu1  ;;  %v7338_v23 = vld [vmem:[%s9421_s4 + $0xec] ss:$16 sps:$4 sm:$0xff]  }
 0x370   : > { %v7340_v60 = vld [vmem:[%s9421_s4 + $0x20] ss:$16 sps:$4 sm:$0xff]  }
 0x371   : > { %7591 = vpow2.f32 %v5735_v27  ;;  %v7341_v27 = vld [vmem:[%s9421_s4 + $0x40] ss:$16 sps:$4 sm:$0xff]  }
 0x372   : > { %7593 = vtanh.f32 %v8404_v18  ;;  %v7342_v46 = vld [vmem:[#allocation3] sm:$0xff]  }
 0x37b   : > { %v7592_v48 = vpop.eup %7591 }
 0x37c   : > { %v1881_v50 = vadd.f32 1.0, %v7592_v48  ;;  %v7594_v52 = vpop.eup %7593  ;;  %v7343_v48 = vld [vmem:[%s9421_s4 + $0x60] ss:$16 sps:$4 sm:$0xff]  }
 0x37e   : > { %7595 = vrcp.f32 %v1881_v50  ;;  %v7344_v50 = vld [vmem:[#allocation3 + $0x8] sm:$0xff]  }
 0x388   : > { %v7596_v31 = vpop.eup %7595 }
 0x389   : > { %v1888_v35 = vmul.f32 %v7596_v31, %v7594_v52  ;;  %v7345_v52 = vld [vmem:[%s9421_s4 + $0x80] ss:$16 sps:$4 sm:$0xff]  }
 0x38a   : > { %v7346_v31 = vld [vmem:[#allocation3 + $0x10] sm:$0xff]  }
 0x38b   : > { %v8411_v36 = vpack.c.bf16 %v1888_v35, %v1888_v35  ;;  %7597 = vtanh.f32 %v1888_v35  ;;  %v7347_v35 = vld [vmem:[%s9421_s4 + $0xa0] ss:$16 sps:$4 sm:$0xff]  }
 0x38d   : > { %6605 = vmatmul.mubr.bf16.vlgmr.msra.gmra.mrb[40].mxu1 %v8411_v36 }
 0x38e   : > { %6629 = vmatpush3.bf16.msra.mxu1 %v7313_v62  ;;  %6644 = vmatprep.mubr.msk.bf16.mxu1 %vm7784_vm2, %v7783_v22  ;;  %v7348_v62 = vld [vmem:[#allocation3 + $0x18] sm:$0xff]  }
 0x38f   : > { %6630 = vmatprep.subr.bf16.mxu1 %v7783_v22 }
 0x392   : > { %6631 = vmatpush3.bf16.msra.mxu1 %v7315_v61  ;;  %v7350_v61 = vld [vmem:[#allocation3 + $0x20] sm:$0xff]  }
 0x393   : > { %6632 = vmatprep.subr.bf16.mxu1 %v7783_v22 }
 0x395   : > { %v7598_v40 = vpop.eup %7597 }
 0x396   : > { %6633 = vmatpush3.bf16.msra.mxu1 %v7317_v39  ;;  %v1890_v43 = vpack.c.bf16 %v7598_v40, %v7598_v40  ;;  %v7351_v39 = vld [vmem:[%s9421_s4 + $0xe0] ss:$16 sps:$4 sm:$0xff]   ;;  %v7352_v40 = vld [vmem:[#allocation3 + $0x28] sm:$0xff]  }
 0x397   : > { %6634 = vmatprep.subr.bf16.mxu1 %v7783_v22 }
 0x398   : > { %6585 = vmatmul.mubr.bf16.vlgmr.msra.gmra.mrb[36].mxu0 %v1890_v43  ;;  %v7356_v43 = vld [vmem:[#allocation3 + $0x38] sm:$0xff]  }
 0x399   : > { %6609 = vmatpush3.bf16.msra.mxu0 %v7318_v56  ;;  %6624 = vmatprep.mubr.msk.bf16.mxu0 %vm7784_vm2, %v7783_v22  ;;  %v7354_v56 = vld [vmem:[#allocation3 + $0x30] sm:$0xff]  }
 0x39a   : > { %6635 = vmatpush3.bf16.msra.mxu1 %v7319_v44  ;;  %6610 = vmatprep.subr.bf16.mxu0 %v7783_v22 }
 0x39b   : > { %6636 = vmatprep.subr.bf16.mxu1 %v7783_v22 }
 0x39d   : > { %6611 = vmatpush3.bf16.msra.mxu0 %v7320_v47 }
 0x39e   : > { %6637 = vmatpush3.bf16.msra.mxu1 %v7321_v49  ;;  %6612 = vmatprep.subr.bf16.mxu0 %v7783_v22 }
 0x39f   : > { %6638 = vmatprep.subr.bf16.mxu1 %v7783_v22 }
 0x3a1   : > { %6613 = vmatpush3.bf16.msra.mxu0 %v7322_v51 }
 0x3a2   : > { %6639 = vmatpush3.bf16.msra.mxu1 %v7323_v53  ;;  %6614 = vmatprep.subr.bf16.mxu0 %v7783_v22 }
 0x3a3   : > { %6640 = vmatprep.subr.bf16.mxu1 %v7783_v22 }
 0x3a5   : > { %6615 = vmatpush3.bf16.msra.mxu0 %v7324_v55 }
 0x3a6   : > { %6641 = vmatpush3.bf16.msra.mxu1 %v7325_v58  ;;  %6616 = vmatprep.subr.bf16.mxu0 %v7783_v22 }
 0x3a7   : > { %6642 = vmatprep.subr.bf16.mxu1 %v7783_v22 }
 0x3a9   : > { %6617 = vmatpush3.bf16.msra.mxu0 %v7326_v59 }
 0x3aa   : > { %6643 = vmatpush3.bf16.msra.mxu1 %v7327_v63  ;;  %6618 = vmatprep.subr.bf16.mxu0 %v7783_v22 }
 0x3ab   : > { %6668 = vmatprep.subr.bf16.mxu1 %v7783_v22 }
 0x3ad   : > { %6619 = vmatpush3.bf16.msra.mxu0 %v7328_v2  ;;  %6645 = vmatmul.mubr.bf16.vlgmr.msra.gmra.mrb[44].mxu1 %v8411_v36 }
 0x3ae   : > { %6620 = vmatprep.subr.bf16.mxu0 %v7783_v22  ;;  %6684 = vmatprep.mubr.msk.bf16.mxu1 %vm7784_vm2, %v7783_v22 }
 0x3af   : > { %6669 = vmatpush3.bf16.msra.mxu1 %v7342_v46 }
 0x3b0   : > { %6670 = vmatprep.subr.bf16.mxu1 %v7783_v22 }
 0x3b1   : > { %6621 = vmatpush3.bf16.msra.mxu0 %v7329_v3 }
 0x3b2   : > { %6622 = vmatprep.subr.bf16.mxu0 %v7783_v22 }
 0x3b3   : > { %6671 = vmatpush3.bf16.msra.mxu1 %v7344_v50 }
 0x3b4   : > { %6672 = vmatprep.subr.bf16.mxu1 %v7783_v22 }
 0x3b5   : > { %6623 = vmatpush3.bf16.msra.mxu0 %v7330_v6 }
 0x3b6   : > { %6648 = vmatprep.subr.bf16.mxu0 %v7783_v22 }
 0x3b7   : > { %6673 = vmatpush3.bf16.msra.mxu1 %v7346_v31 }
 0x3b8   : > { %6625 = vmatmul.mubr.bf16.vlgmr.msra.gmra.mrb[40].mxu0 %v8411_v36  ;;  %6674 = vmatprep.subr.bf16.mxu1 %v7783_v22 }
 0x3b9   : > { %6649 = vmatpush3.bf16.msra.mxu0 %v7331_v7  ;;  %6664 = vmatprep.mubr.msk.bf16.mxu0 %vm7784_vm2, %v7783_v22 }
 0x3ba   : > { %6650 = vmatprep.subr.bf16.mxu0 %v7783_v22 }
 0x3bb   : > { %6675 = vmatpush3.bf16.msra.mxu1 %v7348_v62 }
 0x3bc   : > { %6676 = vmatprep.subr.bf16.mxu1 %v7783_v22 }
 0x3bd   : > { %6651 = vmatpush3.bf16.msra.mxu0 %v7332_v10 }
 0x3be   : > { %6652 = vmatprep.subr.bf16.mxu0 %v7783_v22 }
 0x3bf   : > { %6677 = vmatpush3.bf16.msra.mxu1 %v7350_v61 }
 0x3c0   : > { %6678 = vmatprep.subr.bf16.mxu1 %v7783_v22 }
 0x3c1   : > { %6653 = vmatpush3.bf16.msra.mxu0 %v7333_v11 }
 0x3c2   : > { %6654 = vmatprep.subr.bf16.mxu0 %v7783_v22 }
 0x3c3   : > { %6679 = vmatpush3.bf16.msra.mxu1 %v7352_v40 }
 0x3c4   : > { %6680 = vmatprep.subr.bf16.mxu1 %v7783_v22 }
 0x3c5   : > { %6655 = vmatpush3.bf16.msra.mxu0 %v7334_v14 }
 0x3c6   : > { %6656 = vmatprep.subr.bf16.mxu0 %v7783_v22 }
 0x3c7   : > { %6681 = vmatpush3.bf16.msra.mxu1 %v7354_v56 }
 0x3c8   : > { %6682 = vmatprep.subr.bf16.mxu1 %v7783_v22 }
 0x3c9   : > { %6657 = vmatpush3.bf16.msra.mxu0 %v7335_v57 }
 0x3ca   : > { %6658 = vmatprep.subr.bf16.mxu0 %v7783_v22 }
 0x3cb   : > { %6683 = vmatpush3.bf16.msra.mxu1 %v7356_v43 }
 0x3cc   : > { %6708 = vmatprep.subr.bf16.mxu1 %v7783_v22 }
 0x3cd   : > { %6659 = vmatpush3.bf16.msra.mxu0 %v7336_v15 }
 0x3ce   : > { %6660 = vmatprep.subr.bf16.mxu0 %v7783_v22 }
 0x3d1   : > { %6661 = vmatpush3.bf16.msra.mxu0 %v7337_v19 }
 0x3d2   : > { %6662 = vmatprep.subr.bf16.mxu0 %v7783_v22 }
 0x3d5   : > { %6663 = vmatpush3.bf16.msra.mxu0 %v7338_v23 }
 0x3d6   : > { %6688 = vmatprep.subr.bf16.mxu0 %v7783_v22 }
 0x3d8   : > { %6665 = vmatmul.mubr.bf16.vlgmr.msra.gmra.mrb[44].mxu0 %v8411_v36  ;;  %v7349_v36 = vld [vmem:[%s9421_s4 + $0xc0] ss:$16 sps:$4 sm:$0xff]  }
 0x3d9   : > { %6704 = vmatprep.mubr.msk.bf16.mxu0 %vm7784_vm2, %v7783_v22  ;;  %6689 = vmatpush3.bf16.msra.mxu0 %v7339_v24 }
 0x3da   : > { %6690 = vmatprep.subr.bf16.mxu0 %v7783_v22 }
 0x3dd   : > { %6691 = vmatpush3.bf16.msra.mxu0 %v7340_v60 }
 0x3de   : > { %6692 = vmatprep.subr.bf16.mxu0 %v7783_v22 }
 0x3e1   : > { %6693 = vmatpush3.bf16.msra.mxu0 %v7341_v27 }
 0x3e2   : > { %6694 = vmatprep.subr.bf16.mxu0 %v7783_v22 }
 0x3e5   : > { %6695 = vmatpush3.bf16.msra.mxu0 %v7343_v48 }
 0x3e6   : > { %6696 = vmatprep.subr.bf16.mxu0 %v7783_v22 }
 0x3e9   : > { %6697 = vmatpush3.bf16.msra.mxu0 %v7345_v52 }
 0x3ea   : > { %6698 = vmatprep.subr.bf16.mxu0 %v7783_v22 }
 0x3ed   : > { %6699 = vmatpush3.bf16.msra.mxu0 %v7347_v35 }
 0x3ee   : > { %6700 = vmatprep.subr.bf16.mxu0 %v7783_v22 }
 0x3f1   : > { %6701 = vmatpush3.bf16.msra.mxu0 %v7349_v36 }
 0x3f2   : > { %6702 = vmatprep.subr.bf16.mxu0 %v7783_v22 }
 0x3f5   : > { %6703 = vmatpush3.bf16.msra.mxu0 %v7351_v39 }
 0x3f6   : > { %6728 = vmatprep.subr.bf16.mxu0 %v7783_v22 }
 0x460   : > { %v2118_v44 = vpop.f32.mrb[40].mxu1 }
 0x461   : > { %v2124_v47 = vadd.f32 %v2118_v44, %v8167_v0  ;;  %v6606_v49 = vpop.f32.mrb[41].mxu1 }
 0x462   : > { %v2121_v51 = vpop.f32.mrb[42].mxu1 }
 0x463   : > { %v6607_v53 = vpop.f32.mrb[43].mxu1  ;;  %v5753_v63 = vmul.f32 -1.442695, %v2124_v47 }
 0x464   : > { %v7357_v53 = vld [vmem:[%s9421_s4 + $0x48] ss:$16 sps:$4 sm:$0xff]  }
 0x465   : > { %7599 = vpow2.f32 %v5753_v63 }
 0x46b   : > { %v1996_v55 = vpop.f32.mrb[36].mxu0 }
 0x46c   : > { %v8562_v58 = vadd.f32 %v8395_v28, %v1996_v55  ;;  %v6586_v59 = vpop.f32.mrb[37].mxu0 }
 0x46d   : > { %v1999_v2 = vpop.f32.mrb[38].mxu0  ;;  %v7358_v59 = vld [vmem:[%s9421_s4 + $0x4] ss:$16 sps:$4 sm:$0xff]  }
 0x46e   : > { %2002 = vmax.xlane.f32.xlu0 %v8562_v58  ;;  %v6587_v3 = vpop.f32.mrb[39].mxu0  ;;  %v7359_v2 = vld [vmem:[%s9421_s4 + $0x68] ss:$16 sps:$4 sm:$0xff]  }
 0x46f   : > { %v7600_v6 = vpop.eup %7599  ;;  %v7360_v3 = vld [vmem:[%s9421_s4 + $0x24] ss:$16 sps:$4 sm:$0xff]  }
 0x470   : > { %v2128_v7 = vadd.f32 1.0, %v7600_v6  ;;  %v7361_v6 = vld [vmem:[%s9421_s4 + $0x88] ss:$16 sps:$4 sm:$0xff]  }
 0x472   : > { %7601 = vrcp.f32 %v2128_v7  ;;  %v7362_v7 = vld [vmem:[%s9421_s4 + $0x44] ss:$16 sps:$4 sm:$0xff]  }
 0x47c   : > { %v7602_v28 = vpop.eup %7601 }
 0x480   : > { %v2340_v10 = vpop.f32.mrb[44].mxu1 }
 0x481   : > { %v2346_v11 = vadd.f32 %v2340_v10, %v8170_v1  ;;  %v6646_v0 = vpop.f32.mrb[45].mxu1  ;;  %v7363_v10 = vld [vmem:[%s9421_s4 + $0xa8] ss:$16 sps:$4 sm:$0xff]  }
 0x482   : > { %v2343_v14 = vpop.f32.mrb[46].mxu1  ;;  %v7365_v0 = vld [vmem:[%s9421_s4 + $0xc8] ss:$16 sps:$4 sm:$0xff]  }
 0x483   : > { %7603 = vtanh.f32 %v2346_v11  ;;  %v6647_v57 = vpop.f32.mrb[47].mxu1  ;;  %v7364_v11 = vld [vmem:[%s9421_s4 + $0x64] ss:$16 sps:$4 sm:$0xff]  }
 0x484   : > { %v7366_v14 = vld [vmem:[%s9421_s4 + $0x84] ss:$16 sps:$4 sm:$0xff]   ;;  %v7367_v57 = vld [vmem:[%s9421_s4 + $0xe8] ss:$16 sps:$4 sm:$0xff]  }
 0x48b   : > { %v2229_v15 = vpop.f32.mrb[40].mxu0 }
 0x48c   : > { %v2235_v19 = vadd.f32 %v2229_v15, %v8172_v4  ;;  %v6626_v23 = vpop.f32.mrb[41].mxu0  ;;  %v7368_v15 = vld [vmem:[%s9421_s4 + $0xa4] ss:$16 sps:$4 sm:$0xff]  }
 0x48d   : > { %v7604_v24 = vpop.eup %7603  ;;  %v2232_v60 = vpop.f32.mrb[42].mxu0  ;;  %v7371_v23 = vld [vmem:[%s9421_s4 + $0xc] ss:$16 sps:$4 sm:$0xff]  }
 0x48e   : > { %v2460_v27 = vmul.f32 %v7604_v24, %v7602_v28  ;;  %v5762_v46 = vmul.f32 -1.442695, %v2235_v19  ;;  %v6627_v48 = vpop.f32.mrb[43].mxu0  ;;  %v7369_v28 = vld [vmem:[%s9421_s4 + $0xc4] ss:$16 sps:$4 sm:$0xff]  }
 0x48f   : > { %v7370_v19 = vld [vmem:[%s9421_s4 + $0xe4] ss:$16 sps:$4 sm:$0xff]   ;;  %v7372_v24 = vld [vmem:[%s9421_s4 + $0x2c] ss:$16 sps:$4 sm:$0xff]  }
 0x490   : > { %7605 = vpow2.f32 %v5762_v46  ;;  %v7373_v60 = vld [vmem:[%s9421_s4 + $0x4c] ss:$16 sps:$4 sm:$0xff]  }
 0x491   : > { %v7375_v46 = vld [vmem:[%s9421_s4 + $0x8c] ss:$16 sps:$4 sm:$0xff]  }
 0x492   : > { %v7376_v48 = vld [vmem:[%s9421_s4 + $0xac] ss:$16 sps:$4 sm:$0xff]  }
 0x49a   : > { %v7606_v50 = vpop.eup %7605 }
 0x49b   : > { %v2239_v52 = vadd.f32 1.0, %v7606_v50  ;;  %v7377_v50 = vld [vmem:[%s9421_s4 + $0xcc] ss:$16 sps:$4 sm:$0xff]  }
 0x49d   : > { %7607 = vrcp.f32 %v2239_v52  ;;  %v7378_v52 = vld [vmem:[%s9421_s4 + $0xec] ss:$16 sps:$4 sm:$0xff]  }
 0x4a7   : > { %v7608_v1 = vpop.eup %7607 }
 0x4a8   : > { %v2459_v31 = vmul.f32 %v7608_v1, %v8404_v18  ;;  %v7353_v18 = vld [vmem:[%s9421_s4 + $0x8] ss:$16 sps:$4 sm:$0xff]   ;;  %v7379_v1 = vld [vmem:[%s9421_s4] ss:$16 sps:$4 sm:$0xff]  }
 0x4aa   : > { %v8568_v35 = vadd.f32 %v2460_v27, %v2459_v31  ;;  %v7374_v27 = vld [vmem:[%s9421_s4 + $0x6c] ss:$16 sps:$4 sm:$0xff]   ;;  %v7380_v31 = vld [vmem:[%s9421_s4 + $0x20] ss:$16 sps:$4 sm:$0xff]  }
 0x4ab   : > { %v2446_v62 = vpop.f32.mrb[44].mxu0 }
 0x4ac   : > { %v2452_v36 = vadd.f32 %v2446_v62, %v8175_v5  ;;  %v6666_v61 = vpop.f32.mrb[45].mxu0  ;;  %v7355_v5 = vld [vmem:[%s9421_s4 + $0x28] ss:$16 sps:$4 sm:$0xff]   ;;  %v7381_v62 = vld [vmem:[%s9421_s4 + $0x40] ss:$16 sps:$4 sm:$0xff]  }
 0x4ad   : > { %v2449_v4 = vpop.f32.mrb[46].mxu0  ;;  %v7383_v61 = vld [vmem:[%s9421_s4 + $0x60] ss:$16 sps:$4 sm:$0xff]  }
 0x4ae   : > { %v5779_v39 = vmul.f32 -1.442695, %v2452_v36  ;;  %v6667_v40 = vpop.f32.mrb[47].mxu0  ;;  %v7382_v36 = vld [vmem:[#allocation3] sm:$0xff]   ;;  %v7384_v4 = vld [vmem:[#allocation3 + $0x8] sm:$0xff]  }
 0x4af   : > { %v7386_v40 = vld [vmem:[#allocation3 + $0x10] sm:$0xff]  }
 0x4b0   : > { %7609 = vpow2.f32 %v5779_v39  ;;  %v7385_v39 = vld [vmem:[%s9421_s4 + $0x80] ss:$16 sps:$4 sm:$0xff]  }
 0x4b1   : > { %7611 = vtanh.f32 %v8568_v35 }
 0x4ba   : > { %v7610_v56 = vpop.eup %7609 }
 0x4bb   : > { %v2456_v43 = vadd.f32 1.0, %v7610_v56  ;;  %v7612_v44 = vpop.eup %7611  ;;  %v7387_v56 = vld [vmem:[%s9421_s4 + $0xa0] ss:$16 sps:$4 sm:$0xff]  }
 0x4bd   : > { %7613 = vrcp.f32 %v2456_v43  ;;  %v7388_v43 = vld [vmem:[#allocation3 + $0x18] sm:$0xff]  }
 0x4c7   : > { %v7614_v47 = vpop.eup %7613 }
 0x4c8   : > { %v2463_v49 = vmul.f32 %v7614_v47, %v7612_v44  ;;  %v7389_v44 = vld [vmem:[%s9421_s4 + $0xc0] ss:$16 sps:$4 sm:$0xff]  }
 0x4c9   : > { %v7390_v47 = vld [vmem:[#allocation3 + $0x20] sm:$0xff]  }
 0x4ca   : > { %v8575_v51 = vpack.c.bf16 %v2463_v49, %v2463_v49  ;;  %7615 = vtanh.f32 %v2463_v49  ;;  %v7391_v49 = vld [vmem:[%s9421_s4 + $0xe0] ss:$16 sps:$4 sm:$0xff]  }
 0x4cc   : > { %6705 = vmatmul.mubr.bf16.vlgmr.msra.gmra.mrb[48].mxu0 %v8575_v51 }
 0x4cd   : > { %6729 = vmatpush3.bf16.msra.mxu0 %v7353_v18  ;;  %6744 = vmatprep.mubr.msk.bf16.mxu0 %vm7784_vm2, %v7783_v22  ;;  %v7392_v18 = vld [vmem:[#allocation3 + $0x28] sm:$0xff]  }
 0x4ce   : > { %6730 = vmatprep.subr.bf16.mxu0 %v7783_v22 }
 0x4d1   : > { %6731 = vmatpush3.bf16.msra.mxu0 %v7355_v5  ;;  %v7396_v5 = vld [vmem:[#allocation3 + $0x38] sm:$0xff]  }
 0x4d2   : > { %6732 = vmatprep.subr.bf16.mxu0 %v7783_v22 }
 0x4d4   : > { %v7616_v55 = vpop.eup %7615 }
 0x4d5   : > { %6733 = vmatpush3.bf16.msra.mxu0 %v7357_v53  ;;  %v2465_v63 = vpack.c.bf16 %v7616_v55, %v7616_v55 }
 0x4d6   : > { %6734 = vmatprep.subr.bf16.mxu0 %v7783_v22 }
 0x4d7   : > { %6685 = vmatmul.mubr.bf16.vlgmr.msra.gmra.mrb[48].mxu1 %v2465_v63 }
 0x4d8   : > { %6709 = vmatpush3.bf16.msra.mxu1 %v7358_v59  ;;  %6724 = vmatprep.mubr.msk.bf16.mxu1 %vm7784_vm2, %v7783_v22 }
 0x4d9   : > { %6735 = vmatpush3.bf16.msra.mxu0 %v7359_v2  ;;  %6710 = vmatprep.subr.bf16.mxu1 %v7783_v22 }
 0x4da   : > { %6736 = vmatprep.subr.bf16.mxu0 %v7783_v22 }
 0x4dc   : > { %6711 = vmatpush3.bf16.msra.mxu1 %v7360_v3  ;;  %v8728_v3 = vld [vmem:[%s9426_s9] ss:$0 sm:$0xff] }
 0x4dd   : > { %6737 = vmatpush3.bf16.msra.mxu0 %v7361_v6  ;;  %6712 = vmatprep.subr.bf16.mxu1 %v7783_v22 }
 0x4de   : > { %6738 = vmatprep.subr.bf16.mxu0 %v7783_v22 }
 0x4e0   : > { %6713 = vmatpush3.bf16.msra.mxu1 %v7362_v7 }
 0x4e1   : > { %6739 = vmatpush3.bf16.msra.mxu0 %v7363_v10  ;;  %6714 = vmatprep.subr.bf16.mxu1 %v7783_v22 }
 0x4e2   : > { %6740 = vmatprep.subr.bf16.mxu0 %v7783_v22 }
 0x4e4   : > { %6715 = vmatpush3.bf16.msra.mxu1 %v7364_v11 }
 0x4e5   : > { %6741 = vmatpush3.bf16.msra.mxu0 %v7365_v0  ;;  %6716 = vmatprep.subr.bf16.mxu1 %v7783_v22 }
 0x4e6   : > { %6742 = vmatprep.subr.bf16.mxu0 %v7783_v22 }
 0x4e8   : > { %6717 = vmatpush3.bf16.msra.mxu1 %v7366_v14 }
 0x4e9   : > { %6743 = vmatpush3.bf16.msra.mxu0 %v7367_v57  ;;  %6718 = vmatprep.subr.bf16.mxu1 %v7783_v22 }
 0x4ea   : > { %6768 = vmatprep.subr.bf16.mxu0 %v7783_v22 }
 0x4ec   : > { %6719 = vmatpush3.bf16.msra.mxu1 %v7368_v15  ;;  %6745 = vmatmul.mubr.bf16.vlgmr.msra.gmra.mrb[52].mxu0 %v8575_v51 }
 0x4ed   : > { %6720 = vmatprep.subr.bf16.mxu1 %v7783_v22  ;;  %6784 = vmatprep.mubr.msk.bf16.mxu0 %vm7784_vm2, %v7783_v22 }
 0x4ee   : > { %6769 = vmatpush3.bf16.msra.mxu0 %v7382_v36 }
 0x4ef   : > { %6770 = vmatprep.subr.bf16.mxu0 %v7783_v22 }
 0x4f0   : > { %6721 = vmatpush3.bf16.msra.mxu1 %v7369_v28 }
 0x4f1   : > { %6722 = vmatprep.subr.bf16.mxu1 %v7783_v22 }
 0x4f2   : > { %6771 = vmatpush3.bf16.msra.mxu0 %v7384_v4 }
 0x4f3   : > { %6772 = vmatprep.subr.bf16.mxu0 %v7783_v22 }
 0x4f4   : > { %6723 = vmatpush3.bf16.msra.mxu1 %v7370_v19 }
 0x4f5   : > { %6748 = vmatprep.subr.bf16.mxu1 %v7783_v22 }
 0x4f6   : > { %6773 = vmatpush3.bf16.msra.mxu0 %v7386_v40 }
 0x4f7   : > { %6725 = vmatmul.mubr.bf16.vlgmr.msra.gmra.mrb[52].mxu1 %v8575_v51  ;;  %6774 = vmatprep.subr.bf16.mxu0 %v7783_v22 }
 0x4f8   : > { %6749 = vmatpush3.bf16.msra.mxu1 %v7371_v23  ;;  %6764 = vmatprep.mubr.msk.bf16.mxu1 %vm7784_vm2, %v7783_v22 }
 0x4f9   : > { %6750 = vmatprep.subr.bf16.mxu1 %v7783_v22 }
 0x4fa   : > { %6775 = vmatpush3.bf16.msra.mxu0 %v7388_v43 }
 0x4fb   : > { %6776 = vmatprep.subr.bf16.mxu0 %v7783_v22 }
 0x4fc   : > { %6751 = vmatpush3.bf16.msra.mxu1 %v7372_v24 }
 0x4fd   : > { %6752 = vmatprep.subr.bf16.mxu1 %v7783_v22 }
 0x4fe   : > { %6777 = vmatpush3.bf16.msra.mxu0 %v7390_v47 }
 0x4ff   : > { %6778 = vmatprep.subr.bf16.mxu0 %v7783_v22 }
 0x500   : > { %6753 = vmatpush3.bf16.msra.mxu1 %v7373_v60 }
 0x501   : > { %6754 = vmatprep.subr.bf16.mxu1 %v7783_v22 }
 0x502   : > { %6779 = vmatpush3.bf16.msra.mxu0 %v7392_v18 }
 0x503   : > { %6780 = vmatprep.subr.bf16.mxu0 %v7783_v22 }
 0x504   : > { %6755 = vmatpush3.bf16.msra.mxu1 %v7374_v27 }
 0x505   : > { %6756 = vmatprep.subr.bf16.mxu1 %v7783_v22 }
 0x508   : > { %6757 = vmatpush3.bf16.msra.mxu1 %v7375_v46 }
 0x509   : > { %6758 = vmatprep.subr.bf16.mxu1 %v7783_v22 }
 0x50c   : > { %6759 = vmatpush3.bf16.msra.mxu1 %v7376_v48 }
 0x50d   : > { %6760 = vmatprep.subr.bf16.mxu1 %v7783_v22 }
 0x510   : > { %6761 = vmatpush3.bf16.msra.mxu1 %v7377_v50 }
 0x511   : > { %6762 = vmatprep.subr.bf16.mxu1 %v7783_v22 }
 0x514   : > { %6763 = vmatpush3.bf16.msra.mxu1 %v7378_v52 }
 0x515   : > { %6788 = vmatprep.subr.bf16.mxu1 %v7783_v22 }
 0x517   : > { %6765 = vmatmul.mubr.bf16.vlgmr.msra.gmra.mrb[56].mxu1 %v8575_v51  ;;  %v7394_v51 = vld [vmem:[#allocation3 + $0x30] sm:$0xff]  }
 0x518   : > { %6804 = vmatprep.mubr.msk.bf16.mxu1 %vm7784_vm2, %v7783_v22  ;;  %6789 = vmatpush3.bf16.msra.mxu1 %v7379_v1 }
 0x519   : > { %6790 = vmatprep.subr.bf16.mxu1 %v7783_v22  ;;  %6781 = vmatpush3.bf16.msra.mxu0 %v7394_v51 }
 0x51a   : > { %6782 = vmatprep.subr.bf16.mxu0 %v7783_v22 }
 0x51c   : > { %6791 = vmatpush3.bf16.msra.mxu1 %v7380_v31 }
 0x51d   : > { %6792 = vmatprep.subr.bf16.mxu1 %v7783_v22  ;;  %6783 = vmatpush3.bf16.msra.mxu0 %v7396_v5 }
 0x51e   : > { %6808 = vmatprep.subr.bf16.mxu0 %v7783_v22 }
 0x520   : > { %6793 = vmatpush3.bf16.msra.mxu1 %v7381_v62 }
 0x521   : > { %6794 = vmatprep.subr.bf16.mxu1 %v7783_v22 }
 0x524   : > { %6795 = vmatpush3.bf16.msra.mxu1 %v7383_v61 }
 0x525   : > { %6796 = vmatprep.subr.bf16.mxu1 %v7783_v22 }
 0x528   : > { %6797 = vmatpush3.bf16.msra.mxu1 %v7385_v39 }
 0x529   : > { %6798 = vmatprep.subr.bf16.mxu1 %v7783_v22 }
 0x52c   : > { %6799 = vmatpush3.bf16.msra.mxu1 %v7387_v56 }
 0x52d   : > { %6800 = vmatprep.subr.bf16.mxu1 %v7783_v22 }
 0x530   : > { %6801 = vmatpush3.bf16.msra.mxu1 %v7389_v44 }
 0x531   : > { %6802 = vmatprep.subr.bf16.mxu1 %v7783_v22 }
 0x534   : > { %6803 = vmatpush3.bf16.msra.mxu1 %v7391_v49 }
 0x535   : > { %6828 = vmatprep.subr.bf16.mxu1 %v7783_v22 }
 0x59f   : > { %v2693_v53 = vpop.f32.mrb[48].mxu0 }
 0x5a0   : > { %v2699_v55 = vadd.f32 %v2693_v53, %v8177_v8  ;;  %v6706_v59 = vpop.f32.mrb[49].mxu0 }
 0x5a1   : > { %v2696_v63 = vpop.f32.mrb[50].mxu0  ;;  %v7397_v59 = vld [vmem:[%s9421_s4 + $0x48] ss:$16 sps:$4 sm:$0xff]  }
 0x5a2   : > { %v6707_v2 = vpop.f32.mrb[51].mxu0  ;;  %v5797_v11 = vmul.f32 -1.442695, %v2699_v55 }
 0x5a3   : > { %v7398_v2 = vld [vmem:[%s9421_s4 + $0x4] ss:$16 sps:$4 sm:$0xff]  }
 0x5a4   : > { %7617 = vpow2.f32 %v5797_v11  ;;  %v7400_v11 = vld [vmem:[%s9421_s4 + $0x24] ss:$16 sps:$4 sm:$0xff]  }
 0x5aa   : > { %v2571_v6 = vpop.f32.mrb[48].mxu1 }
 0x5ab   : > { %v8731_v7 = vadd.f32 %v8728_v3, %v2571_v6  ;;  %v6686_v10 = vpop.f32.mrb[49].mxu1 }
 0x5ac   : > { %v2574_v0 = vpop.f32.mrb[50].mxu1  ;;  %v7399_v10 = vld [vmem:[%s9421_s4 + $0x68] ss:$16 sps:$4 sm:$0xff]  }
 0x5ad   : > { %2577 = vmax.xlane.f32.xlu1 %v8731_v7  ;;  %v6687_v14 = vpop.f32.mrb[51].mxu1  ;;  %v7401_v0 = vld [vmem:[%s9421_s4 + $0x88] ss:$16 sps:$4 sm:$0xff]  }
 0x5ae   : > { %v7618_v8 = vpop.eup %7617  ;;  %v7402_v14 = vld [vmem:[%s9421_s4 + $0x44] ss:$16 sps:$4 sm:$0xff]  }
 0x5af   : > { %v2703_v57 = vadd.f32 1.0, %v7618_v8  ;;  %v7403_v8 = vld [vmem:[%s9421_s4 + $0xa8] ss:$16 sps:$4 sm:$0xff]  }
 0x5b1   : > { %7619 = vrcp.f32 %v2703_v57  ;;  %v7404_v57 = vld [vmem:[%s9421_s4 + $0x64] ss:$16 sps:$4 sm:$0xff]  }
 0x5bb   : > { %v7620_v27 = vpop.eup %7619 }
 0x5bf   : > { %v2915_v15 = vpop.f32.mrb[52].mxu0 }
 0x5c0   : > { %v2921_v28 = vadd.f32 %v2915_v15, %v8180_v9  ;;  %v6746_v19 = vpop.f32.mrb[53].mxu0  ;;  %v7405_v15 = vld [vmem:[%s9421_s4 + $0xc8] ss:$16 sps:$4 sm:$0xff]  }
 0x5c1   : > { %v2918_v23 = vpop.f32.mrb[54].mxu0  ;;  %v7407_v19 = vld [vmem:[%s9421_s4 + $0xe8] ss:$16 sps:$4 sm:$0xff]  }
 0x5c2   : > { %7621 = vtanh.f32 %v2921_v28  ;;  %v6747_v24 = vpop.f32.mrb[55].mxu0  ;;  %v7406_v28 = vld [vmem:[%s9421_s4 + $0x84] ss:$16 sps:$4 sm:$0xff]  }
 0x5c3   : > { %v7408_v23 = vld [vmem:[%s9421_s4 + $0xa4] ss:$16 sps:$4 sm:$0xff]  }
 0x5c4   : > { %v7409_v24 = vld [vmem:[%s9421_s4 + $0xc4] ss:$16 sps:$4 sm:$0xff]  }
 0x5ca   : > { %v2804_v60 = vpop.f32.mrb[52].mxu1 }
 0x5cb   : > { %v2810_v46 = vadd.f32 %v2804_v60, %v8182_v12  ;;  %v6726_v48 = vpop.f32.mrb[53].mxu1  ;;  %v7410_v60 = vld [vmem:[%s9421_s4 + $0xe4] ss:$16 sps:$4 sm:$0xff]  }
 0x5cc   : > { %v7622_v50 = vpop.eup %7621  ;;  %v2807_v52 = vpop.f32.mrb[54].mxu1  ;;  %v7413_v48 = vld [vmem:[%s9421_s4 + $0x4c] ss:$16 sps:$4 sm:$0xff]  }
 0x5cd   : > { %v3035_v1 = vmul.f32 %v7622_v50, %v7620_v27  ;;  %v5806_v31 = vmul.f32 -1.442695, %v2810_v46  ;;  %v6727_v62 = vpop.f32.mrb[55].mxu1  ;;  %v7411_v27 = vld [vmem:[%s9421_s4 + $0xc] ss:$16 sps:$4 sm:$0xff]  }
 0x5ce   : > { %v7412_v46 = vld [vmem:[%s9421_s4 + $0x2c] ss:$16 sps:$4 sm:$0xff]  }
 0x5cf   : > { %7623 = vpow2.f32 %v5806_v31  ;;  %v7414_v50 = vld [vmem:[%s9421_s4 + $0x6c] ss:$16 sps:$4 sm:$0xff]  }
 0x5d0   : > { %v7415_v52 = vld [vmem:[%s9421_s4 + $0x8c] ss:$16 sps:$4 sm:$0xff]  }
 0x5d1   : > { %v7417_v31 = vld [vmem:[%s9421_s4 + $0xcc] ss:$16 sps:$4 sm:$0xff]  }
 0x5d2   : > { %v7418_v62 = vld [vmem:[%s9421_s4 + $0xec] ss:$16 sps:$4 sm:$0xff]  }
 0x5d9   : > { %v7624_v36 = vpop.eup %7623 }
 0x5da   : > { %v2814_v61 = vadd.f32 1.0, %v7624_v36  ;;  %v7419_v36 = vld [vmem:[%s9421_s4] ss:$16 sps:$4 sm:$0xff]  }
 0x5dc   : > { %7625 = vrcp.f32 %v2814_v61  ;;  %v7420_v61 = vld [vmem:[%s9421_s4 + $0x20] ss:$16 sps:$4 sm:$0xff]  }
 0x5e6   : > { %v7626_v9 = vpop.eup %7625 }
 0x5e7   : > { %v3034_v4 = vmul.f32 %v7626_v9, %v8568_v35  ;;  %v7393_v35 = vld [vmem:[%s9421_s4 + $0x8] ss:$16 sps:$4 sm:$0xff]   ;;  %v7421_v9 = vld [vmem:[%s9421_s4 + $0x40] ss:$16 sps:$4 sm:$0xff]  }
 0x5e9   : > { %v8737_v39 = vadd.f32 %v3035_v1, %v3034_v4  ;;  %v7416_v1 = vld [vmem:[%s9421_s4 + $0xac] ss:$16 sps:$4 sm:$0xff]   ;;  %v7422_v4 = vld [vmem:[#allocation3] sm:$0xff]  }
 0x5ea   : > { %v3021_v40 = vpop.f32.mrb[56].mxu1 }
 0x5eb   : > { %v3027_v56 = vadd.f32 %v3021_v40, %v8185_v13  ;;  %v6766_v43 = vpop.f32.mrb[57].mxu1  ;;  %v7395_v13 = vld [vmem:[%s9421_s4 + $0x28] ss:$16 sps:$4 sm:$0xff]   ;;  %v7423_v40 = vld [vmem:[%s9421_s4 + $0x60] ss:$16 sps:$4 sm:$0xff]  }
 0x5ec   : > { %v3024_v12 = vpop.f32.mrb[58].mxu1  ;;  %v7425_v43 = vld [vmem:[%s9421_s4 + $0x80] ss:$16 sps:$4 sm:$0xff]  }
 0x5ed   : > { %v5823_v44 = vmul.f32 -1.442695, %v3027_v56  ;;  %v6767_v47 = vpop.f32.mrb[59].mxu1  ;;  %v7424_v56 = vld [vmem:[#allocation3 + $0x8] sm:$0xff]   ;;  %v7426_v12 = vld [vmem:[#allocation3 + $0x10] sm:$0xff]  }
 0x5ee   : > { %v7428_v47 = vld [vmem:[#allocation3 + $0x18] sm:$0xff]  }
 0x5ef   : > { %7627 = vpow2.f32 %v5823_v44  ;;  %v7427_v44 = vld [vmem:[%s9421_s4 + $0xa0] ss:$16 sps:$4 sm:$0xff]  }
 0x5f0   : > { %7629 = vtanh.f32 %v8737_v39 }
 0x5f9   : > { %v7628_v49 = vpop.eup %7627 }
 0x5fa   : > { %v3031_v18 = vadd.f32 1.0, %v7628_v49  ;;  %v7630_v51 = vpop.eup %7629  ;;  %v7429_v49 = vld [vmem:[%s9421_s4 + $0xc0] ss:$16 sps:$4 sm:$0xff]  }
 0x5fc   : > { %7631 = vrcp.f32 %v3031_v18  ;;  %v7430_v18 = vld [vmem:[#allocation3 + $0x20] sm:$0xff]  }
 0x606   : > { %v7632_v5 = vpop.eup %7631 }
 0x607   : > { %v3038_v53 = vmul.f32 %v7632_v5, %v7630_v51  ;;  %v7431_v51 = vld [vmem:[%s9421_s4 + $0xe0] ss:$16 sps:$4 sm:$0xff]   ;;  %v7432_v5 = vld [vmem:[#allocation3 + $0x28] sm:$0xff]  }
 0x609   : > { %v8744_v55 = vpack.c.bf16 %v3038_v53, %v3038_v53  ;;  %7633 = vtanh.f32 %v3038_v53  ;;  %v7434_v53 = vld [vmem:[#allocation3 + $0x30] sm:$0xff]  }
 0x60b   : > { %6805 = vmatmul.mubr.bf16.vlgmr.msra.gmra.mrb[60].mxu1 %v8744_v55 }
 0x60c   : > { %6829 = vmatpush3.bf16.msra.mxu1 %v7393_v35  ;;  %6844 = vmatprep.mubr.msk.bf16.mxu1 %vm7784_vm2, %v7783_v22  ;;  %v7436_v35 = vld [vmem:[#allocation3 + $0x38] sm:$0xff]  }
 0x60d   : > { %6830 = vmatprep.subr.bf16.mxu1 %v7783_v22 }
 0x610   : > { %6831 = vmatpush3.bf16.msra.mxu1 %v7395_v13 }
 0x611   : > { %6832 = vmatprep.subr.bf16.mxu1 %v7783_v22 }
 0x613   : > { %v7634_v63 = vpop.eup %7633 }
 0x614   : > { %6833 = vmatpush3.bf16.msra.mxu1 %v7397_v59  ;;  %v3040_v6 = vpack.c.bf16 %v7634_v63, %v7634_v63 }
 0x615   : > { %6834 = vmatprep.subr.bf16.mxu1 %v7783_v22 }
 0x616   : > { %6785 = vmatmul.mubr.bf16.vlgmr.msra.gmra.mrb[56].mxu0 %v3040_v6 }
 0x617   : > { %6809 = vmatpush3.bf16.msra.mxu0 %v7398_v2  ;;  %6824 = vmatprep.mubr.msk.bf16.mxu0 %vm7784_vm2, %v7783_v22 }
 0x618   : > { %6835 = vmatpush3.bf16.msra.mxu1 %v7399_v10  ;;  %6810 = vmatprep.subr.bf16.mxu0 %v7783_v22 }
 0x619   : > { %6836 = vmatprep.subr.bf16.mxu1 %v7783_v22 }
 0x61b   : > { %6811 = vmatpush3.bf16.msra.mxu0 %v7400_v11 }
 0x61c   : > { %6837 = vmatpush3.bf16.msra.mxu1 %v7401_v0  ;;  %6812 = vmatprep.subr.bf16.mxu0 %v7783_v22 }
 0x61d   : > { %6838 = vmatprep.subr.bf16.mxu1 %v7783_v22 }
 0x61f   : > { %6813 = vmatpush3.bf16.msra.mxu0 %v7402_v14 }
 0x620   : > { %6839 = vmatpush3.bf16.msra.mxu1 %v7403_v8  ;;  %6814 = vmatprep.subr.bf16.mxu0 %v7783_v22 }
 0x621   : > { %6840 = vmatprep.subr.bf16.mxu1 %v7783_v22 }
 0x623   : > { %6815 = vmatpush3.bf16.msra.mxu0 %v7404_v57 }
 0x624   : > { %6841 = vmatpush3.bf16.msra.mxu1 %v7405_v15  ;;  %6816 = vmatprep.subr.bf16.mxu0 %v7783_v22 }
 0x625   : > { %6842 = vmatprep.subr.bf16.mxu1 %v7783_v22 }
 0x627   : > { %6817 = vmatpush3.bf16.msra.mxu0 %v7406_v28 }
 0x628   : > { %6843 = vmatpush3.bf16.msra.mxu1 %v7407_v19  ;;  %6818 = vmatprep.subr.bf16.mxu0 %v7783_v22 }
 0x629   : > { %6868 = vmatprep.subr.bf16.mxu1 %v7783_v22 }
 0x62b   : > { %6819 = vmatpush3.bf16.msra.mxu0 %v7408_v23  ;;  %6845 = vmatmul.mubr.bf16.vlgmr.msra.gmra.mrb[64].mxu1 %v8744_v55 }
 0x62c   : > { %6820 = vmatprep.subr.bf16.mxu0 %v7783_v22  ;;  %6884 = vmatprep.mubr.msk.bf16.mxu1 %vm7784_vm2, %v7783_v22 }
 0x62d   : > { %6869 = vmatpush3.bf16.msra.mxu1 %v7422_v4 }
 0x62e   : > { %6870 = vmatprep.subr.bf16.mxu1 %v7783_v22 }
 0x62f   : > { %6821 = vmatpush3.bf16.msra.mxu0 %v7409_v24 }
 0x630   : > { %6822 = vmatprep.subr.bf16.mxu0 %v7783_v22 }
 0x631   : > { %6871 = vmatpush3.bf16.msra.mxu1 %v7424_v56 }
 0x632   : > { %6872 = vmatprep.subr.bf16.mxu1 %v7783_v22 }
 0x633   : > { %6823 = vmatpush3.bf16.msra.mxu0 %v7410_v60 }
 0x634   : > { %6848 = vmatprep.subr.bf16.mxu0 %v7783_v22 }
 0x635   : > { %6873 = vmatpush3.bf16.msra.mxu1 %v7426_v12 }
 0x636   : > { %6825 = vmatmul.mubr.bf16.vlgmr.msra.gmra.mrb[60].mxu0 %v8744_v55  ;;  %6874 = vmatprep.subr.bf16.mxu1 %v7783_v22 }
 0x637   : > { %6849 = vmatpush3.bf16.msra.mxu0 %v7411_v27  ;;  %6864 = vmatprep.mubr.msk.bf16.mxu0 %vm7784_vm2, %v7783_v22 }
 0x638   : > { %6850 = vmatprep.subr.bf16.mxu0 %v7783_v22 }
 0x639   : > { %6875 = vmatpush3.bf16.msra.mxu1 %v7428_v47 }
 0x63a   : > { %6876 = vmatprep.subr.bf16.mxu1 %v7783_v22 }
 0x63b   : > { %6851 = vmatpush3.bf16.msra.mxu0 %v7412_v46 }
 0x63c   : > { %6852 = vmatprep.subr.bf16.mxu0 %v7783_v22 }
 0x63d   : > { %6877 = vmatpush3.bf16.msra.mxu1 %v7430_v18 }
 0x63e   : > { %6878 = vmatprep.subr.bf16.mxu1 %v7783_v22 }
 0x63f   : > { %6853 = vmatpush3.bf16.msra.mxu0 %v7413_v48 }
 0x640   : > { %6854 = vmatprep.subr.bf16.mxu0 %v7783_v22 }
 0x641   : > { %6879 = vmatpush3.bf16.msra.mxu1 %v7432_v5 }
 0x642   : > { %6880 = vmatprep.subr.bf16.mxu1 %v7783_v22 }
 0x643   : > { %6855 = vmatpush3.bf16.msra.mxu0 %v7414_v50 }
 0x644   : > { %6856 = vmatprep.subr.bf16.mxu0 %v7783_v22 }
 0x645   : > { %6881 = vmatpush3.bf16.msra.mxu1 %v7434_v53  ;;  %v7437_v53 = vld [vmem:[%s9421_s4 + $0x48] ss:$16 sps:$4 sm:$0xff]  }
 0x646   : > { %6882 = vmatprep.subr.bf16.mxu1 %v7783_v22 }
 0x647   : > { %6857 = vmatpush3.bf16.msra.mxu0 %v7415_v52 }
 0x648   : > { %6858 = vmatprep.subr.bf16.mxu0 %v7783_v22 }
 0x649   : > { %6883 = vmatpush3.bf16.msra.mxu1 %v7436_v35 }
 0x64a   : > { %6908 = vmatprep.subr.bf16.mxu1 %v7783_v22 }
 0x64b   : > { %6859 = vmatpush3.bf16.msra.mxu0 %v7416_v1 }
 0x64c   : > { %6860 = vmatprep.subr.bf16.mxu0 %v7783_v22 }
 0x64f   : > { %6861 = vmatpush3.bf16.msra.mxu0 %v7417_v31 }
 0x650   : > { %6862 = vmatprep.subr.bf16.mxu0 %v7783_v22 }
 0x653   : > { %6863 = vmatpush3.bf16.msra.mxu0 %v7418_v62 }
 0x654   : > { %6888 = vmatprep.subr.bf16.mxu0 %v7783_v22 }
 0x656   : > { %6865 = vmatmul.mubr.bf16.vlgmr.msra.gmra.mrb[64].mxu0 %v8744_v55 }
 0x657   : > { %6904 = vmatprep.mubr.msk.bf16.mxu0 %vm7784_vm2, %v7783_v22  ;;  %6889 = vmatpush3.bf16.msra.mxu0 %v7419_v36 }
 0x658   : > { %6890 = vmatprep.subr.bf16.mxu0 %v7783_v22 }
 0x65b   : > { %6891 = vmatpush3.bf16.msra.mxu0 %v7420_v61 }
 0x65c   : > { %6892 = vmatprep.subr.bf16.mxu0 %v7783_v22 }
 0x65f   : > { %6893 = vmatpush3.bf16.msra.mxu0 %v7421_v9 }
 0x660   : > { %6894 = vmatprep.subr.bf16.mxu0 %v7783_v22 }
 0x663   : > { %6895 = vmatpush3.bf16.msra.mxu0 %v7423_v40 }
 0x664   : > { %6896 = vmatprep.subr.bf16.mxu0 %v7783_v22 }
 0x667   : > { %6897 = vmatpush3.bf16.msra.mxu0 %v7425_v43 }
 0x668   : > { %6898 = vmatprep.subr.bf16.mxu0 %v7783_v22 }
 0x66b   : > { %6899 = vmatpush3.bf16.msra.mxu0 %v7427_v44 }
 0x66c   : > { %6900 = vmatprep.subr.bf16.mxu0 %v7783_v22 }
 0x66f   : > { %6901 = vmatpush3.bf16.msra.mxu0 %v7429_v49 }
 0x670   : > { %6902 = vmatprep.subr.bf16.mxu0 %v7783_v22 }
 0x673   : > { %6903 = vmatpush3.bf16.msra.mxu0 %v7431_v51 }
 0x674   : > { %6928 = vmatprep.subr.bf16.mxu0 %v7783_v22 }
 0x6de   : > { %v3268_v55 = vpop.f32.mrb[60].mxu1 }
 0x6df   : > { %v3274_v13 = vadd.f32 %v3268_v55, %v8187_v16  ;;  %v6806_v59 = vpop.f32.mrb[61].mxu1  ;;  %v7438_v55 = vld [vmem:[%s9421_s4 + $0x4] ss:$16 sps:$4 sm:$0xff]  }
 0x6e0   : > { %v3271_v63 = vpop.f32.mrb[62].mxu1  ;;  %v7439_v59 = vld [vmem:[%s9421_s4 + $0x68] ss:$16 sps:$4 sm:$0xff]  }
 0x6e1   : > { %v6807_v2 = vpop.f32.mrb[63].mxu1  ;;  %v5841_v0 = vmul.f32 -1.442695, %v3274_v13  ;;  %v7440_v63 = vld [vmem:[%s9421_s4 + $0x24] ss:$16 sps:$4 sm:$0xff]  }
 0x6e2   : > { %v7441_v2 = vld [vmem:[%s9421_s4 + $0x88] ss:$16 sps:$4 sm:$0xff]  }
 0x6e3   : > { %7635 = vpow2.f32 %v5841_v0  ;;  %v7444_v0 = vld [vmem:[%s9421_s4 + $0x64] ss:$16 sps:$4 sm:$0xff]  }
 0x6e9   : > { %v3146_v6 = vpop.f32.mrb[56].mxu0 }
 0x6ea   : > { %v8895_v10 = vadd.f32 %v8728_v3, %v3146_v6  ;;  %v6786_v11 = vpop.f32.mrb[57].mxu0  ;;  %v7442_v6 = vld [vmem:[%s9421_s4 + $0x44] ss:$16 sps:$4 sm:$0xff]  }
 0x6eb   : > { %v3149_v14 = vpop.f32.mrb[58].mxu0  ;;  %v7443_v11 = vld [vmem:[%s9421_s4 + $0xa8] ss:$16 sps:$4 sm:$0xff]  }
 0x6ec   : > { %3152 = vmax.xlane.f32.xlu1 %v8895_v10  ;;  %v6787_v8 = vpop.f32.mrb[59].mxu0  ;;  %v7445_v14 = vld [vmem:[%s9421_s4 + $0xc8] ss:$16 sps:$4 sm:$0xff]  }
 0x6ed   : > { %v7636_v57 = vpop.eup %7635  ;;  %v7446_v8 = vld [vmem:[%s9421_s4 + $0x84] ss:$16 sps:$4 sm:$0xff]  }
 0x6ee   : > { %v3278_v15 = vadd.f32 1.0, %v7636_v57  ;;  %v7447_v57 = vld [vmem:[%s9421_s4 + $0xe8] ss:$16 sps:$4 sm:$0xff]  }
 0x6f0   : > { %7637 = vrcp.f32 %v3278_v15  ;;  %v7448_v15 = vld [vmem:[%s9421_s4 + $0xa4] ss:$16 sps:$4 sm:$0xff]  }
 0x6fa   : > { %v7638_v3 = vpop.eup %7637 }
 0x6fe   : > { %v3490_v28 = vpop.f32.mrb[64].mxu1 }
 0x6ff   : > { %v3496_v19 = vadd.f32 %v3490_v28, %v8190_v17  ;;  %v6846_v16 = vpop.f32.mrb[65].mxu1  ;;  %v7449_v28 = vld [vmem:[%s9421_s4 + $0xc4] ss:$16 sps:$4 sm:$0xff]  }
 0x700   : > { %v3493_v23 = vpop.f32.mrb[66].mxu1  ;;  %v7451_v16 = vld [vmem:[%s9421_s4 + $0xc] ss:$16 sps:$4 sm:$0xff]  }
 0x701   : > { %7639 = vtanh.f32 %v3496_v19  ;;  %v6847_v24 = vpop.f32.mrb[67].mxu1  ;;  %v7450_v19 = vld [vmem:[%s9421_s4 + $0xe4] ss:$16 sps:$4 sm:$0xff]   ;;  %v7452_v23 = vld [vmem:[%s9421_s4 + $0x2c] ss:$16 sps:$4 sm:$0xff]  }
 0x702   : > { %v7453_v24 = vld [vmem:[%s9421_s4 + $0x4c] ss:$16 sps:$4 sm:$0xff]  }
 0x709   : > { %v3379_v60 = vpop.f32.mrb[60].mxu0 }
 0x70a   : > { %v3385_v27 = vadd.f32 %v3379_v60, %v8192_v20  ;;  %v6826_v46 = vpop.f32.mrb[61].mxu0  ;;  %v7454_v60 = vld [vmem:[%s9421_s4 + $0x6c] ss:$16 sps:$4 sm:$0xff]  }
 0x70b   : > { %v7640_v48 = vpop.eup %7639  ;;  %v3382_v50 = vpop.f32.mrb[62].mxu0  ;;  %v7457_v46 = vld [vmem:[%s9421_s4 + $0xcc] ss:$16 sps:$4 sm:$0xff]  }
 0x70c   : > { %v3610_v52 = vmul.f32 %v7640_v48, %v7638_v3  ;;  %v5850_v1 = vmul.f32 -1.442695, %v3385_v27  ;;  %v6827_v31 = vpop.f32.mrb[63].mxu0  ;;  %v7455_v3 = vld [vmem:[%s9421_s4 + $0x8c] ss:$16 sps:$4 sm:$0xff]  }
 0x70d   : > { %v7456_v27 = vld [vmem:[%s9421_s4 + $0xac] ss:$16 sps:$4 sm:$0xff]   ;;  %v7459_v50 = vld [vmem:[%s9421_s4] ss:$16 sps:$4 sm:$0xff]  }
 0x70e   : > { %7641 = vpow2.f32 %v5850_v1  ;;  %v7458_v48 = vld [vmem:[%s9421_s4 + $0xec] ss:$16 sps:$4 sm:$0xff]   ;;  %v7461_v1 = vld [vmem:[%s9421_s4 + $0x40] ss:$16 sps:$4 sm:$0xff]  }
 0x70f   : > { %v7462_v31 = vld [vmem:[#allocation3] sm:$0xff]  }
 0x718   : > { %v7642_v62 = vpop.eup %7641 }
 0x719   : > { %v3389_v36 = vadd.f32 1.0, %v7642_v62  ;;  %v7463_v62 = vld [vmem:[%s9421_s4 + $0x60] ss:$16 sps:$4 sm:$0xff]  }
 0x71b   : > { %7643 = vrcp.f32 %v3389_v36  ;;  %v7464_v36 = vld [vmem:[#allocation3 + $0x8] sm:$0xff]  }
 0x725   : > { %v7644_v17 = vpop.eup %7643 }
 0x726   : > { %v3609_v61 = vmul.f32 %v7644_v17, %v8737_v39  ;;  %v7433_v39 = vld [vmem:[%s9421_s4 + $0x8] ss:$16 sps:$4 sm:$0xff]   ;;  %v7465_v17 = vld [vmem:[%s9421_s4 + $0x80] ss:$16 sps:$4 sm:$0xff]  }
 0x728   : > { %v8901_v9 = vadd.f32 %v3610_v52, %v3609_v61  ;;  %v7460_v52 = vld [vmem:[%s9421_s4 + $0x20] ss:$16 sps:$4 sm:$0xff]  }
 0x729   : > { %v3596_v4 = vpop.f32.mrb[64].mxu0  ;;  %v7466_v61 = vld [vmem:[#allocation3 + $0x10] sm:$0xff]  }
 0x72a   : > { %v3602_v40 = vadd.f32 %v3596_v4, %v8195_v21  ;;  %v6866_v56 = vpop.f32.mrb[65].mxu0  ;;  %v7435_v21 = vld [vmem:[%s9421_s4 + $0x28] ss:$16 sps:$4 sm:$0xff]   ;;  %v7467_v4 = vld [vmem:[%s9421_s4 + $0xa0] ss:$16 sps:$4 sm:$0xff]  }
 0x72b   : > { %v3599_v20 = vpop.f32.mrb[66].mxu0  ;;  %v7469_v56 = vld [vmem:[%s9421_s4 + $0xc0] ss:$16 sps:$4 sm:$0xff]  }
 0x72c   : > { %v5867_v43 = vmul.f32 -1.442695, %v3602_v40  ;;  %v6867_v12 = vpop.f32.mrb[67].mxu0  ;;  %v7468_v40 = vld [vmem:[#allocation3 + $0x18] sm:$0xff]   ;;  %v7470_v20 = vld [vmem:[#allocation3 + $0x20] sm:$0xff]  }
 0x72d   : > { %v7472_v12 = vld [vmem:[#allocation3 + $0x28] sm:$0xff]  }
 0x72e   : > { %7645 = vpow2.f32 %v5867_v43  ;;  %v7471_v43 = vld [vmem:[%s9421_s4 + $0xe0] ss:$16 sps:$4 sm:$0xff]  }
 0x72f   : > { %7647 = vtanh.f32 %v8901_v9 }
 0x738   : > { %v7646_v44 = vpop.eup %7645 }
 0x739   : > { %v3606_v47 = vadd.f32 1.0, %v7646_v44  ;;  %v7648_v49 = vpop.eup %7647  ;;  %v7474_v44 = vld [vmem:[#allocation3 + $0x30] sm:$0xff]  }
 0x73b   : > { %7649 = vrcp.f32 %v3606_v47  ;;  %v7476_v47 = vld [vmem:[#allocation3 + $0x38] sm:$0xff]  }
 0x745   : > { %v7650_v18 = vpop.eup %7649 }
 0x746   : > { %v3613_v51 = vmul.f32 %v7650_v18, %v7648_v49 }
 0x748   : > { %v8908_v5 = vpack.c.bf16 %v3613_v51, %v3613_v51  ;;  %7651 = vtanh.f32 %v3613_v51 }
 0x74a   : > { %6905 = vmatmul.mubr.bf16.vlgmr.msra.gmra.mrb[68].mxu0 %v8908_v5 }
 0x74b   : > { %6929 = vmatpush3.bf16.msra.mxu0 %v7433_v39  ;;  %6944 = vmatprep.mubr.msk.bf16.mxu0 %vm7784_vm2, %v7783_v22 }
 0x74c   : > { %6930 = vmatprep.subr.bf16.mxu0 %v7783_v22 }
 0x74f   : > { %6931 = vmatpush3.bf16.msra.mxu0 %v7435_v21  ;;  %v9061_v21 = vld [vmem:[%s9426_s9] ss:$0 sm:$0xff] }
 0x750   : > { %6932 = vmatprep.subr.bf16.mxu0 %v7783_v22 }
 0x752   : > { %v7652_v35 = vpop.eup %7651 }
 0x753   : > { %6933 = vmatpush3.bf16.msra.mxu0 %v7437_v53  ;;  %v3615_v13 = vpack.c.bf16 %v7652_v35, %v7652_v35 }
 0x754   : > { %6934 = vmatprep.subr.bf16.mxu0 %v7783_v22 }
 0x755   : > { %6885 = vmatmul.mubr.bf16.vlgmr.msra.gmra.mrb[68].mxu1 %v3615_v13 }
 0x756   : > { %6909 = vmatpush3.bf16.msra.mxu1 %v7438_v55  ;;  %6924 = vmatprep.mubr.msk.bf16.mxu1 %vm7784_vm2, %v7783_v22 }
 0x757   : > { %6935 = vmatpush3.bf16.msra.mxu0 %v7439_v59  ;;  %6910 = vmatprep.subr.bf16.mxu1 %v7783_v22 }
 0x758   : > { %6936 = vmatprep.subr.bf16.mxu0 %v7783_v22 }
 0x75a   : > { %6911 = vmatpush3.bf16.msra.mxu1 %v7440_v63 }
 0x75b   : > { %6937 = vmatpush3.bf16.msra.mxu0 %v7441_v2  ;;  %6912 = vmatprep.subr.bf16.mxu1 %v7783_v22 }
 0x75c   : > { %6938 = vmatprep.subr.bf16.mxu0 %v7783_v22 }
 0x75e   : > { %6913 = vmatpush3.bf16.msra.mxu1 %v7442_v6 }
 0x75f   : > { %6939 = vmatpush3.bf16.msra.mxu0 %v7443_v11  ;;  %6914 = vmatprep.subr.bf16.mxu1 %v7783_v22 }
 0x760   : > { %6940 = vmatprep.subr.bf16.mxu0 %v7783_v22 }
 0x762   : > { %6915 = vmatpush3.bf16.msra.mxu1 %v7444_v0 }
 0x763   : > { %6941 = vmatpush3.bf16.msra.mxu0 %v7445_v14  ;;  %6916 = vmatprep.subr.bf16.mxu1 %v7783_v22 }
 0x764   : > { %6942 = vmatprep.subr.bf16.mxu0 %v7783_v22 }
 0x766   : > { %6917 = vmatpush3.bf16.msra.mxu1 %v7446_v8 }
 0x767   : > { %6943 = vmatpush3.bf16.msra.mxu0 %v7447_v57  ;;  %6918 = vmatprep.subr.bf16.mxu1 %v7783_v22 }
 0x768   : > { %6968 = vmatprep.subr.bf16.mxu0 %v7783_v22 }
 0x76a   : > { %6919 = vmatpush3.bf16.msra.mxu1 %v7448_v15  ;;  %6945 = vmatmul.mubr.bf16.vlgmr.msra.gmra.mrb[72].mxu0 %v8908_v5 }
 0x76b   : > { %6920 = vmatprep.subr.bf16.mxu1 %v7783_v22  ;;  %6984 = vmatprep.mubr.msk.bf16.mxu0 %vm7784_vm2, %v7783_v22 }
 0x76c   : > { %6969 = vmatpush3.bf16.msra.mxu0 %v7462_v31 }
 0x76d   : > { %6970 = vmatprep.subr.bf16.mxu0 %v7783_v22 }
 0x76e   : > { %6921 = vmatpush3.bf16.msra.mxu1 %v7449_v28 }
 0x76f   : > { %6922 = vmatprep.subr.bf16.mxu1 %v7783_v22 }
 0x770   : > { %6971 = vmatpush3.bf16.msra.mxu0 %v7464_v36 }
 0x771   : > { %6972 = vmatprep.subr.bf16.mxu0 %v7783_v22 }
 0x772   : > { %6923 = vmatpush3.bf16.msra.mxu1 %v7450_v19 }
 0x773   : > { %6948 = vmatprep.subr.bf16.mxu1 %v7783_v22 }
 0x774   : > { %6973 = vmatpush3.bf16.msra.mxu0 %v7466_v61 }
 0x775   : > { %6925 = vmatmul.mubr.bf16.vlgmr.msra.gmra.mrb[72].mxu1 %v8908_v5  ;;  %6974 = vmatprep.subr.bf16.mxu0 %v7783_v22 }
 0x776   : > { %6949 = vmatpush3.bf16.msra.mxu1 %v7451_v16  ;;  %6964 = vmatprep.mubr.msk.bf16.mxu1 %vm7784_vm2, %v7783_v22 }
 0x777   : > { %6950 = vmatprep.subr.bf16.mxu1 %v7783_v22 }
 0x778   : > { %6975 = vmatpush3.bf16.msra.mxu0 %v7468_v40 }
 0x779   : > { %6976 = vmatprep.subr.bf16.mxu0 %v7783_v22 }
 0x77a   : > { %6951 = vmatpush3.bf16.msra.mxu1 %v7452_v23 }
 0x77b   : > { %6952 = vmatprep.subr.bf16.mxu1 %v7783_v22 }
 0x77c   : > { %6977 = vmatpush3.bf16.msra.mxu0 %v7470_v20 }
 0x77d   : > { %6978 = vmatprep.subr.bf16.mxu0 %v7783_v22 }
 0x77e   : > { %6953 = vmatpush3.bf16.msra.mxu1 %v7453_v24 }
 0x77f   : > { %6954 = vmatprep.subr.bf16.mxu1 %v7783_v22 }
 0x780   : > { %6979 = vmatpush3.bf16.msra.mxu0 %v7472_v12 }
 0x781   : > { %6980 = vmatprep.subr.bf16.mxu0 %v7783_v22 }
 0x782   : > { %6955 = vmatpush3.bf16.msra.mxu1 %v7454_v60 }
 0x783   : > { %6956 = vmatprep.subr.bf16.mxu1 %v7783_v22 }
 0x784   : > { %6981 = vmatpush3.bf16.msra.mxu0 %v7474_v44  ;;  %v7478_v44 = vld [vmem:[%s9421_s4 + $0x4] ss:$16 sps:$4 sm:$0xff]  }
 0x785   : > { %6982 = vmatprep.subr.bf16.mxu0 %v7783_v22 }
 0x786   : > { %6957 = vmatpush3.bf16.msra.mxu1 %v7455_v3 }
 0x787   : > { %6958 = vmatprep.subr.bf16.mxu1 %v7783_v22 }
 0x788   : > { %6983 = vmatpush3.bf16.msra.mxu0 %v7476_v47 }
 0x789   : > { %7008 = vmatprep.subr.bf16.mxu0 %v7783_v22 }
 0x78a   : > { %6959 = vmatpush3.bf16.msra.mxu1 %v7456_v27 }
 0x78b   : > { %6960 = vmatprep.subr.bf16.mxu1 %v7783_v22 }
 0x78e   : > { %6961 = vmatpush3.bf16.msra.mxu1 %v7457_v46 }
 0x78f   : > { %6962 = vmatprep.subr.bf16.mxu1 %v7783_v22 }
 0x792   : > { %6963 = vmatpush3.bf16.msra.mxu1 %v7458_v48 }
 0x793   : > { %6988 = vmatprep.subr.bf16.mxu1 %v7783_v22 }
 0x795   : > { %6965 = vmatmul.mubr.bf16.vlgmr.msra.gmra.mrb[76].mxu1 %v8908_v5 }
 0x796   : > { %7004 = vmatprep.mubr.msk.bf16.mxu1 %vm7784_vm2, %v7783_v22  ;;  %6989 = vmatpush3.bf16.msra.mxu1 %v7459_v50 }
 0x797   : > { %6990 = vmatprep.subr.bf16.mxu1 %v7783_v22 }
 0x79a   : > { %6991 = vmatpush3.bf16.msra.mxu1 %v7460_v52 }
 0x79b   : > { %6992 = vmatprep.subr.bf16.mxu1 %v7783_v22 }
 0x79e   : > { %6993 = vmatpush3.bf16.msra.mxu1 %v7461_v1 }
 0x79f   : > { %6994 = vmatprep.subr.bf16.mxu1 %v7783_v22 }
 0x7a2   : > { %6995 = vmatpush3.bf16.msra.mxu1 %v7463_v62 }
 0x7a3   : > { %6996 = vmatprep.subr.bf16.mxu1 %v7783_v22 }
 0x7a6   : > { %6997 = vmatpush3.bf16.msra.mxu1 %v7465_v17 }
 0x7a7   : > { %6998 = vmatprep.subr.bf16.mxu1 %v7783_v22 }
 0x7aa   : > { %6999 = vmatpush3.bf16.msra.mxu1 %v7467_v4 }
 0x7ab   : > { %7000 = vmatprep.subr.bf16.mxu1 %v7783_v22 }
 0x7ae   : > { %7001 = vmatpush3.bf16.msra.mxu1 %v7469_v56 }
 0x7af   : > { %7002 = vmatprep.subr.bf16.mxu1 %v7783_v22 }
 0x7b2   : > { %7003 = vmatpush3.bf16.msra.mxu1 %v7471_v43  ;;  %v7477_v43 = vld [vmem:[%s9421_s4 + $0x48] ss:$16 sps:$4 sm:$0xff]  }
 0x7b3   : > { %7028 = vmatprep.subr.bf16.mxu1 %v7783_v22 }
 0x81d   : > { %v3843_v49 = vpop.f32.mrb[68].mxu0 }
 0x81e   : > { %v3849_v18 = vadd.f32 %v3843_v49, %v8197_v25  ;;  %v6906_v51 = vpop.f32.mrb[69].mxu0  ;;  %v7479_v49 = vld [vmem:[%s9421_s4 + $0x68] ss:$16 sps:$4 sm:$0xff]  }
 0x81f   : > { %v3846_v39 = vpop.f32.mrb[70].mxu0  ;;  %v7481_v51 = vld [vmem:[%s9421_s4 + $0x88] ss:$16 sps:$4 sm:$0xff]  }
 0x820   : > { %v6907_v5 = vpop.f32.mrb[71].mxu0  ;;  %v5885_v13 = vmul.f32 -1.442695, %v3849_v18  ;;  %v7480_v18 = vld [vmem:[%s9421_s4 + $0x24] ss:$16 sps:$4 sm:$0xff]  }
 0x821   : > { %v7482_v39 = vld [vmem:[%s9421_s4 + $0x44] ss:$16 sps:$4 sm:$0xff]   ;;  %v7483_v5 = vld [vmem:[%s9421_s4 + $0xa8] ss:$16 sps:$4 sm:$0xff]  }
 0x822   : > { %7653 = vpow2.f32 %v5885_v13  ;;  %v7486_v13 = vld [vmem:[%s9421_s4 + $0x84] ss:$16 sps:$4 sm:$0xff]  }
 0x828   : > { %v3721_v53 = vpop.f32.mrb[68].mxu1 }
 0x829   : > { %v9064_v35 = vadd.f32 %v9061_v21, %v3721_v53  ;;  %v6886_v55 = vpop.f32.mrb[69].mxu1  ;;  %v7484_v53 = vld [vmem:[%s9421_s4 + $0x64] ss:$16 sps:$4 sm:$0xff]  }
 0x82a   : > { %v3724_v59 = vpop.f32.mrb[70].mxu1  ;;  %v7485_v55 = vld [vmem:[%s9421_s4 + $0xc8] ss:$16 sps:$4 sm:$0xff]  }
 0x82b   : > { %3727 = vmax.xlane.f32.xlu0 %v9064_v35  ;;  %v6887_v63 = vpop.f32.mrb[71].mxu1  ;;  %v7487_v59 = vld [vmem:[%s9421_s4 + $0xe8] ss:$16 sps:$4 sm:$0xff]  }
 0x82c   : > { %v7654_v25 = vpop.eup %7653  ;;  %v7488_v63 = vld [vmem:[%s9421_s4 + $0xa4] ss:$16 sps:$4 sm:$0xff]  }
 0x82d   : > { %v3853_v2 = vadd.f32 1.0, %v7654_v25  ;;  %v7489_v25 = vld [vmem:[%s9421_s4 + $0xc4] ss:$16 sps:$4 sm:$0xff]  }
 0x82f   : > { %7655 = vrcp.f32 %v3853_v2  ;;  %v7490_v2 = vld [vmem:[%s9421_s4 + $0xe4] ss:$16 sps:$4 sm:$0xff]  }
 0x839   : > { %v7656_v15 = vpop.eup %7655 }
 0x83d   : > { %v4065_v6 = vpop.f32.mrb[72].mxu0 }
 0x83e   : > { %v4071_v11 = vadd.f32 %v4065_v6, %v8200_v26  ;;  %v6946_v0 = vpop.f32.mrb[73].mxu0  ;;  %v7491_v6 = vld [vmem:[%s9421_s4 + $0xc] ss:$16 sps:$4 sm:$0xff]  }
 0x83f   : > { %v4068_v14 = vpop.f32.mrb[74].mxu0  ;;  %v7493_v0 = vld [vmem:[%s9421_s4 + $0x4c] ss:$16 sps:$4 sm:$0xff]  }
 0x840   : > { %7657 = vtanh.f32 %v4071_v11  ;;  %v6947_v8 = vpop.f32.mrb[75].mxu0  ;;  %v7492_v11 = vld [vmem:[%s9421_s4 + $0x2c] ss:$16 sps:$4 sm:$0xff]  }
 0x841   : > { %v7494_v14 = vld [vmem:[%s9421_s4 + $0x6c] ss:$16 sps:$4 sm:$0xff]  }
 0x842   : > { %v7495_v8 = vld [vmem:[%s9421_s4 + $0x8c] ss:$16 sps:$4 sm:$0xff]  }
 0x848   : > { %v3954_v57 = vpop.f32.mrb[72].mxu1 }
 0x849   : > { %v3960_v28 = vadd.f32 %v3954_v57, %v8202_v29  ;;  %v6926_v19 = vpop.f32.mrb[73].mxu1  ;;  %v7496_v57 = vld [vmem:[%s9421_s4 + $0xac] ss:$16 sps:$4 sm:$0xff]  }
 0x84a   : > { %v7658_v16 = vpop.eup %7657  ;;  %v3957_v23 = vpop.f32.mrb[74].mxu1  ;;  %v7499_v19 = vld [vmem:[%s9421_s4] ss:$16 sps:$4 sm:$0xff]  }
 0x84b   : > { %v4185_v24 = vmul.f32 %v7658_v16, %v7656_v15  ;;  %v5894_v60 = vmul.f32 -1.442695, %v3960_v28  ;;  %v6927_v3 = vpop.f32.mrb[75].mxu1  ;;  %v7497_v15 = vld [vmem:[%s9421_s4 + $0xcc] ss:$16 sps:$4 sm:$0xff]  }
 0x84c   : > { %v7498_v28 = vld [vmem:[%s9421_s4 + $0xec] ss:$16 sps:$4 sm:$0xff]   ;;  %v7500_v16 = vld [vmem:[%s9421_s4 + $0x20] ss:$16 sps:$4 sm:$0xff]  }
 0x84d   : > { %7659 = vpow2.f32 %v5894_v60  ;;  %v7501_v23 = vld [vmem:[%s9421_s4 + $0x40] ss:$16 sps:$4 sm:$0xff]   ;;  %v7504_v3 = vld [vmem:[#allocation3 + $0x8] sm:$0xff]  }
 0x84e   : > { %v7503_v60 = vld [vmem:[%s9421_s4 + $0x60] ss:$16 sps:$4 sm:$0xff]  }
 0x857   : > { %v7660_v27 = vpop.eup %7659 }
 0x858   : > { %v3964_v46 = vadd.f32 1.0, %v7660_v27  ;;  %v7505_v27 = vld [vmem:[%s9421_s4 + $0x80] ss:$16 sps:$4 sm:$0xff]  }
 0x85a   : > { %7661 = vrcp.f32 %v3964_v46  ;;  %v7506_v46 = vld [vmem:[#allocation3 + $0x10] sm:$0xff]  }
 0x864   : > { %v7662_v26 = vpop.eup %7661 }
 0x865   : > { %v4184_v48 = vmul.f32 %v7662_v26, %v8901_v9  ;;  %v7473_v9 = vld [vmem:[%s9421_s4 + $0x8] ss:$16 sps:$4 sm:$0xff]   ;;  %v7507_v26 = vld [vmem:[%s9421_s4 + $0xa0] ss:$16 sps:$4 sm:$0xff]  }
 0x867   : > { %v9070_v50 = vadd.f32 %v4185_v24, %v4184_v48  ;;  %v7502_v24 = vld [vmem:[#allocation3] sm:$0xff]   ;;  %v7508_v48 = vld [vmem:[#allocation3 + $0x18] sm:$0xff]  }
 0x868   : > { %v4171_v52 = vpop.f32.mrb[76].mxu1 }
 0x869   : > { %v4177_v1 = vadd.f32 %v4171_v52, %v8205_v30  ;;  %v6966_v31 = vpop.f32.mrb[77].mxu1  ;;  %v7475_v30 = vld [vmem:[%s9421_s4 + $0x28] ss:$16 sps:$4 sm:$0xff]   ;;  %v7509_v52 = vld [vmem:[%s9421_s4 + $0xc0] ss:$16 sps:$4 sm:$0xff]  }
 0x86a   : > { %v4174_v29 = vpop.f32.mrb[78].mxu1  ;;  %v7511_v31 = vld [vmem:[%s9421_s4 + $0xe0] ss:$16 sps:$4 sm:$0xff]  }
 0x86b   : > { %v5911_v62 = vmul.f32 -1.442695, %v4177_v1  ;;  %v6967_v36 = vpop.f32.mrb[79].mxu1  ;;  %v7510_v1 = vld [vmem:[#allocation3 + $0x20] sm:$0xff]   ;;  %v7512_v29 = vld [vmem:[#allocation3 + $0x28] sm:$0xff]  }
 0x86c   : > { %v7516_v36 = vld [vmem:[#allocation3 + $0x38] sm:$0xff]  }
 0x86d   : > { %7663 = vpow2.f32 %v5911_v62  ;;  %v7514_v62 = vld [vmem:[#allocation3 + $0x30] sm:$0xff]  }
 0x86e   : > { %7665 = vtanh.f32 %v9070_v50 }
 0x877   : > { %v7664_v17 = vpop.eup %7663 }
 0x878   : > { %v4181_v61 = vadd.f32 1.0, %v7664_v17  ;;  %v7666_v4 = vpop.eup %7665 }
 0x87a   : > { %7667 = vrcp.f32 %v4181_v61 }
 0x884   : > { %v7668_v40 = vpop.eup %7667 }
 0x885   : > { %v4188_v56 = vmul.f32 %v7668_v40, %v7666_v4 }
 0x887   : > { %v9077_v20 = vpack.c.bf16 %v4188_v56, %v4188_v56  ;;  %7669 = vtanh.f32 %v4188_v56 }
 0x889   : > { %7005 = vmatmul.mubr.bf16.vlgmr.msra.gmra.mrb[80].mxu1 %v9077_v20 }
 0x88a   : > { %7029 = vmatpush3.bf16.msra.mxu1 %v7473_v9  ;;  %7044 = vmatprep.mubr.msk.bf16.mxu1 %vm7784_vm2, %v7783_v22 }
 0x88b   : > { %7030 = vmatprep.subr.bf16.mxu1 %v7783_v22 }
 0x88e   : > { %7031 = vmatpush3.bf16.msra.mxu1 %v7475_v30 }
 0x88f   : > { %7032 = vmatprep.subr.bf16.mxu1 %v7783_v22 }
 0x891   : > { %v7670_v12 = vpop.eup %7669 }
 0x892   : > { %7033 = vmatpush3.bf16.msra.mxu1 %v7477_v43  ;;  %v4190_v47 = vpack.c.bf16 %v7670_v12, %v7670_v12 }
 0x893   : > { %7034 = vmatprep.subr.bf16.mxu1 %v7783_v22 }
 0x894   : > { %6985 = vmatmul.mubr.bf16.vlgmr.msra.gmra.mrb[76].mxu0 %v4190_v47 }
 0x895   : > { %7009 = vmatpush3.bf16.msra.mxu0 %v7478_v44  ;;  %7024 = vmatprep.mubr.msk.bf16.mxu0 %vm7784_vm2, %v7783_v22 }
 0x896   : > { %7035 = vmatpush3.bf16.msra.mxu1 %v7479_v49  ;;  %7010 = vmatprep.subr.bf16.mxu0 %v7783_v22 }
 0x897   : > { %7036 = vmatprep.subr.bf16.mxu1 %v7783_v22 }
 0x899   : > { %7011 = vmatpush3.bf16.msra.mxu0 %v7480_v18 }
 0x89a   : > { %7037 = vmatpush3.bf16.msra.mxu1 %v7481_v51  ;;  %7012 = vmatprep.subr.bf16.mxu0 %v7783_v22 }
 0x89b   : > { %7038 = vmatprep.subr.bf16.mxu1 %v7783_v22 }
 0x89d   : > { %7013 = vmatpush3.bf16.msra.mxu0 %v7482_v39 }
 0x89e   : > { %7039 = vmatpush3.bf16.msra.mxu1 %v7483_v5  ;;  %7014 = vmatprep.subr.bf16.mxu0 %v7783_v22 }
 0x89f   : > { %7040 = vmatprep.subr.bf16.mxu1 %v7783_v22 }
 0x8a1   : > { %7015 = vmatpush3.bf16.msra.mxu0 %v7484_v53 }
 0x8a2   : > { %7041 = vmatpush3.bf16.msra.mxu1 %v7485_v55  ;;  %7016 = vmatprep.subr.bf16.mxu0 %v7783_v22 }
 0x8a3   : > { %7042 = vmatprep.subr.bf16.mxu1 %v7783_v22 }
 0x8a5   : > { %7017 = vmatpush3.bf16.msra.mxu0 %v7486_v13 }
 0x8a6   : > { %7043 = vmatpush3.bf16.msra.mxu1 %v7487_v59  ;;  %7018 = vmatprep.subr.bf16.mxu0 %v7783_v22 }
 0x8a7   : > { %7068 = vmatprep.subr.bf16.mxu1 %v7783_v22 }
 0x8a9   : > { %7019 = vmatpush3.bf16.msra.mxu0 %v7488_v63  ;;  %7045 = vmatmul.mubr.bf16.vlgmr.msra.gmra.mrb[84].mxu1 %v9077_v20 }
 0x8aa   : > { %7020 = vmatprep.subr.bf16.mxu0 %v7783_v22  ;;  %7084 = vmatprep.mubr.msk.bf16.mxu1 %vm7784_vm2, %v7783_v22 }
 0x8ab   : > { %7069 = vmatpush3.bf16.msra.mxu1 %v7502_v24 }
 0x8ac   : > { %7070 = vmatprep.subr.bf16.mxu1 %v7783_v22 }
 0x8ad   : > { %7021 = vmatpush3.bf16.msra.mxu0 %v7489_v25 }
 0x8ae   : > { %7022 = vmatprep.subr.bf16.mxu0 %v7783_v22 }
 0x8af   : > { %7071 = vmatpush3.bf16.msra.mxu1 %v7504_v3 }
 0x8b0   : > { %7072 = vmatprep.subr.bf16.mxu1 %v7783_v22 }
 0x8b1   : > { %7023 = vmatpush3.bf16.msra.mxu0 %v7490_v2 }
 0x8b2   : > { %7048 = vmatprep.subr.bf16.mxu0 %v7783_v22 }
 0x8b3   : > { %7073 = vmatpush3.bf16.msra.mxu1 %v7506_v46 }
 0x8b4   : > { %7025 = vmatmul.mubr.bf16.vlgmr.msra.gmra.mrb[80].mxu0 %v9077_v20  ;;  %7074 = vmatprep.subr.bf16.mxu1 %v7783_v22 }
 0x8b5   : > { %7049 = vmatpush3.bf16.msra.mxu0 %v7491_v6  ;;  %7064 = vmatprep.mubr.msk.bf16.mxu0 %vm7784_vm2, %v7783_v22 }
 0x8b6   : > { %7050 = vmatprep.subr.bf16.mxu0 %v7783_v22 }
 0x8b7   : > { %7075 = vmatpush3.bf16.msra.mxu1 %v7508_v48 }
 0x8b8   : > { %7076 = vmatprep.subr.bf16.mxu1 %v7783_v22 }
 0x8b9   : > { %7051 = vmatpush3.bf16.msra.mxu0 %v7492_v11 }
 0x8ba   : > { %7052 = vmatprep.subr.bf16.mxu0 %v7783_v22 }
 0x8bb   : > { %7077 = vmatpush3.bf16.msra.mxu1 %v7510_v1 }
 0x8bc   : > { %7078 = vmatprep.subr.bf16.mxu1 %v7783_v22 }
 0x8bd   : > { %7053 = vmatpush3.bf16.msra.mxu0 %v7493_v0 }
 0x8be   : > { %7054 = vmatprep.subr.bf16.mxu0 %v7783_v22 }
 0x8bf   : > { %7079 = vmatpush3.bf16.msra.mxu1 %v7512_v29  ;;  %v7520_v29 = vld [vmem:[%s9421_s4 + $0x24] ss:$16 sps:$4 sm:$0xff]  }
 0x8c0   : > { %7080 = vmatprep.subr.bf16.mxu1 %v7783_v22 }
 0x8c1   : > { %7055 = vmatpush3.bf16.msra.mxu0 %v7494_v14 }
 0x8c2   : > { %7056 = vmatprep.subr.bf16.mxu0 %v7783_v22 }
 0x8c3   : > { %7081 = vmatpush3.bf16.msra.mxu1 %v7514_v62  ;;  %v7521_v62 = vld [vmem:[%s9421_s4 + $0x88] ss:$16 sps:$4 sm:$0xff]  }
 0x8c4   : > { %7082 = vmatprep.subr.bf16.mxu1 %v7783_v22 }
 0x8c5   : > { %7057 = vmatpush3.bf16.msra.mxu0 %v7495_v8 }
 0x8c6   : > { %7058 = vmatprep.subr.bf16.mxu0 %v7783_v22 }
 0x8c7   : > { %7083 = vmatpush3.bf16.msra.mxu1 %v7516_v36  ;;  %v7522_v36 = vld [vmem:[%s9421_s4 + $0x44] ss:$16 sps:$4 sm:$0xff]  }
 0x8c8   : > { %7108 = vmatprep.subr.bf16.mxu1 %v7783_v22 }
 0x8c9   : > { %7059 = vmatpush3.bf16.msra.mxu0 %v7496_v57 }
 0x8ca   : > { %7060 = vmatprep.subr.bf16.mxu0 %v7783_v22 }
 0x8cd   : > { %7061 = vmatpush3.bf16.msra.mxu0 %v7497_v15 }
 0x8ce   : > { %7062 = vmatprep.subr.bf16.mxu0 %v7783_v22 }
 0x8d1   : > { %7063 = vmatpush3.bf16.msra.mxu0 %v7498_v28 }
 0x8d2   : > { %7088 = vmatprep.subr.bf16.mxu0 %v7783_v22 }
 0x8d4   : > { %7065 = vmatmul.mubr.bf16.vlgmr.msra.gmra.mrb[84].mxu0 %v9077_v20 }
 0x8d5   : > { %7104 = vmatprep.mubr.msk.bf16.mxu0 %vm7784_vm2, %v7783_v22  ;;  %7089 = vmatpush3.bf16.msra.mxu0 %v7499_v19 }
 0x8d6   : > { %7090 = vmatprep.subr.bf16.mxu0 %v7783_v22 }
 0x8d9   : > { %7091 = vmatpush3.bf16.msra.mxu0 %v7500_v16 }
 0x8da   : > { %7092 = vmatprep.subr.bf16.mxu0 %v7783_v22 }
 0x8dd   : > { %7093 = vmatpush3.bf16.msra.mxu0 %v7501_v23 }
 0x8de   : > { %7094 = vmatprep.subr.bf16.mxu0 %v7783_v22 }
 0x8e1   : > { %7095 = vmatpush3.bf16.msra.mxu0 %v7503_v60 }
 0x8e2   : > { %7096 = vmatprep.subr.bf16.mxu0 %v7783_v22 }
 0x8e5   : > { %7097 = vmatpush3.bf16.msra.mxu0 %v7505_v27 }
 0x8e6   : > { %7098 = vmatprep.subr.bf16.mxu0 %v7783_v22 }
 0x8e9   : > { %7099 = vmatpush3.bf16.msra.mxu0 %v7507_v26  ;;  %v7517_v26 = vld [vmem:[%s9421_s4 + $0x48] ss:$16 sps:$4 sm:$0xff]  }
 0x8ea   : > { %7100 = vmatprep.subr.bf16.mxu0 %v7783_v22 }
 0x8ed   : > { %7101 = vmatpush3.bf16.msra.mxu0 %v7509_v52  ;;  %v7518_v52 = vld [vmem:[%s9421_s4 + $0x4] ss:$16 sps:$4 sm:$0xff]  }
 0x8ee   : > { %7102 = vmatprep.subr.bf16.mxu0 %v7783_v22 }
 0x8f1   : > { %7103 = vmatpush3.bf16.msra.mxu0 %v7511_v31  ;;  %v7519_v31 = vld [vmem:[%s9421_s4 + $0x68] ss:$16 sps:$4 sm:$0xff]  }
 0x8f2   : > { %7128 = vmatprep.subr.bf16.mxu0 %v7783_v22 }
 0x95c   : > { %v4418_v17 = vpop.f32.mrb[80].mxu1 }
 0x95d   : > { %v4424_v61 = vadd.f32 %v4418_v17, %v8207_v33  ;;  %v7006_v4 = vpop.f32.mrb[81].mxu1  ;;  %v7523_v17 = vld [vmem:[%s9421_s4 + $0xa8] ss:$16 sps:$4 sm:$0xff]  }
 0x95e   : > { %v4421_v40 = vpop.f32.mrb[82].mxu1  ;;  %v7525_v4 = vld [vmem:[%s9421_s4 + $0xc8] ss:$16 sps:$4 sm:$0xff]  }
 0x95f   : > { %v7007_v56 = vpop.f32.mrb[83].mxu1  ;;  %v5929_v43 = vmul.f32 -1.442695, %v4424_v61  ;;  %v7524_v61 = vld [vmem:[%s9421_s4 + $0x64] ss:$16 sps:$4 sm:$0xff]  }
 0x960   : > { %v7526_v40 = vld [vmem:[%s9421_s4 + $0x84] ss:$16 sps:$4 sm:$0xff]   ;;  %v7527_v56 = vld [vmem:[%s9421_s4 + $0xe8] ss:$16 sps:$4 sm:$0xff]  }
 0x961   : > { %7671 = vpow2.f32 %v5929_v43  ;;  %v7530_v43 = vld [vmem:[%s9421_s4 + $0xe4] ss:$16 sps:$4 sm:$0xff]  }
 0x967   : > { %v4296_v9 = vpop.f32.mrb[76].mxu0 }
 0x968   : > { %v9228_v20 = vadd.f32 %v9061_v21, %v4296_v9  ;;  %v6986_v30 = vpop.f32.mrb[77].mxu0  ;;  %v7528_v9 = vld [vmem:[%s9421_s4 + $0xa4] ss:$16 sps:$4 sm:$0xff]  }
 0x969   : > { %v4299_v12 = vpop.f32.mrb[78].mxu0  ;;  %v7529_v30 = vld [vmem:[%s9421_s4 + $0xc4] ss:$16 sps:$4 sm:$0xff]  }
 0x96a   : > { %4302 = vmax.xlane.f32.xlu1 %v9228_v20  ;;  %v6987_v44 = vpop.f32.mrb[79].mxu0  ;;  %v7531_v12 = vld [vmem:[%s9421_s4 + $0xc] ss:$16 sps:$4 sm:$0xff]  }
 0x96b   : > { %v7672_v47 = vpop.eup %7671  ;;  %v7532_v44 = vld [vmem:[%s9421_s4 + $0x2c] ss:$16 sps:$4 sm:$0xff]  }
 0x96c   : > { %v4428_v49 = vadd.f32 1.0, %v7672_v47  ;;  %v7533_v47 = vld [vmem:[%s9421_s4 + $0x4c] ss:$16 sps:$4 sm:$0xff]  }
 0x96e   : > { %7673 = vrcp.f32 %v4428_v49  ;;  %v7534_v49 = vld [vmem:[%s9421_s4 + $0x6c] ss:$16 sps:$4 sm:$0xff]  }
 0x978   : > { %v7674_v21 = vpop.eup %7673 }
 0x97c   : > { %v4640_v18 = vpop.f32.mrb[84].mxu1 }
 0x97d   : > { %v4646_v51 = vadd.f32 %v4640_v18, %v8210_v34  ;;  %v7046_v33 = vpop.f32.mrb[85].mxu1  ;;  %v7535_v18 = vld [vmem:[%s9421_s4 + $0x8c] ss:$16 sps:$4 sm:$0xff]  }
 0x97e   : > { %v4643_v39 = vpop.f32.mrb[86].mxu1  ;;  %v7537_v33 = vld [vmem:[%s9421_s4 + $0xcc] ss:$16 sps:$4 sm:$0xff]  }
 0x97f   : > { %7675 = vtanh.f32 %v4646_v51  ;;  %v7047_v5 = vpop.f32.mrb[87].mxu1  ;;  %v7536_v51 = vld [vmem:[%s9421_s4 + $0xac] ss:$16 sps:$4 sm:$0xff]  }
 0x980   : > { %v7538_v39 = vld [vmem:[%s9421_s4 + $0xec] ss:$16 sps:$4 sm:$0xff]   ;;  %v7539_v5 = vld [vmem:[#allocation3] sm:$0xff]  }
 0x987   : > { %v4529_v53 = vpop.f32.mrb[80].mxu0 }
 0x988   : > { %v4535_v55 = vadd.f32 %v4529_v53, %v8212_v37  ;;  %v7026_v13 = vpop.f32.mrb[81].mxu0  ;;  %v7540_v53 = vld [vmem:[#allocation3 + $0x8] sm:$0xff]  }
 0x989   : > { %v7676_v59 = vpop.eup %7675  ;;  %v4532_v63 = vpop.f32.mrb[82].mxu0  ;;  %v7543_v13 = vld [vmem:[#allocation3 + $0x20] sm:$0xff]  }
 0x98a   : > { %v4760_v25 = vmul.f32 %v7676_v59, %v7674_v21  ;;  %v5938_v2 = vmul.f32 -1.442695, %v4535_v55  ;;  %v7027_v6 = vpop.f32.mrb[83].mxu0  ;;  %v7541_v21 = vld [vmem:[#allocation3 + $0x10] sm:$0xff]   ;;  %v7542_v55 = vld [vmem:[#allocation3 + $0x18] sm:$0xff]   ;;  %v7544_v59 = vld [vmem:[#allocation3 + $0x28] sm:$0xff]  }
 0x98b   : > { %v7545_v63 = vld [vmem:[#allocation3 + $0x30] sm:$0xff]  }
 0x98c   : > { %7677 = vpow2.f32 %v5938_v2  ;;  %v1428_v2 = vpop.xlane.xlu0 %1427 }
 0x98d   : > { %v1429_v6 = vsub.f32 %v8398_v32, %v1428_v2  ;;  %v9363_v32 = vld [vmem:[%s9426_s9] ss:$0 sm:$0xff] }
 0x996   : > { %v7678_v11 = vpop.eup %7677 }
 0x997   : > { %v4539_v0 = vadd.f32 1.0, %v7678_v11  ;;  %v9355_v11 = vpop.xlane.xlu0 %2002 }
 0x999   : > { %7679 = vrcp.f32 %v4539_v0  ;;  %v2578_v0 = vpop.xlane.xlu1 %2577 }
 0x9a3   : > { %v7680_v34 = vpop.eup %7679 }
 0x9a4   : > { %v4759_v14 = vmul.f32 %v7680_v34, %v9070_v50  ;;  %v7513_v50 = vld [vmem:[%s9421_s4 + $0x8] ss:$16 sps:$4 sm:$0xff]  }
 0x9a6   : > { %v9234_v8 = vadd.f32 %v4760_v25, %v4759_v14  ;;  %v7546_v25 = vld [vmem:[#allocation3 + $0x38] sm:$0xff]  }
 0x9a7   : > { %v4746_v57 = vpop.f32.mrb[84].mxu0 }
 0x9a8   : > { %v4752_v15 = vadd.f32 %v4746_v57, %v8215_v38  ;;  %v7066_v28 = vpop.f32.mrb[85].mxu0  ;;  %v7515_v38 = vld [vmem:[%s9421_s4 + $0x28] ss:$16 sps:$4 sm:$0xff]  }
 0x9a9   : > { %v4749_v37 = vpop.f32.mrb[86].mxu0  ;;  %v1430_v28 = vmul.f32 1.442695, %v1429_v6 }
 0x9aa   : > { %v5955_v19 = vmul.f32 -1.442695, %v4752_v15  ;;  %v7067_v16 = vpop.f32.mrb[87].mxu0  ;;  %v2579_v37 = vsub.f32 %v8731_v7, %v2578_v0 }
 0x9ab   : > { %v3728_v16 = vpop.xlane.xlu0 %3727 }
 0x9ac   : > { %7681 = vpow2.f32 %v5955_v19 }
 0x9ad   : > { %7683 = vtanh.f32 %v9234_v8 }
 0x9b6   : > { %v7682_v23 = vpop.eup %7681 }
 0x9b7   : > { %v4756_v24 = vadd.f32 1.0, %v7682_v23  ;;  %v7684_v60 = vpop.eup %7683  ;;  %v2580_v23 = vmul.f32 1.442695, %v2579_v37 }
 0x9b9   : > { %7685 = vrcp.f32 %v4756_v24 }
 0x9c3   : > { %v7686_v3 = vpop.eup %7685 }
 0x9c4   : > { %v4763_v27 = vmul.f32 %v7686_v3, %v7684_v60 }
 0x9c6   : > { %v9241_v46 = vpack.c.bf16 %v4763_v27, %v4763_v27  ;;  %7687 = vtanh.f32 %v4763_v27 }
 0x9c7   : > { %7689 = vpow2.f32 %v1430_v28 }
 0x9c8   : > { %7105 = vmatmul.mubr.bf16.vlgmr.msra.gmra.mrb[88].mxu0 %v9241_v46  ;;  %7691 = vpow2.f32 %v2580_v23 }
 0x9c9   : > { %7129 = vmatpush3.bf16.msra.mxu0 %v7513_v50  ;;  %7144 = vmatprep.mubr.msk.bf16.mxu0 %vm7784_vm2, %v7783_v22 }
 0x9ca   : > { %7130 = vmatprep.subr.bf16.mxu0 %v7783_v22 }
 0x9cd   : > { %7131 = vmatpush3.bf16.msra.mxu0 %v7515_v38 }
 0x9ce   : > { %7132 = vmatprep.subr.bf16.mxu0 %v7783_v22 }
 0x9d0   : > { %v7688_v48 = vpop.eup %7687 }
 0x9d1   : > { %7133 = vmatpush3.bf16.msra.mxu0 %v7517_v26  ;;  %v4765_v1 = vpack.c.bf16 %v7688_v48, %v7688_v48 }
 0x9d2   : > { %7134 = vmatprep.subr.bf16.mxu0 %v7783_v22 }
 0x9d3   : > { %7085 = vmatmul.mubr.bf16.vlgmr.msra.gmra.mrb[88].mxu1 %v4765_v1 }
 0x9d4   : > { %7109 = vmatpush3.bf16.msra.mxu1 %v7518_v52  ;;  %7124 = vmatprep.mubr.msk.bf16.mxu1 %vm7784_vm2, %v7783_v22 }
 0x9d5   : > { %7135 = vmatpush3.bf16.msra.mxu0 %v7519_v31  ;;  %7110 = vmatprep.subr.bf16.mxu1 %v7783_v22 }
 0x9d6   : > { %7136 = vmatprep.subr.bf16.mxu0 %v7783_v22 }
 0x9d8   : > { %7111 = vmatpush3.bf16.msra.mxu1 %v7520_v29 }
 0x9d9   : > { %7137 = vmatpush3.bf16.msra.mxu0 %v7521_v62  ;;  %7112 = vmatprep.subr.bf16.mxu1 %v7783_v22 }
 0x9da   : > { %7138 = vmatprep.subr.bf16.mxu0 %v7783_v22 }
 0x9dc   : > { %7113 = vmatpush3.bf16.msra.mxu1 %v7522_v36 }
 0x9dd   : > { %7139 = vmatpush3.bf16.msra.mxu0 %v7523_v17  ;;  %7114 = vmatprep.subr.bf16.mxu1 %v7783_v22 }
 0x9de   : > { %7140 = vmatprep.subr.bf16.mxu0 %v7783_v22 }
 0x9e0   : > { %7115 = vmatpush3.bf16.msra.mxu1 %v7524_v61 }
 0x9e1   : > { %7141 = vmatpush3.bf16.msra.mxu0 %v7525_v4  ;;  %7116 = vmatprep.subr.bf16.mxu1 %v7783_v22 }
 0x9e2   : > { %7142 = vmatprep.subr.bf16.mxu0 %v7783_v22 }
 0x9e4   : > { %7117 = vmatpush3.bf16.msra.mxu1 %v7526_v40 }
 0x9e5   : > { %7143 = vmatpush3.bf16.msra.mxu0 %v7527_v56  ;;  %7118 = vmatprep.subr.bf16.mxu1 %v7783_v22 }
 0x9e6   : > { %7168 = vmatprep.subr.bf16.mxu0 %v7783_v22 }
 0x9e8   : > { %7119 = vmatpush3.bf16.msra.mxu1 %v7528_v9  ;;  %7145 = vmatmul.mubr.bf16.vlgmr.msra.gmra.mrb[92].mxu0 %v9241_v46 }
 0x9e9   : > { %7120 = vmatprep.subr.bf16.mxu1 %v7783_v22  ;;  %7184 = vmatprep.mubr.msk.bf16.mxu0 %vm7784_vm2, %v7783_v22 }
 0x9ea   : > { %7169 = vmatpush3.bf16.msra.mxu0 %v7539_v5 }
 0x9eb   : > { %7170 = vmatprep.subr.bf16.mxu0 %v7783_v22 }
 0x9ec   : > { %7121 = vmatpush3.bf16.msra.mxu1 %v7529_v30 }
 0x9ed   : > { %7122 = vmatprep.subr.bf16.mxu1 %v7783_v22 }
 0x9ee   : > { %7171 = vmatpush3.bf16.msra.mxu0 %v7540_v53 }
 0x9ef   : > { %7172 = vmatprep.subr.bf16.mxu0 %v7783_v22 }
 0x9f0   : > { %7123 = vmatpush3.bf16.msra.mxu1 %v7530_v43 }
 0x9f1   : > { %7148 = vmatprep.subr.bf16.mxu1 %v7783_v22 }
 0x9f2   : > { %7173 = vmatpush3.bf16.msra.mxu0 %v7541_v21 }
 0x9f3   : > { %7125 = vmatmul.mubr.bf16.vlgmr.msra.gmra.mrb[92].mxu1 %v9241_v46  ;;  %7174 = vmatprep.subr.bf16.mxu0 %v7783_v22 }
 0x9f4   : > { %7149 = vmatpush3.bf16.msra.mxu1 %v7531_v12  ;;  %7164 = vmatprep.mubr.msk.bf16.mxu1 %vm7784_vm2, %v7783_v22 }
 0x9f5   : > { %7150 = vmatprep.subr.bf16.mxu1 %v7783_v22 }
 0x9f6   : > { %7175 = vmatpush3.bf16.msra.mxu0 %v7542_v55 }
 0x9f7   : > { %7176 = vmatprep.subr.bf16.mxu0 %v7783_v22 }
 0x9f8   : > { %7151 = vmatpush3.bf16.msra.mxu1 %v7532_v44 }
 0x9f9   : > { %7152 = vmatprep.subr.bf16.mxu1 %v7783_v22 }
 0x9fa   : > { %7177 = vmatpush3.bf16.msra.mxu0 %v7543_v13 }
 0x9fb   : > { %7178 = vmatprep.subr.bf16.mxu0 %v7783_v22 }
 0x9fc   : > { %7153 = vmatpush3.bf16.msra.mxu1 %v7533_v47 }
 0x9fd   : > { %7154 = vmatprep.subr.bf16.mxu1 %v7783_v22 }
 0x9fe   : > { %7179 = vmatpush3.bf16.msra.mxu0 %v7544_v59 }
 0x9ff   : > { %7180 = vmatprep.subr.bf16.mxu0 %v7783_v22 }
 0xa00   : > { %7155 = vmatpush3.bf16.msra.mxu1 %v7534_v49 }
 0xa01   : > { %7156 = vmatprep.subr.bf16.mxu1 %v7783_v22 }
 0xa02   : > { %7181 = vmatpush3.bf16.msra.mxu0 %v7545_v63 }
 0xa03   : > { %7182 = vmatprep.subr.bf16.mxu0 %v7783_v22 }
 0xa04   : > { %7157 = vmatpush3.bf16.msra.mxu1 %v7535_v18 }
 0xa05   : > { %7158 = vmatprep.subr.bf16.mxu1 %v7783_v22 }
 0xa06   : > { %7183 = vmatpush3.bf16.msra.mxu0 %v7546_v25 }
 0xa08   : > { %7159 = vmatpush3.bf16.msra.mxu1 %v7536_v51 }
 0xa09   : > { %7160 = vmatprep.subr.bf16.mxu1 %v7783_v22 }
 0xa0c   : > { %7161 = vmatpush3.bf16.msra.mxu1 %v7537_v33 }
 0xa0d   : > { %7162 = vmatprep.subr.bf16.mxu1 %v7783_v22  ;;  %v3729_v22 = vsub.f32 %v9064_v35, %v3728_v16 }
 0xa0f   : > { %v3730_v24 = vmul.f32 1.442695, %v3729_v22 }
 0xa10   : > { %7163 = vmatpush3.bf16.msra.mxu1 %v7538_v39 }
 0xa11   : > { %7693 = vpow2.f32 %v3730_v24 }
 0xa13   : > { %7165 = vmatmul.mubr.bf16.vlgmr.msra.gmra.mrb[96].mxu1 %v9241_v46  ;;  %v9369_v46 = vpop.eup %7689 }
 0xa14   : > { %v9372_v35 = vpop.eup %7691 }
 0xa1b   : > { %v9375_v38 = vpop.eup %7693 }
 0xa9b   : > { %v4993_v34 = vpop.f32.mrb[88].mxu0 }
 0xa9c   : > { %v4999_v14 = vadd.f32 %v4993_v34, %v8217_v41  ;;  %v7106_v57 = vpop.f32.mrb[89].mxu0 }
 0xa9d   : > { %v4996_v15 = vpop.f32.mrb[90].mxu0 }
 0xa9e   : > { %v7107_v19 = vpop.f32.mrb[91].mxu0  ;;  %v5973_v27 = vmul.f32 -1.442695, %v4999_v14 }
 0xaa0   : > { %7695 = vpow2.f32 %v5973_v27 }
 0xaa6   : > { %v4871_v60 = vpop.f32.mrb[88].mxu1 }
 0xaa7   : > { %v9366_v41 = vadd.f32 %v9363_v32, %v4871_v60  ;;  %v7086_v3 = vpop.f32.mrb[89].mxu1 }
 0xaa8   : > { %v4874_v7 = vpop.f32.mrb[90].mxu1 }
 0xaa9   : > { %4877 = vmax.xlane.f32.xlu0 %v9366_v41  ;;  %v7087_v50 = vpop.f32.mrb[91].mxu1 }
 0xaaa   : > { %v7696_v26 = vpop.eup %7695 }
 0xaab   : > { %v5003_v48 = vadd.f32 1.0, %v7696_v26 }
 0xaad   : > { %1432 = vadd.xlane.f32.xlu0 %v9369_v46  ;;  %7697 = vrcp.f32 %v5003_v48  ;;  %v2004_v48 = vsub.f32 %v8562_v58, %v9355_v11 }
 0xab1   : > { %2582 = vadd.xlane.f32.xlu0 %v9372_v35 }
 0xab5   : > { %3732 = vadd.xlane.f32.xlu0 %v9375_v38 }
 0xab7   : > { %v7698_v17 = vpop.eup %7697 }
 0xabb   : > { %v5215_v52 = vpop.f32.mrb[92].mxu0 }
 0xabc   : > { %v5221_v1 = vadd.f32 %v5215_v52, %v8220_v42  ;;  %v7146_v31 = vpop.f32.mrb[93].mxu0  ;;  %v3153_v52 = vpop.xlane.xlu1 %3152 }
 0xabd   : > { %v5218_v29 = vpop.f32.mrb[94].mxu0 }
 0xabe   : > { %7699 = vtanh.f32 %v5221_v1  ;;  %v7147_v62 = vpop.f32.mrb[95].mxu0  ;;  %v2005_v1 = vmul.f32 1.442695, %v2004_v48 }
 0xac0   : > { %v4303_v29 = vpop.xlane.xlu1 %4302 }
 0xac6   : > { %v5104_v36 = vpop.f32.mrb[92].mxu1 }
 0xac7   : > { %v5110_v61 = vadd.f32 %v5104_v36, %v8222_v45  ;;  %v7126_v4 = vpop.f32.mrb[93].mxu1  ;;  %v4304_v36 = vsub.f32 %v9228_v20, %v4303_v29 }
 0xac8   : > { %v7700_v40 = vpop.eup %7699  ;;  %v5107_v56 = vpop.f32.mrb[94].mxu1 }
 0xac9   : > { %v5335_v9 = vmul.f32 %v7700_v40, %v7698_v17  ;;  %v5982_v30 = vmul.f32 -1.442695, %v5110_v61  ;;  %v7127_v43 = vpop.f32.mrb[95].mxu1  ;;  %v4305_v61 = vmul.f32 1.442695, %v4304_v36 }
 0xacb   : > { %7701 = vpow2.f32 %v5982_v30 }
 0xad5   : > { %v7702_v12 = vpop.eup %7701 }
 0xad6   : > { %v5114_v44 = vadd.f32 1.0, %v7702_v12 }
 0xad8   : > { %7703 = vrcp.f32 %v5114_v44 }
 0xae2   : > { %v7704_v42 = vpop.eup %7703 }
 0xae3   : > { %v5334_v47 = vmul.f32 %v7704_v42, %v9234_v8 }
 0xae5   : > { %v5336_v49 = vadd.f32 %v5335_v9, %v5334_v47 }
 0xae6   : > { %v5321_v45 = vpop.f32.mrb[96].mxu1 }
 0xae7   : > { %5466 = vst [vmem:[%s483_s29] sm:$0xff] %v5336_v49  ;;  %v5327_v18 = vadd.f32 %v5321_v45, %v8225_v54  ;;  %v7166_v51 = vpop.f32.mrb[97].mxu1 }
 0xae8   : > { %v5324_v33 = vpop.f32.mrb[98].mxu1 }
 0xae9   : > { %v5999_v39 = vmul.f32 -1.442695, %v5327_v18  ;;  %v7167_v5 = vpop.f32.mrb[99].mxu1 }
 0xaeb   : > { %7705 = vpow2.f32 %v5999_v39 }
 0xaec   : > { %7707 = vtanh.f32 %v5336_v49 }
 0xaf5   : > { %v7706_v53 = vpop.eup %7705 }
 0xaf6   : > { %v5331_v21 = vadd.f32 1.0, %v7706_v53  ;;  %v7708_v8 = vpop.eup %7707 }
 0xaf8   : > { %7709 = vrcp.f32 %v5331_v21 }
 0xb02   : > { %v7710_v55 = vpop.eup %7709 }
 0xb03   : > { %v5338_v13 = vmul.f32 %v7710_v55, %v7708_v8 }
 0xb05   : > { %7711 = vtanh.f32 %v5338_v13  ;;  %5465 = vst [vmem:[%s479_s14] sm:$0xff] %v5338_v13 }
 0xb0f   : > { %v7712_v59 = vpop.eup %7711 }
 0xb10   : > { %v5340_v54 = vpack.c.bf16 %v7712_v59, %v7712_v59 }
 0xb12   : > { %7185 = vmatmul.mubr.bf16.vlgmr.msra.gmra.mrb[96].mxu0 %v5340_v54 }
 0xb36   : > { %v4878_v63 = vpop.xlane.xlu0 %4877 }
 0xb37   : > { %v4879_v25 = vsub.f32 %v9366_v41, %v4878_v63 }
 0xb39   : > { %v4880_v2 = vmul.f32 1.442695, %v4879_v25 }
 0xb3a   : > { %v1433_v6 = vpop.xlane.xlu0 %1432 }
 0xb3b   : > { %7713 = vpow2.f32 %v4880_v2 }
 0xb3c   : > { %7715 = vrcp.f32 %v1433_v6 }
 0xb3e   : > { %v2583_v0 = vpop.xlane.xlu0 %2582 }
 0xb3f   : > { %7717 = vrcp.f32 %v2583_v0 }
 0xb42   : > { %v3733_v34 = vpop.xlane.xlu0 %3732 }
 0xb43   : > { %7719 = vrcp.f32 %v3733_v34 }
 0xb45   : > { %v7714_v14 = vpop.eup %7713 }
 0xb46   : > { %v7716_v57 = vpop.eup %7715  ;;  %4882 = vadd.xlane.f32.xlu0 %v7714_v14 }
 0xb47   : > { %v1435_v15 = vmul.f32 %v7716_v57, %v1433_v6 }
 0xb49   : > { %v7718_v28 = vpop.eup %7717  ;;  %v1436_v37 = vsub.f32 2.0, %v1435_v15 }
 0xb4a   : > { %v2585_v19 = vmul.f32 %v7718_v28, %v2583_v0 }
 0xb4b   : > { %v1437_v16 = vmul.f32 %v7716_v57, %v1436_v37 }
 0xb4c   : > { %v2586_v23 = vsub.f32 2.0, %v2585_v19 }
 0xb4d   : > { %v7720_v22 = vpop.eup %7719  ;;  %v1438_v24 = vmul.f32 %v9369_v46, %v1437_v16  ;;  %v3154_v46 = vsub.f32 %v8895_v10, %v3153_v52 }
 0xb4e   : > { %v2587_v60 = vmul.f32 %v7718_v28, %v2586_v23  ;;  %v3735_v41 = vmul.f32 %v7720_v22, %v3733_v34 }
 0xb4f   : > { %1439 = vst [vmem:[%s9396_s16] sm:$0xff] %v1438_v24 }
 0xb50   : > { %v2588_v3 = vmul.f32 %v9372_v35, %v2587_v60  ;;  %v3736_v27 = vsub.f32 2.0, %v3735_v41  ;;  %v3155_v35 = vmul.f32 1.442695, %v3154_v46 }
 0xb52   : > { %2589 = vst [vmem:[%s9396_s16 + $0x10] sm:$0xff] %v2588_v3  ;;  %v3737_v7 = vmul.f32 %v7720_v22, %v3736_v27 }
 0xb54   : > { %v3738_v50 = vmul.f32 %v9375_v38, %v3737_v7 }
 0xb56   : > { %3739 = vst [vmem:[%s9396_s16 + $0x20] sm:$0xff] %v3738_v50 }
 0xbd3   : > { %v4883_v26 = vpop.xlane.xlu0 %4882 }
 0xbd4   : > { %7721 = vrcp.f32 %v4883_v26 }
 0xbd5   : > { %7723 = vpow2.f32 %v2005_v1 }
 0xbd6   : > { %7725 = vpow2.f32 %v3155_v35 }
 0xbd7   : > { %7727 = vpow2.f32 %v4305_v61 }
 0xbde   : > { %v7722_v31 = vpop.eup %7721 }
 0xbdf   : > { %v4885_v62 = vmul.f32 %v7722_v31, %v4883_v26  ;;  %v7724_v9 = vpop.eup %7723 }
 0xbe0   : > { %v7726_v30 = vpop.eup %7725 }
 0xbe1   : > { %v4886_v17 = vsub.f32 2.0, %v4885_v62  ;;  %v7728_v43 = vpop.eup %7727 }
 0xbe3   : > { %v4887_v38 = vmul.f32 %v7722_v31, %v4886_v17 }
 0xbe5   : > { %v4888_v4 = vmul.f32 %v7714_v14, %v4887_v38  ;;  %v5446_v40 = vpop.f32.mrb[96].mxu0 }
 0xbe6   : > { %v5447_v58 = vadd.f32 %v9363_v32, %v5446_v40  ;;  %v7186_v11 = vpop.f32.mrb[97].mxu0 }
 0xbe7   : > { %4889 = vst [vmem:[%s9396_s16 + $0x30] sm:$0xff] %v4888_v4  ;;  %v5449_v56 = vpop.f32.mrb[98].mxu0 }
 0xbe8   : > { %5452 = vmax.xlane.f32.xlu1 %v5447_v58  ;;  %v7187_v10 = vpop.f32.mrb[99].mxu0 }
 0xbec   : > { %2007 = vadd.xlane.f32.xlu1 %v7724_v9 }
 0xbf0   : > { %3157 = vadd.xlane.f32.xlu1 %v7726_v30 }
 0xbf4   : > { %4307 = vadd.xlane.f32.xlu1 %v7728_v43 }
 0xc75   : > { %v5453_v20 = vpop.xlane.xlu1 %5452 }
 0xc76   : > { %v5454_v12 = vsub.f32 %v5447_v58, %v5453_v20 }
 0xc78   : > { %v5455_v44 = vmul.f32 1.442695, %v5454_v12 }
 0xc79   : > { %v2008_v42 = vpop.xlane.xlu1 %2007 }
 0xc7a   : > { %7729 = vpow2.f32 %v5455_v44 }
 0xc7b   : > { %7731 = vrcp.f32 %v2008_v42 }
 0xc7d   : > { %v3158_v47 = vpop.xlane.xlu1 %3157 }
 0xc7e   : > { %7733 = vrcp.f32 %v3158_v47 }
 0xc81   : > { %v4308_v32 = vpop.xlane.xlu1 %4307 }
 0xc82   : > { %7735 = vrcp.f32 %v4308_v32 }
 0xc84   : > { %v7730_v49 = vpop.eup %7729 }
 0xc85   : > { %v7732_v45 = vpop.eup %7731  ;;  %5457 = vadd.xlane.f32.xlu1 %v7730_v49 }
 0xc86   : > { %v2010_v18 = vmul.f32 %v7732_v45, %v2008_v42 }
 0xc88   : > { %v7734_v51 = vpop.eup %7733  ;;  %v2011_v33 = vsub.f32 2.0, %v2010_v18 }
 0xc89   : > { %v3160_v39 = vmul.f32 %v7734_v51, %v3158_v47 }
 0xc8a   : > { %v2012_v5 = vmul.f32 %v7732_v45, %v2011_v33 }
 0xc8b   : > { %v3161_v53 = vsub.f32 2.0, %v3160_v39 }
 0xc8c   : > { %v7736_v21 = vpop.eup %7735  ;;  %v2013_v8 = vmul.f32 %v7724_v9, %v2012_v5 }
 0xc8d   : > { %v3162_v55 = vmul.f32 %v7734_v51, %v3161_v53  ;;  %v4310_v13 = vmul.f32 %v7736_v21, %v4308_v32 }
 0xc8e   : > { %2014 = vst [vmem:[%s9396_s16 + $0x8] sm:$0xff] %v2013_v8 }
 0xc8f   : > { %v3163_v59 = vmul.f32 %v7726_v30, %v3162_v55  ;;  %v4311_v54 = vsub.f32 2.0, %v4310_v13 }
 0xc91   : > { %3164 = vst [vmem:[%s9396_s16 + $0x18] sm:$0xff] %v3163_v59  ;;  %v4312_v63 = vmul.f32 %v7736_v21, %v4311_v54 }
 0xc93   : > { %v4313_v25 = vmul.f32 %v7728_v43, %v4312_v63 }
 0xc95   : > { %4314 = vst [vmem:[%s9396_s16 + $0x28] sm:$0xff] %v4313_v25 }
 0xd12   : > { %v5458_v2 = vpop.xlane.xlu1 %5457 }
 0xd13   : > { %7737 = vrcp.f32 %v5458_v2 }
 0xd1d   : > { %v7738_v6 = vpop.eup %7737 }
 0xd1e   : > { %v5460_v0 = vmul.f32 %v7738_v6, %v5458_v2 }
 0xd20   : > { %v5461_v34 = vsub.f32 2.0, %v5460_v0 }
 0xd22   : > { %v5462_v14 = vmul.f32 %v7738_v6, %v5461_v34 }
 0xd24   : > { %v5463_v57 = vmul.f32 %v7730_v49, %v5462_v14 }
 0xd26   : > { %5464 = vst [vmem:[%s9396_s16 + $0x38] sm:$0xff] %v5463_v57 }
 0xd27 PF: > { %s24_s21 = sadd.s32 1, %s7777_s21  }
 0xd28   : > { %p21_p3 = scmp.ge.s32.totalorder %s24_s21, 4  }
 0xd2a   :  { %23 = sbr.rel (!%p21_p3) target bundleno = 1 (0x1), region = 125 }
 0xd31   :  { %5516 = vsyncpa [#allocation4], 1 }
 0xd32   :  { %5518 = vsyncpa [#allocation4 + $0x1], 1 }

</bundles_post_ra>
